<compile_context>
chip_gen: v6e
topology: v6e:2x2x1
jax: 0.10.0
libtpu: 0.0.40
codegen_flags: <defaults>
</compile_context>

<pallas_src>
import functools
import math

import jax
import jax.numpy as jnp
from jax.experimental import pallas as pl
from jax.experimental.pallas import tpu as pltpu

EPS = 1e-5
LANE = 128


def _round_up(x, m):
    return (x + m - 1) // m * m


def _pad_axis(a, axis, target):
    if a.shape[axis] == target:
        return a
    cfg = [(0, 0)] * a.ndim
    cfg[axis] = (0, target - a.shape[axis])
    return jnp.pad(a, cfg)


def _vmem_limit(est_bytes):
    """Explicit scoped-VMEM budget (+4 MiB headroom), clamped to a sane range."""
    return int(min(max(est_bytes + (4 << 20), 32 << 20), 100 << 20))


def fold_bn(gamma, beta, mean, var, eps=EPS):
    scale = gamma / jnp.sqrt(var + eps)
    bias = beta - mean * scale
    return scale.astype(jnp.float32), bias.astype(jnp.float32)


def _row_tiling(M):
    """Row tile (multiple of 8, <=512); prefers >=2 grid steps for megacore."""
    if M >= 1024:
        tm = 512
    elif M >= 512:
        tm = 256
    elif M >= 16:
        tm = _round_up((M + 1) // 2, 8)
    else:
        tm = _round_up(max(M, 1), 8)
    return tm, _round_up(M, tm)


# ---------------------------------------------------------------------------
# 1x1x1 conv (= matmul) + folded BN (+ReLU) (+fused downsample / residual)
# ---------------------------------------------------------------------------
def _pw_bn_kernel(x_ref, w_ref, scale_ref, bias_ref, o_ref, *, relu):
    y = jnp.dot(x_ref[...], w_ref[...], preferred_element_type=jnp.float32)
    y = y * scale_ref[...] + bias_ref[...]
    if relu:
        y = jnp.maximum(y, 0.0)
    o_ref[...] = y.astype(o_ref.dtype)


def _pw_dual_bn_add_relu_kernel(h_ref, w3_ref, s3_ref, b3_ref,
                                x_ref, wd_ref, sd_ref, bd_ref, o_ref):
    # conv3 + bn3 and downsample conv + bnd on the same output tile, residual
    # add + ReLU fused: no HBM round trip for the residual.
    y = jnp.dot(h_ref[...], w3_ref[...], preferred_element_type=jnp.float32)
    y = y * s3_ref[...] + b3_ref[...]
    r = jnp.dot(x_ref[...], wd_ref[...], preferred_element_type=jnp.float32)
    r = r * sd_ref[...] + bd_ref[...]
    o_ref[...] = jnp.maximum(y + r, 0.0).astype(o_ref.dtype)


def _pw_bn_add_relu_kernel(h_ref, w3_ref, s3_ref, b3_ref, res_ref, o_ref):
    y = jnp.dot(h_ref[...], w3_ref[...], preferred_element_type=jnp.float32)
    y = y * s3_ref[...] + b3_ref[...] + res_ref[...].astype(jnp.float32)
    o_ref[...] = jnp.maximum(y, 0.0).astype(o_ref.dtype)


def pointwise_conv_bn(x, w, scale, bias, *, relu, out_dtype=jnp.bfloat16):
    """x: (M, K) bf16, w: (K, Co) bf16, folded BN scale/bias f32."""
    M, K = x.shape
    Co = w.shape[1]
    tm, Mp = _row_tiling(M)
    if Mp != M:
        x = _pad_axis(x, 0, Mp)
    ob = jnp.dtype(out_dtype).itemsize
    vmem = _vmem_limit(2 * (tm * K * 2 + K * Co * 2 + tm * Co * ob + 8 * Co)
                       + tm * Co * 4)
    out = pl.pallas_call(
        functools.partial(_pw_bn_kernel, relu=relu),
        out_shape=jax.ShapeDtypeStruct((Mp, Co), out_dtype),
        grid=(Mp // tm,),
        in_specs=[
            pl.BlockSpec((tm, K), lambda i: (i, 0)),
            pl.BlockSpec((K, Co), lambda i: (0, 0)),
            pl.BlockSpec((1, Co), lambda i: (0, 0)),
            pl.BlockSpec((1, Co), lambda i: (0, 0)),
        ],
        out_specs=pl.BlockSpec((tm, Co), lambda i: (i, 0)),
        compiler_params=pltpu.CompilerParams(
            dimension_semantics=("parallel",), vmem_limit_bytes=vmem),
    )(x, w, scale.reshape(1, Co), bias.reshape(1, Co))
    return out[:M] if Mp != M else out


def conv3_plus_downsample(h, w3, s3, b3, xs, wd, sd, bd, *, out_dtype=jnp.bfloat16):
    """Fused: relu(bn3(h @ w3) + bnd(xs @ wd)). h:(M,K3) bf16, xs:(M,Kd) bf16."""
    M, K3 = h.shape
    Kd = xs.shape[1]
    Co = w3.shape[1]
    tm, Mp = _row_tiling(M)
    if Mp != M:
        h = _pad_axis(h, 0, Mp)
        xs = _pad_axis(xs, 0, Mp)
    ob = jnp.dtype(out_dtype).itemsize
    vmem = _vmem_limit(2 * (tm * K3 * 2 + K3 * Co * 2 + tm * Kd * 2 + Kd * Co * 2
                            + tm * Co * ob + 16 * Co) + 2 * tm * Co * 4)
    out = pl.pallas_call(
        _pw_dual_bn_add_relu_kernel,
        out_shape=jax.ShapeDtypeStruct((Mp, Co), out_dtype),
        grid=(Mp // tm,),
        in_specs=[
            pl.BlockSpec((tm, K3), lambda i: (i, 0)),
            pl.BlockSpec((K3, Co), lambda i: (0, 0)),
            pl.BlockSpec((1, Co), lambda i: (0, 0)),
            pl.BlockSpec((1, Co), lambda i: (0, 0)),
            pl.BlockSpec((tm, Kd), lambda i: (i, 0)),
            pl.BlockSpec((Kd, Co), lambda i: (0, 0)),
            pl.BlockSpec((1, Co), lambda i: (0, 0)),
            pl.BlockSpec((1, Co), lambda i: (0, 0)),
        ],
        out_specs=pl.BlockSpec((tm, Co), lambda i: (i, 0)),
        compiler_params=pltpu.CompilerParams(
            dimension_semantics=("parallel",), vmem_limit_bytes=vmem),
    )(h, w3, s3.reshape(1, Co), b3.reshape(1, Co),
      xs, wd, sd.reshape(1, Co), bd.reshape(1, Co))
    return out[:M] if Mp != M else out


def conv3_plus_residual(h, w3, s3, b3, res, *, out_dtype=jnp.bfloat16):
    """Fused: relu(bn3(h @ w3) + res) for identity-residual blocks."""
    M, K3 = h.shape
    Co = w3.shape[1]
    tm, Mp = _row_tiling(M)
    if Mp != M:
        h = _pad_axis(h, 0, Mp)
        res = _pad_axis(res, 0, Mp)
    ob = jnp.dtype(out_dtype).itemsize
    vmem = _vmem_limit(2 * (tm * K3 * 2 + K3 * Co * 2 + tm * Co * 2
                            + tm * Co * ob + 8 * Co) + tm * Co * 4)
    out = pl.pallas_call(
        _pw_bn_add_relu_kernel,
        out_shape=jax.ShapeDtypeStruct((Mp, Co), out_dtype),
        grid=(Mp // tm,),
        in_specs=[
            pl.BlockSpec((tm, K3), lambda i: (i, 0)),
            pl.BlockSpec((K3, Co), lambda i: (0, 0)),
            pl.BlockSpec((1, Co), lambda i: (0, 0)),
            pl.BlockSpec((1, Co), lambda i: (0, 0)),
            pl.BlockSpec((tm, Co), lambda i: (i, 0)),
        ],
        out_specs=pl.BlockSpec((tm, Co), lambda i: (i, 0)),
        compiler_params=pltpu.CompilerParams(
            dimension_semantics=("parallel",), vmem_limit_bytes=vmem),
    )(h, w3, s3.reshape(1, Co), b3.reshape(1, Co), res)
    return out[:M] if Mp != M else out


# ---------------------------------------------------------------------------
# 3x3x3 conv (stride s, pad 1) + BN + ReLU — halo/phase kernel (no im2col)
# ---------------------------------------------------------------------------
def _conv2_row_block(Ho, Wo):
    """Output-row block HB and padded Ho: HB*Wo ~128-256 MXU rows, HB*Wo % 8 == 0."""
    req = 8 // math.gcd(Wo, 8)                 # HB multiple of req => (HB*Wo) % 8 == 0
    cap = min(16, max(1, 256 // max(Wo, 1)), Ho)
    cap -= cap % req
    if cap <= 0 or cap >= Ho:
        return Ho, Ho                          # single block per (n, to): full extent
    best_key, best_hb = None, req
    for c in range(req, cap + 1, req):         # minimize Ho padding, then maximize HB
        key = (_round_up(Ho, c), -c)
        if best_key is None or key < best_key:
            best_key, best_hb = key, c
    return best_hb, _round_up(Ho, best_hb)


def _phase_decompose(x, s, Tp, Hp, Wp):
    """(N,T,H,W,C) -> (N, s^3*Tp*Hp, Wp, C): pad-by-1 + stride-phase split.
    Row index = (phase*Tp + t)*Hp + h with phase = pt*s^2 + ph*s + pw.
    Implemented as a single pad + reshape/transpose (one fused copy)."""
    N, T, H, W, C = x.shape
    xp = jnp.pad(x, ((0, 0), (1, s * Tp - T - 1), (1, s * Hp - H - 1),
                     (1, s * Wp - W - 1), (0, 0)))
    if s == 1:
        return xp.reshape(N, Tp * Hp, Wp, C)
    xr = xp.reshape(N, Tp, s, Hp, s, Wp, s, C)
    xr = jnp.transpose(xr, (0, 2, 4, 6, 1, 3, 5, 7))
    return xr.reshape(N, s * s * s * Tp * Hp, Wp, C)


def _conv2_halo_kernel(x_ref, w_ref, scale_ref, bias_ref, o_ref, *,
                       stride, Tp, Hp, HB, Wo, taps):
    # x_ref: (P*Tp*Hp, Wp, C) phase-decomposed padded activation (resident per n)
    # w_ref: (27, C, Co) per-tap weights; o_ref: (HB*Wo, Co) flat output row block.
    s = stride
    to = pl.program_id(1)
    hb = pl.program_id(2)
    C = x_ref.shape[-1]
    Co = o_ref.shape[-1]
    ho0 = hb * HB
    acc = jnp.zeros((HB * Wo, Co), jnp.float32)
    # 27 consecutive MXU dots accumulating into one f32 block: each tap loads its
    # (C, Co) weight once per block and one (HB, Wo, C) activation slab.
    # TODO(synk): on v6e/v7x merge the 3 kw taps into a single K=3*C dot.
    for idx, (kt, kh, kw) in enumerate(taps):
        phase = (kt % s) * s * s + (kh % s) * s + (kw % s)
        row0 = (phase * Tp + to + kt // s) * Hp + ho0 + kh // s
        slab = x_ref[pl.ds(row0, HB), pl.ds(kw // s, Wo), :]       # (HB, Wo, C) bf16
        acc = acc + jnp.dot(slab.reshape(HB * Wo, C), w_ref[idx],
                            preferred_element_type=jnp.float32)
    y = acc * scale_ref[...] + bias_ref[...]
    o_ref[...] = jnp.maximum(y, 0.0).astype(o_ref.dtype)


def conv3x3x3_bn_relu(x_nthwc, w_taps, scale, bias, stride):
    """x: (N,T,H,W,C) bf16; w_taps: (27,C,Co) bf16; folded BN f32 -> (N,To,Ho,Wo,Co) bf16."""
    N, T, H, W, C = x_nthwc.shape
    Co = w_taps.shape[-1]
    s = stride
    To = (T - 1) // s + 1
    Ho = (H - 1) // s + 1
    Wo = (W - 1) // s + 1
    HB, Ho_p = _conv2_row_block(Ho, Wo)

    P = s * s * s
    Tp = -(-(T + 2) // s)
    Hp = max(-(-(H + 2) // s), Ho_p + 2 // s)       # room for padded-Ho overhang
    Wp = -(-(W + 2) // s)
    xph = _phase_decompose(x_nthwc, s, Tp, Hp, Wp)  # (N, P*Tp*Hp, Wp, C)

    taps = [(kt, kh, kw) for kt in range(3) for kh in range(3) for kw in range(3)]
    vmem = _vmem_limit(2 * (P * Tp * Hp * Wp * C * 2 + 27 * C * Co * 2
                            + HB * Wo * Co * 2 + 8 * Co)
                       + 2 * HB * Wo * (C * 2 + Co * 4))

    # NOTE: the per-batch padded activation stays resident in VMEM across (to, hb).
    # TODO(synk): v7x (64 MiB VMEM): T-tile the activation BlockSpec with a 1-plane
    #             halo and single-buffer the constant-index weight operand.
    out = pl.pallas_call(
        functools.partial(_conv2_halo_kernel, stride=s, Tp=Tp, Hp=Hp, HB=HB, Wo=Wo,
                          taps=taps),
        out_shape=jax.ShapeDtypeStruct((N, To, Ho_p * Wo, Co), jnp.bfloat16),
        grid=(N, To, Ho_p // HB),
        in_specs=[
            pl.BlockSpec((None, P * Tp * Hp, Wp, C), lambda n, t, h: (n, 0, 0, 0)),
            pl.BlockSpec((27, C, Co), lambda n, t, h: (0, 0, 0)),
            pl.BlockSpec((1, Co), lambda n, t, h: (0, 0)),
            pl.BlockSpec((1, Co), lambda n, t, h: (0, 0)),
        ],
        out_specs=pl.BlockSpec((None, None, HB * Wo, Co),
                               lambda n, t, h: (n, t, h, 0)),
        compiler_params=pltpu.CompilerParams(
            dimension_semantics=("parallel", "parallel", "parallel"),
            vmem_limit_bytes=vmem),
    )(xph, w_taps, scale.reshape(1, Co), bias.reshape(1, Co))

    out = out.reshape(N, To, Ho_p, Wo, Co)
    if Ho_p != Ho:
        out = out[:, :, :Ho]
    return out                                      # (N, To, Ho, Wo, Co) bf16


# ---------------------------------------------------------------------------
# Bottleneck3d forward (Pallas path)
# ---------------------------------------------------------------------------
def bottleneck3d_nthwc(x, params, stride):
    """Channels-last core: x (N,T,H,W,Ci) -> (N,To,Ho,Wo,Co) bf16.  Keep NTHWC bf16
    across a stack of blocks and convert layout once per network."""
    s = stride
    N, T, H, W, Ci = x.shape
    planes = params["w1"].shape[0]
    Co = params["w3"].shape[0]

    Cip = _round_up(Ci, LANE)
    Pp = _round_up(planes, LANE)
    Cop = _round_up(Co, LANE)

    x = _pad_axis(x, 4, Cip).astype(jnp.bfloat16)

    s1, b1 = fold_bn(*params["bn1"])
    s1, b1 = _pad_axis(s1, 0, Pp), _pad_axis(b1, 0, Pp)
    s2, b2 = fold_bn(*params["bn2"])
    s2, b2 = _pad_axis(s2, 0, Pp), _pad_axis(b2, 0, Pp)
    s3, b3 = fold_bn(*params["bn3"])
    s3, b3 = _pad_axis(s3, 0, Cop), _pad_axis(b3, 0, Cop)

    # Weights as (Cin, Cout) matmul matrices / (27, Cin, Cout) taps, bf16.
    W1 = jnp.transpose(params["w1"][:, :, 0, 0, 0])                 # (Ci, planes)
    W1 = _pad_axis(_pad_axis(W1, 0, Cip), 1, Pp).astype(jnp.bfloat16)
    W2 = jnp.transpose(params["w2"], (2, 3, 4, 1, 0)).reshape(27, planes, planes)
    W2 = _pad_axis(_pad_axis(W2, 1, Pp), 2, Pp).astype(jnp.bfloat16)
    W3 = jnp.transpose(params["w3"][:, :, 0, 0, 0])                 # (planes, Co)
    W3 = _pad_axis(_pad_axis(W3, 0, Pp), 1, Cop).astype(jnp.bfloat16)

    # conv1 (1x1x1) + bn1 + relu
    h = pointwise_conv_bn(x.reshape(-1, Cip), W1, s1, b1, relu=True)
    h = h.reshape(N, T, H, W, Pp)

    # conv2 (3x3x3, stride s on T/H/W, pad 1) + bn2 + relu
    h = conv3x3x3_bn_relu(h, W2, s2, b2, s)                         # (N,To,Ho,Wo,Pp)
    _, To, Ho, Wo, _ = h.shape

    if "wd" in params:
        sd, bd = fold_bn(*params["bnd"])
        sd, bd = _pad_axis(sd, 0, Cop), _pad_axis(bd, 0, Cop)
        Wd = jnp.transpose(params["wd"][:, :, 0, 0, 0])             # (Ci, Co)
        Wd = _pad_axis(_pad_axis(Wd, 0, Cip), 1, Cop).astype(jnp.bfloat16)
        # TODO(synk): fold this strided residual gather into the fused kernel's
        #             index_map / a manual DMA instead of materializing it.
        xs = x[:, ::s, ::s, ::s, :].reshape(-1, Cip)
        out = conv3_plus_downsample(h.reshape(-1, Pp), W3, s3, b3, xs, Wd, sd, bd)
    else:
        assert s == 1 and Ci == Co, "identity residual requires stride 1, Ci == Co"
        out = conv3_plus_residual(h.reshape(-1, Pp), W3, s3, b3, x.reshape(-1, Cip))

    return out.reshape(N, To, Ho, Wo, Cop)[..., :Co]


def bottleneck3d_pallas(x_ncdhw, params, stride):
    """NCDHW wrapper matching the PyTorch module layout (conversion done here once)."""
    x = jnp.transpose(x_ncdhw, (0, 2, 3, 4, 1))
    out = bottleneck3d_nthwc(x, params, stride)
    return jnp.transpose(out, (0, 4, 1, 2, 3)).astype(jnp.float32)


# ---------------------------------------------------------------------------
# Pure-JAX reference (mirrors the PyTorch NCDHW math, f32)
# ---------------------------------------------------------------------------
def _conv3d_ref(x, w, stride, padding):
    return jax.lax.conv_general_dilated(
        x, w, window_strides=stride,
        padding=[(p, p) for p in padding],
        dimension_numbers=("NCDHW", "OIDHW", "NCDHW"),
        precision=jax.lax.Precision.HIGHEST)


def _bn_ref(x, bn, eps=EPS):
    gamma, beta, mean, var = bn
    sc = gamma / jnp.sqrt(var + eps)
    bi = beta - mean * sc
    return x * sc[None, :, None, None, None] + bi[None, :, None, None, None]


def bottleneck3d_ref(x, params, stride):
    s = stride
    out = _conv3d_ref(x, params["w1"], (1, 1, 1), (0, 0, 0))
    out = jax.nn.relu(_bn_ref(out, params["bn1"]))
    out = _conv3d_ref(out, params["w2"], (s, s, s), (1, 1, 1))
    out = jax.nn.relu(_bn_ref(out, params["bn2"]))
    out = _conv3d_ref(out, params["w3"], (1, 1, 1), (0, 0, 0))
    out = _bn_ref(out, params["bn3"])
    if "wd" in params:
        res = _conv3d_ref(x, params["wd"], (s, s, s), (0, 0, 0))
        res = _bn_ref(res, params["bnd"])
    else:
        res = x
    return jax.nn.relu(out + res)


if __name__ == "__main__":
    key = jax.random.PRNGKey(0)

    def bn_params(k, c):
        k1, k2, k3, k4 = jax.random.split(k, 4)
        gamma = jax.random.uniform(k1, (c,), jnp.float32, 0.5, 1.5)
        beta = 0.1 * jax.random.normal(k2, (c,), jnp.float32)
        mean = 0.1 * jax.random.normal(k3, (c,), jnp.float32)
        var = jax.random.uniform(k4, (c,), jnp.float32, 0.5, 1.5)
        return (gamma, beta, mean, var)

    def check(name, out, ref):
        assert out.shape == ref.shape, (name, out.shape, ref.shape)
        err = float(jnp.max(jnp.abs(out - ref)))
        mag = float(jnp.max(jnp.abs(ref))) + 1e-6
        if err > 5e-2 * mag:   # bf16 MXU inputs/outputs vs f32 HIGHEST reference
            raise AssertionError(f"{name}: max abs err {err} (ref magnitude {mag})")

    pallas_fwd = jax.jit(bottleneck3d_pallas, static_argnums=(2,))
    ref_fwd = jax.jit(bottleneck3d_ref, static_argnums=(2,))

    ks = jax.random.split(key, 24)

    # Case 1: stride 2 with downsample branch.
    N, Ci, T, H, W = 2, 8, 4, 8, 8
    planes, stride = 4, 2
    Co = 4 * planes
    params = {
        "w1": 0.2 * jax.random.normal(ks[0], (planes, Ci, 1, 1, 1), jnp.float32),
        "w2": 0.2 * jax.random.normal(ks[1], (planes, planes, 3, 3, 3), jnp.float32),
        "w3": 0.2 * jax.random.normal(ks[2], (Co, planes, 1, 1, 1), jnp.float32),
        "wd": 0.2 * jax.random.normal(ks[3], (Co, Ci, 1, 1, 1), jnp.float32),
        "bn1": bn_params(ks[4], planes),
        "bn2": bn_params(ks[5], planes),
        "bn3": bn_params(ks[6], Co),
        "bnd": bn_params(ks[7], Co),
    }
    x = jax.random.normal(ks[8], (N, Ci, T, H, W), jnp.float32)
    out = jax.block_until_ready(pallas_fwd(x, params, stride))
    ref = jax.block_until_ready(ref_fwd(x, params, stride))
    check("stride2_downsample", out, ref)

    # Case 2: stride 1, identity residual (no downsample).
    Ci2 = Co
    params2 = {
        "w1": 0.2 * jax.random.normal(ks[9], (planes, Ci2, 1, 1, 1), jnp.float32),
        "w2": 0.2 * jax.random.normal(ks[10], (planes, planes, 3, 3, 3), jnp.float32),
        "w3": 0.2 * jax.random.normal(ks[11], (Co, planes, 1, 1, 1), jnp.float32),
        "bn1": bn_params(ks[12], planes),
        "bn2": bn_params(ks[13], planes),
        "bn3": bn_params(ks[14], Co),
    }
    x2 = jax.random.normal(ks[15], (N, Ci2, T, H, W), jnp.float32)
    out2 = jax.block_until_ready(pallas_fwd(x2, params2, 1))
    ref2 = jax.block_until_ready(ref_fwd(x2, params2, 1))
    check("stride1_identity", out2, ref2)

    # Case 3: stride 2, odd T and non-8-divisible Ho (exercises Ho-grid padding).
    N3, Ci3, T3, H3, W3 = 2, 8, 5, 12, 12
    params3 = {
        "w1": 0.2 * jax.random.normal(ks[16], (planes, Ci3, 1, 1, 1), jnp.float32),
        "w2": 0.2 * jax.random.normal(ks[17], (planes, planes, 3, 3, 3), jnp.float32),
        "w3": 0.2 * jax.random.normal(ks[18], (Co, planes, 1, 1, 1), jnp.float32),
        "wd": 0.2 * jax.random.normal(ks[19], (Co, Ci3, 1, 1, 1), jnp.float32),
        "bn1": bn_params(ks[20], planes),
        "bn2": bn_params(ks[21], planes),
        "bn3": bn_params(ks[22], Co),
        "bnd": bn_params(ks[23], Co),
    }
    x3 = jax.random.normal(ks[15], (N3, Ci3, T3, H3, W3), jnp.float32)
    out3 = jax.block_until_ready(pallas_fwd(x3, params3, 2))
    ref3 = jax.block_until_ready(ref_fwd(x3, params3, 2))
    check("stride2_padded_rows", out3, ref3)

    print("KERNEL_OK")
</pallas_src>

<mosaic_0001>
module attributes {stable_mosaic.version = 11 : i64} {
  func.func @_pw_bn_kernel(%arg0: i32, %arg1: memref<256x128xbf16, #tpu.memory_space<vmem>>, %arg2: memref<128x128xbf16, #tpu.memory_space<vmem>>, %arg3: memref<1x128xf32, #tpu.memory_space<vmem>>, %arg4: memref<1x128xf32, #tpu.memory_space<vmem>>, %arg5: memref<256x128xbf16, #tpu.memory_space<vmem>>) attributes {dimension_semantics = [#tpu.dimension_semantics<parallel>], iteration_bounds = array<i64: 2>, scalar_prefetch = 0 : i64, scratch_operands = 0 : i64, tpu.core_type = #tpu.core_type<tc>, window_params = [{transform_indices = @transform_0, window_bounds = array<i64: 256, 128>}, {pipeline_mode = #tpu.pipeline_mode<synchronous>, transform_indices = @transform_1, window_bounds = array<i64: 128, 128>}, {pipeline_mode = #tpu.pipeline_mode<synchronous>, transform_indices = @transform_2, window_bounds = array<i64: 1, 128>}, {pipeline_mode = #tpu.pipeline_mode<synchronous>, transform_indices = @transform_3, window_bounds = array<i64: 1, 128>}, {transform_indices = @transform_4, window_bounds = array<i64: 256, 128>}]} {
    %c0 = arith.constant 0 : index
    %c0_0 = arith.constant 0 : index
    %0 = vector.load %arg1[%c0, %c0_0] : memref<256x128xbf16, #tpu.memory_space<vmem>>, vector<256x128xbf16>
    %c0_1 = arith.constant 0 : index
    %c0_2 = arith.constant 0 : index
    %1 = vector.load %arg2[%c0_1, %c0_2] : memref<128x128xbf16, #tpu.memory_space<vmem>>, vector<128x128xbf16>
    %cst = arith.constant dense<0.000000e+00> : vector<256x128xf32>
    %2 = tpu.matmul %0, %1, %cst {dimension_numbers = #tpu.dot_dimension_numbers<[1], [0], [0], [1], [0, 0, 1, 1], [], []>} : vector<256x128xbf16>, vector<128x128xbf16>, vector<256x128xf32> -> vector<256x128xf32>
    %c0_3 = arith.constant 0 : index
    %c0_4 = arith.constant 0 : index
    %3 = vector.load %arg3[%c0_3, %c0_4] : memref<1x128xf32, #tpu.memory_space<vmem>>, vector<1x128xf32>
    %4 = vector.broadcast %3 : vector<1x128xf32> to vector<256x128xf32>
    %5 = arith.mulf %2, %4 : vector<256x128xf32>
    %c0_5 = arith.constant 0 : index
    %c0_6 = arith.constant 0 : index
    %6 = vector.load %arg4[%c0_5, %c0_6] : memref<1x128xf32, #tpu.memory_space<vmem>>, vector<1x128xf32>
    %7 = vector.broadcast %6 : vector<1x128xf32> to vector<256x128xf32>
    %8 = arith.addf %5, %7 : vector<256x128xf32>
    %cst_7 = arith.constant 0.000000e+00 : f32
    %9 = vector.broadcast %cst_7 : f32 to vector<256x128xf32>
    %10 = arith.maximumf %8, %9 : vector<256x128xf32>
    %11 = arith.truncf %10 : vector<256x128xf32> to vector<256x128xbf16>
    %c0_8 = arith.constant 0 : index
    %c0_9 = arith.constant 0 : index
    %12 = vector.load %arg5[%c0_8, %c0_9] : memref<256x128xbf16, #tpu.memory_space<vmem>>, vector<256x128xbf16>
    tpu.vector_store %arg5[%c0_8, %c0_9], %11 {strides = array<i32>} : memref<256x128xbf16, #tpu.memory_space<vmem>>, vector<256x128xbf16>,
    return
  }
  func.func @transform_0(%arg0: i32) -> (i32, i32) {
    %c0_i32 = arith.constant 0 : i32
    %c0_i32_0 = arith.constant 0 : i32
    return %arg0, %c0_i32 : i32, i32
  }
  func.func @transform_1(%arg0: i32) -> (i32, i32) {
    %c0_i32 = arith.constant 0 : i32
    %c0_i32_0 = arith.constant 0 : i32
    %c0_i32_1 = arith.constant 0 : i32
    return %c0_i32, %c0_i32_0 : i32, i32
  }
  func.func @transform_2(%arg0: i32) -> (i32, i32) {
    %c0_i32 = arith.constant 0 : i32
    %c0_i32_0 = arith.constant 0 : i32
    %c0_i32_1 = arith.constant 0 : i32
    return %c0_i32, %c0_i32_0 : i32, i32
  }
  func.func @transform_3(%arg0: i32) -> (i32, i32) {
    %c0_i32 = arith.constant 0 : i32
    %c0_i32_0 = arith.constant 0 : i32
    %c0_i32_1 = arith.constant 0 : i32
    return %c0_i32, %c0_i32_0 : i32, i32
  }
  func.func @transform_4(%arg0: i32) -> (i32, i32) {
    %c0_i32 = arith.constant 0 : i32
    %c0_i32_0 = arith.constant 0 : i32
    return %arg0, %c0_i32 : i32, i32
  }
}

module attributes {stable_mosaic.version = 11 : i64} {
  func.func @_conv2_halo_kernel(%arg0: i32, %arg1: i32, %arg2: i32, %arg3: memref<1x120x5x128xbf16, #tpu.memory_space<vmem>>, %arg4: memref<27x128x128xbf16, #tpu.memory_space<vmem>>, %arg5: memref<1x128xf32, #tpu.memory_space<vmem>>, %arg6: memref<1x128xf32, #tpu.memory_space<vmem>>, %arg7: memref<1x1x16x128xbf16, #tpu.memory_space<vmem>>) attributes {dimension_semantics = [#tpu.dimension_semantics<parallel>, #tpu.dimension_semantics<parallel>, #tpu.dimension_semantics<parallel>], iteration_bounds = array<i64: 2, 2, 1>, scalar_prefetch = 0 : i64, scratch_operands = 0 : i64, tpu.core_type = #tpu.core_type<tc>, window_params = [{transform_indices = @transform_0, window_bounds = array<i64: 1, 120, 5, 128>}, {pipeline_mode = #tpu.pipeline_mode<synchronous>, transform_indices = @transform_1, window_bounds = array<i64: 27, 128, 128>}, {pipeline_mode = #tpu.pipeline_mode<synchronous>, transform_indices = @transform_2, window_bounds = array<i64: 1, 128>}, {pipeline_mode = #tpu.pipeline_mode<synchronous>, transform_indices = @transform_3, window_bounds = array<i64: 1, 128>}, {transform_indices = @transform_4, window_bounds = array<i64: 1, 1, 16, 128>}]} {
    %c4_i32 = arith.constant 4 : i32
    %0 = arith.muli %arg2, %c4_i32 : i32
    %cst = arith.constant 0.000000e+00 : f32
    %1 = vector.broadcast %cst : f32 to vector<16x128xf32>
    %c0_i32 = arith.constant 0 : i32
    %2 = arith.addi %c0_i32, %arg1 : i32
    %c0_i32_0 = arith.constant 0 : i32
    %3 = arith.addi %2, %c0_i32_0 : i32
    %c5_i32 = arith.constant 5 : i32
    %4 = arith.muli %3, %c5_i32 : i32
    %5 = arith.addi %4, %0 : i32
    %c0_i32_1 = arith.constant 0 : i32
    %6 = arith.addi %5, %c0_i32_1 : i32
    %c0 = arith.constant 0 : index
    %7 = arith.index_cast %6 : i32 to index
    %c0_2 = arith.constant 0 : index
    %c0_3 = arith.constant 0 : index
    %8 = vector.load %arg3[%c0, %7, %c0_2, %c0_3] : memref<1x120x5x128xbf16, #tpu.memory_space<vmem>>, vector<1x4x4x128xbf16>
    %9 = vector.shape_cast %8 : vector<1x4x4x128xbf16> to vector<4x4x128xbf16>
    %10 = vector.shape_cast %9 : vector<4x4x128xbf16> to vector<16x128xbf16>
    %c0_4 = arith.constant 0 : index
    %c0_5 = arith.constant 0 : index
    %c0_6 = arith.constant 0 : index
    %11 = vector.load %arg4[%c0_4, %c0_5, %c0_6] : memref<27x128x128xbf16, #tpu.memory_space<vmem>>, vector<1x128x128xbf16>
    %12 = vector.shape_cast %11 : vector<1x128x128xbf16> to vector<128x128xbf16>
    %cst_7 = arith.constant dense<0.000000e+00> : vector<16x128xf32>
    %13 = tpu.matmul %10, %12, %cst_7 {dimension_numbers = #tpu.dot_dimension_numbers<[1], [0], [0], [1], [0, 0, 1, 1], [], []>} : vector<16x128xbf16>, vector<128x128xbf16>, vector<16x128xf32> -> vector<16x128xf32>
    %14 = arith.addf %1, %13 : vector<16x128xf32>
    %c3_i32 = arith.constant 3 : i32
    %15 = arith.addi %c3_i32, %arg1 : i32
    %c0_i32_8 = arith.constant 0 : i32
    %16 = arith.addi %15, %c0_i32_8 : i32
    %c5_i32_9 = arith.constant 5 : i32
    %17 = arith.muli %16, %c5_i32_9 : i32
    %18 = arith.addi %17, %0 : i32
    %c0_i32_10 = arith.constant 0 : i32
    %19 = arith.addi %18, %c0_i32_10 : i32
    %c0_11 = arith.constant 0 : index
    %20 = arith.index_cast %19 : i32 to index
    %c0_12 = arith.constant 0 : index
    %c0_13 = arith.constant 0 : index
    %21 = vector.load %arg3[%c0_11, %20, %c0_12, %c0_13] : memref<1x120x5x128xbf16, #tpu.memory_space<vmem>>, vector<1x4x4x128xbf16>
    %22 = vector.shape_cast %21 : vector<1x4x4x128xbf16> to vector<4x4x128xbf16>
    %23 = vector.shape_cast %22 : vector<4x4x128xbf16> to vector<16x128xbf16>
    %c1 = arith.constant 1 : index
    %c0_14 = arith.constant 0 : index
    %c0_15 = arith.constant 0 : index
    %24 = vector.load %arg4[%c1, %c0_14, %c0_15] : memref<27x128x128xbf16, #tpu.memory_space<vmem>>, vector<1x128x128xbf16>
    %25 = vector.shape_cast %24 : vector<1x128x128xbf16> to vector<128x128xbf16>
    %cst_16 = arith.constant dense<0.000000e+00> : vector<16x128xf32>
    %26 = tpu.matmul %23, %25, %cst_16 {dimension_numbers = #tpu.dot_dimension_numbers<[1], [0], [0], [1], [0, 0, 1, 1], [], []>} : vector<16x128xbf16>, vector<128x128xbf16>, vector<16x128xf32> -> vector<16x128xf32>
    %27 = arith.addf %14, %26 : vector<16x128xf32>
    %c0_i32_17 = arith.constant 0 : i32
    %28 = arith.addi %c0_i32_17, %arg1 : i32
    %c0_i32_18 = arith.constant 0 : i32
    %29 = arith.addi %28, %c0_i32_18 : i32
    %c5_i32_19 = arith.constant 5 : i32
    %30 = arith.muli %29, %c5_i32_19 : i32
    %31 = arith.addi %30, %0 : i32
    %c0_i32_20 = arith.constant 0 : i32
    %32 = arith.addi %31, %c0_i32_20 : i32
    %c0_21 = arith.constant 0 : index
    %33 = arith.index_cast %32 : i32 to index
    %c1_22 = arith.constant 1 : index
    %c0_23 = arith.constant 0 : index
    %34 = vector.load %arg3[%c0_21, %33, %c1_22, %c0_23] : memref<1x120x5x128xbf16, #tpu.memory_space<vmem>>, vector<1x4x4x128xbf16>
    %35 = vector.shape_cast %34 : vector<1x4x4x128xbf16> to vector<4x4x128xbf16>
    %36 = vector.shape_cast %35 : vector<4x4x128xbf16> to vector<16x128xbf16>
    %c2 = arith.constant 2 : index
    %c0_24 = arith.constant 0 : index
    %c0_25 = arith.constant 0 : index
    %37 = vector.load %arg4[%c2, %c0_24, %c0_25] : memref<27x128x128xbf16, #tpu.memory_space<vmem>>, vector<1x128x128xbf16>
    %38 = vector.shape_cast %37 : vector<1x128x128xbf16> to vector<128x128xbf16>
    %cst_26 = arith.constant dense<0.000000e+00> : vector<16x128xf32>
    %39 = tpu.matmul %36, %38, %cst_26 {dimension_numbers = #tpu.dot_dimension_numbers<[1], [0], [0], [1], [0, 0, 1, 1], [], []>} : vector<16x128xbf16>, vector<128x128xbf16>, vector<16x128xf32> -> vector<16x128xf32>
    %40 = arith.addf %27, %39 : vector<16x128xf32>
    %c6_i32 = arith.constant 6 : i32
    %41 = arith.addi %c6_i32, %arg1 : i32
    %c0_i32_27 = arith.constant 0 : i32
    %42 = arith.addi %41, %c0_i32_27 : i32
    %c5_i32_28 = arith.constant 5 : i32
    %43 = arith.muli %42, %c5_i32_28 : i32
    %44 = arith.addi %43, %0 : i32
    %c0_i32_29 = arith.constant 0 : i32
    %45 = arith.addi %44, %c0_i32_29 : i32
    %c0_30 = arith.constant 0 : index
    %46 = arith.index_cast %45 : i32 to index
    %c0_31 = arith.constant 0 : index
    %c0_32 = arith.constant 0 : index
    %47 = vector.load %arg3[%c0_30, %46, %c0_31, %c0_32] : memref<1x120x5x128xbf16, #tpu.memory_space<vmem>>, vector<1x4x4x128xbf16>
    %48 = vector.shape_cast %47 : vector<1x4x4x128xbf16> to vector<4x4x128xbf16>
    %49 = vector.shape_cast %48 : vector<4x4x128xbf16> to vector<16x128xbf16>
    %c3 = arith.constant 3 : index
    %c0_33 = arith.constant 0 : index
    %c0_34 = arith.constant 0 : index
    %50 = vector.load %arg4[%c3, %c0_33, %c0_34] : memref<27x128x128xbf16, #tpu.memory_space<vmem>>, vector<1x128x128xbf16>
    %51 = vector.shape_cast %50 : vector<1x128x128xbf16> to vector<128x128xbf16>
    %cst_35 = arith.constant dense<0.000000e+00> : vector<16x128xf32>
    %52 = tpu.matmul %49, %51, %cst_35 {dimension_numbers = #tpu.dot_dimension_numbers<[1], [0], [0], [1], [0, 0, 1, 1], [], []>} : vector<16x128xbf16>, vector<128x128xbf16>, vector<16x128xf32> -> vector<16x128xf32>
    %53 = arith.addf %40, %52 : vector<16x128xf32>
    %c9_i32 = arith.constant 9 : i32
    %54 = arith.addi %c9_i32, %arg1 : i32
    %c0_i32_36 = arith.constant 0 : i32
    %55 = arith.addi %54, %c0_i32_36 : i32
    %c5_i32_37 = arith.constant 5 : i32
    %56 = arith.muli %55, %c5_i32_37 : i32
    %57 = arith.addi %56, %0 : i32
    %c0_i32_38 = arith.constant 0 : i32
    %58 = arith.addi %57, %c0_i32_38 : i32
    %c0_39 = arith.constant 0 : index
    %59 = arith.index_cast %58 : i32 to index
    %c0_40 = arith.constant 0 : index
    %c0_41 = arith.constant 0 : index
    %60 = vector.load %arg3[%c0_39, %59, %c0_40, %c0_41] : memref<1x120x5x128xbf16, #tpu.memory_space<vmem>>, vector<1x4x4x128xbf16>
    %61 = vector.shape_cast %60 : vector<1x4x4x128xbf16> to vector<4x4x128xbf16>
    %62 = vector.shape_cast %61 : vector<4x4x128xbf16> to vector<16x128xbf16>
    %c4 = arith.constant 4 : index
    %c0_42 = arith.constant 0 : index
    %c0_43 = arith.constant 0 : index
    %63 = vector.load %arg4[%c4, %c0_42, %c0_43] : memref<27x128x128xbf16, #tpu.memory_space<vmem>>, vector<1x128x128xbf16>
    %64 = vector.shape_cast %63 : vector<1x128x128xbf16> to vector<128x128xbf16>
    %cst_44 = arith.constant dense<0.000000e+00> : vector<16x128xf32>
    %65 = tpu.matmul %62, %64, %cst_44 {dimension_numbers = #tpu.dot_dimension_numbers<[1], [0], [0], [1], [0, 0, 1, 1], [], []>} : vector<16x128xbf16>, vector<128x128xbf16>, vector<16x128xf32> -> vector<16x128xf32>
    %66 = arith.addf %53, %65 : vector<16x128xf32>
    %c6_i32_45 = arith.constant 6 : i32
    %67 = arith.addi %c6_i32_45, %arg1 : i32
    %c0_i32_46 = arith.constant 0 : i32
    %68 = arith.addi %67, %c0_i32_46 : i32
    %c5_i32_47 = arith.constant 5 : i32
    %69 = arith.muli %68, %c5_i32_47 : i32
    %70 = arith.addi %69, %0 : i32
    %c0_i32_48 = arith.constant 0 : i32
    %71 = arith.addi %70, %c0_i32_48 : i32
    %c0_49 = arith.constant 0 : index
    %72 = arith.index_cast %71 : i32 to index
    %c1_50 = arith.constant 1 : index
    %c0_51 = arith.constant 0 : index
    %73 = vector.load %arg3[%c0_49, %72, %c1_50, %c0_51] : memref<1x120x5x128xbf16, #tpu.memory_space<vmem>>, vector<1x4x4x128xbf16>
    %74 = vector.shape_cast %73 : vector<1x4x4x128xbf16> to vector<4x4x128xbf16>
    %75 = vector.shape_cast %74 : vector<4x4x128xbf16> to vector<16x128xbf16>
    %c5 = arith.constant 5 : index
    %c0_52 = arith.constant 0 : index
    %c0_53 = arith.constant 0 : index
    %76 = vector.load %arg4[%c5, %c0_52, %c0_53] : memref<27x128x128xbf16, #tpu.memory_space<vmem>>, vector<1x128x128xbf16>
    %77 = vector.shape_cast %76 : vector<1x128x128xbf16> to vector<128x128xbf16>
    %cst_54 = arith.constant dense<0.000000e+00> : vector<16x128xf32>
    %78 = tpu.matmul %75, %77, %cst_54 {dimension_numbers = #tpu.dot_dimension_numbers<[1], [0], [0], [1], [0, 0, 1, 1], [], []>} : vector<16x128xbf16>, vector<128x128xbf16>, vector<16x128xf32> -> vector<16x128xf32>
    %79 = arith.addf %66, %78 : vector<16x128xf32>
    %c0_i32_55 = arith.constant 0 : i32
    %80 = arith.addi %c0_i32_55, %arg1 : i32
    %c0_i32_56 = arith.constant 0 : i32
    %81 = arith.addi %80, %c0_i32_56 : i32
    %c5_i32_57 = arith.constant 5 : i32
    %82 = arith.muli %81, %c5_i32_57 : i32
    %83 = arith.addi %82, %0 : i32
    %c1_i32 = arith.constant 1 : i32
    %84 = arith.addi %83, %c1_i32 : i32
    %c0_58 = arith.constant 0 : index
    %85 = arith.index_cast %84 : i32 to index
    %c0_59 = arith.constant 0 : index
    %c0_60 = arith.constant 0 : index
    %86 = vector.load %arg3[%c0_58, %85, %c0_59, %c0_60] : memref<1x120x5x128xbf16, #tpu.memory_space<vmem>>, vector<1x4x4x128xbf16>
    %87 = vector.shape_cast %86 : vector<1x4x4x128xbf16> to vector<4x4x128xbf16>
    %88 = vector.shape_cast %87 : vector<4x4x128xbf16> to vector<16x128xbf16>
    %c6 = arith.constant 6 : index
    %c0_61 = arith.constant 0 : index
    %c0_62 = arith.constant 0 : index
    %89 = vector.load %arg4[%c6, %c0_61, %c0_62] : memref<27x128x128xbf16, #tpu.memory_space<vmem>>, vector<1x128x128xbf16>
    %90 = vector.shape_cast %89 : vector<1x128x128xbf16> to vector<128x128xbf16>
    %cst_63 = arith.constant dense<0.000000e+00> : vector<16x128xf32>
    %91 = tpu.matmul %88, %90, %cst_63 {dimension_numbers = #tpu.dot_dimension_numbers<[1], [0], [0], [1], [0, 0, 1, 1], [], []>} : vector<16x128xbf16>, vector<128x128xbf16>, vector<16x128xf32> -> vector<16x128xf32>
    %92 = arith.addf %79, %91 : vector<16x128xf32>
    %c3_i32_64 = arith.constant 3 : i32
    %93 = arith.addi %c3_i32_64, %arg1 : i32
    %c0_i32_65 = arith.constant 0 : i32
    %94 = arith.addi %93, %c0_i32_65 : i32
    %c5_i32_66 = arith.constant 5 : i32
    %95 = arith.muli %94, %c5_i32_66 : i32
    %96 = arith.addi %95, %0 : i32
    %c1_i32_67 = arith.constant 1 : i32
    %97 = arith.addi %96, %c1_i32_67 : i32
    %c0_68 = arith.constant 0 : index
    %98 = arith.index_cast %97 : i32 to index
    %c0_69 = arith.constant 0 : index
    %c0_70 = arith.constant 0 : index
    %99 = vector.load %arg3[%c0_68, %98, %c0_69, %c0_70] : memref<1x120x5x128xbf16, #tpu.memory_space<vmem>>, vector<1x4x4x128xbf16>
    %100 = vector.shape_cast %99 : vector<1x4x4x128xbf16> to vector<4x4x128xbf16>
    %101 = vector.shape_cast %100 : vector<4x4x128xbf16> to vector<16x128xbf16>
    %c7 = arith.constant 7 : index
    %c0_71 = arith.constant 0 : index
    %c0_72 = arith.constant 0 : index
    %102 = vector.load %arg4[%c7, %c0_71, %c0_72] : memref<27x128x128xbf16, #tpu.memory_space<vmem>>, vector<1x128x128xbf16>
    %103 = vector.shape_cast %102 : vector<1x128x128xbf16> to vector<128x128xbf16>
    %cst_73 = arith.constant dense<0.000000e+00> : vector<16x128xf32>
    %104 = tpu.matmul %101, %103, %cst_73 {dimension_numbers = #tpu.dot_dimension_numbers<[1], [0], [0], [1], [0, 0, 1, 1], [], []>} : vector<16x128xbf16>, vector<128x128xbf16>, vector<16x128xf32> -> vector<16x128xf32>
    %105 = arith.addf %92, %104 : vector<16x128xf32>
    %c0_i32_74 = arith.constant 0 : i32
    %106 = arith.addi %c0_i32_74, %arg1 : i32
    %c0_i32_75 = arith.constant 0 : i32
    %107 = arith.addi %106, %c0_i32_75 : i32
    %c5_i32_76 = arith.constant 5 : i32
    %108 = arith.muli %107, %c5_i32_76 : i32
    %109 = arith.addi %108, %0 : i32
    %c1_i32_77 = arith.constant 1 : i32
    %110 = arith.addi %109, %c1_i32_77 : i32
    %c0_78 = arith.constant 0 : index
    %111 = arith.index_cast %110 : i32 to index
    %c1_79 = arith.constant 1 : index
    %c0_80 = arith.constant 0 : index
    %112 = vector.load %arg3[%c0_78, %111, %c1_79, %c0_80] : memref<1x120x5x128xbf16, #tpu.memory_space<vmem>>, vector<1x4x4x128xbf16>
    %113 = vector.shape_cast %112 : vector<1x4x4x128xbf16> to vector<4x4x128xbf16>
    %114 = vector.shape_cast %113 : vector<4x4x128xbf16> to vector<16x128xbf16>
    %c8 = arith.constant 8 : index
    %c0_81 = arith.constant 0 : index
    %c0_82 = arith.constant 0 : index
    %115 = vector.load %arg4[%c8, %c0_81, %c0_82] : memref<27x128x128xbf16, #tpu.memory_space<vmem>>, vector<1x128x128xbf16>
    %116 = vector.shape_cast %115 : vector<1x128x128xbf16> to vector<128x128xbf16>
    %cst_83 = arith.constant dense<0.000000e+00> : vector<16x128xf32>
    %117 = tpu.matmul %114, %116, %cst_83 {dimension_numbers = #tpu.dot_dimension_numbers<[1], [0], [0], [1], [0, 0, 1, 1], [], []>} : vector<16x128xbf16>, vector<128x128xbf16>, vector<16x128xf32> -> vector<16x128xf32>
    %118 = arith.addf %105, %117 : vector<16x128xf32>
    %c12_i32 = arith.constant 12 : i32
    %119 = arith.addi %c12_i32, %arg1 : i32
    %c0_i32_84 = arith.constant 0 : i32
    %120 = arith.addi %119, %c0_i32_84 : i32
    %c5_i32_85 = arith.constant 5 : i32
    %121 = arith.muli %120, %c5_i32_85 : i32
    %122 = arith.addi %121, %0 : i32
    %c0_i32_86 = arith.constant 0 : i32
    %123 = arith.addi %122, %c0_i32_86 : i32
    %c0_87 = arith.constant 0 : index
    %124 = arith.index_cast %123 : i32 to index
    %c0_88 = arith.constant 0 : index
    %c0_89 = arith.constant 0 : index
    %125 = vector.load %arg3[%c0_87, %124, %c0_88, %c0_89] : memref<1x120x5x128xbf16, #tpu.memory_space<vmem>>, vector<1x4x4x128xbf16>
    %126 = vector.shape_cast %125 : vector<1x4x4x128xbf16> to vector<4x4x128xbf16>
    %127 = vector.shape_cast %126 : vector<4x4x128xbf16> to vector<16x128xbf16>
    %c9 = arith.constant 9 : index
    %c0_90 = arith.constant 0 : index
    %c0_91 = arith.constant 0 : index
    %128 = vector.load %arg4[%c9, %c0_90, %c0_91] : memref<27x128x128xbf16, #tpu.memory_space<vmem>>, vector<1x128x128xbf16>
    %129 = vector.shape_cast %128 : vector<1x128x128xbf16> to vector<128x128xbf16>
    %cst_92 = arith.constant dense<0.000000e+00> : vector<16x128xf32>
    %130 = tpu.matmul %127, %129, %cst_92 {dimension_numbers = #tpu.dot_dimension_numbers<[1], [0], [0], [1], [0, 0, 1, 1], [], []>} : vector<16x128xbf16>, vector<128x128xbf16>, vector<16x128xf32> -> vector<16x128xf32>
    %131 = arith.addf %118, %130 : vector<16x128xf32>
    %c15_i32 = arith.constant 15 : i32
    %132 = arith.addi %c15_i32, %arg1 : i32
    %c0_i32_93 = arith.constant 0 : i32
    %133 = arith.addi %132, %c0_i32_93 : i32
    %c5_i32_94 = arith.constant 5 : i32
    %134 = arith.muli %133, %c5_i32_94 : i32
    %135 = arith.addi %134, %0 : i32
    %c0_i32_95 = arith.constant 0 : i32
    %136 = arith.addi %135, %c0_i32_95 : i32
    %c0_96 = arith.constant 0 : index
    %137 = arith.index_cast %136 : i32 to index
    %c0_97 = arith.constant 0 : index
    %c0_98 = arith.constant 0 : index
    %138 = vector.load %arg3[%c0_96, %137, %c0_97, %c0_98] : memref<1x120x5x128xbf16, #tpu.memory_space<vmem>>, vector<1x4x4x128xbf16>
    %139 = vector.shape_cast %138 : vector<1x4x4x128xbf16> to vector<4x4x128xbf16>
    %140 = vector.shape_cast %139 : vector<4x4x128xbf16> to vector<16x128xbf16>
    %c10 = arith.constant 10 : index
    %c0_99 = arith.constant 0 : index
    %c0_100 = arith.constant 0 : index
    %141 = vector.load %arg4[%c10, %c0_99, %c0_100] : memref<27x128x128xbf16, #tpu.memory_space<vmem>>, vector<1x128x128xbf16>
    %142 = vector.shape_cast %141 : vector<1x128x128xbf16> to vector<128x128xbf16>
    %cst_101 = arith.constant dense<0.000000e+00> : vector<16x128xf32>
    %143 = tpu.matmul %140, %142, %cst_101 {dimension_numbers = #tpu.dot_dimension_numbers<[1], [0], [0], [1], [0, 0, 1, 1], [], []>} : vector<16x128xbf16>, vector<128x128xbf16>, vector<16x128xf32> -> vector<16x128xf32>
    %144 = arith.addf %131, %143 : vector<16x128xf32>
    %c12_i32_102 = arith.constant 12 : i32
    %145 = arith.addi %c12_i32_102, %arg1 : i32
    %c0_i32_103 = arith.constant 0 : i32
    %146 = arith.addi %145, %c0_i32_103 : i32
    %c5_i32_104 = arith.constant 5 : i32
    %147 = arith.muli %146, %c5_i32_104 : i32
    %148 = arith.addi %147, %0 : i32
    %c0_i32_105 = arith.constant 0 : i32
    %149 = arith.addi %148, %c0_i32_105 : i32
    %c0_106 = arith.constant 0 : index
    %150 = arith.index_cast %149 : i32 to index
    %c1_107 = arith.constant 1 : index
    %c0_108 = arith.constant 0 : index
    %151 = vector.load %arg3[%c0_106, %150, %c1_107, %c0_108] : memref<1x120x5x128xbf16, #tpu.memory_space<vmem>>, vector<1x4x4x128xbf16>
    %152 = vector.shape_cast %151 : vector<1x4x4x128xbf16> to vector<4x4x128xbf16>
    %153 = vector.shape_cast %152 : vector<4x4x128xbf16> to vector<16x128xbf16>
    %c11 = arith.constant 11 : index
    %c0_109 = arith.constant 0 : index
    %c0_110 = arith.constant 0 : index
    %154 = vector.load %arg4[%c11, %c0_109, %c0_110] : memref<27x128x128xbf16, #tpu.memory_space<vmem>>, vector<1x128x128xbf16>
    %155 = vector.shape_cast %154 : vector<1x128x128xbf16> to vector<128x128xbf16>
    %cst_111 = arith.constant dense<0.000000e+00> : vector<16x128xf32>
    %156 = tpu.matmul %153, %155, %cst_111 {dimension_numbers = #tpu.dot_dimension_numbers<[1], [0], [0], [1], [0, 0, 1, 1], [], []>} : vector<16x128xbf16>, vector<128x128xbf16>, vector<16x128xf32> -> vector<16x128xf32>
    %157 = arith.addf %144, %156 : vector<16x128xf32>
    %c18_i32 = arith.constant 18 : i32
    %158 = arith.addi %c18_i32, %arg1 : i32
    %c0_i32_112 = arith.constant 0 : i32
    %159 = arith.addi %158, %c0_i32_112 : i32
    %c5_i32_113 = arith.constant 5 : i32
    %160 = arith.muli %159, %c5_i32_113 : i32
    %161 = arith.addi %160, %0 : i32
    %c0_i32_114 = arith.constant 0 : i32
    %162 = arith.addi %161, %c0_i32_114 : i32
    %c0_115 = arith.constant 0 : index
    %163 = arith.index_cast %162 : i32 to index
    %c0_116 = arith.constant 0 : index
    %c0_117 = arith.constant 0 : index
    %164 = vector.load %arg3[%c0_115, %163, %c0_116, %c0_117] : memref<1x120x5x128xbf16, #tpu.memory_space<vmem>>, vector<1x4x4x128xbf16>
    %165 = vector.shape_cast %164 : vector<1x4x4x128xbf16> to vector<4x4x128xbf16>
    %166 = vector.shape_cast %165 : vector<4x4x128xbf16> to vector<16x128xbf16>
    %c12 = arith.constant 12 : index
    %c0_118 = arith.constant 0 : index
    %c0_119 = arith.constant 0 : index
    %167 = vector.load %arg4[%c12, %c0_118, %c0_119] : memref<27x128x128xbf16, #tpu.memory_space<vmem>>, vector<1x128x128xbf16>
    %168 = vector.shape_cast %167 : vector<1x128x128xbf16> to vector<128x128xbf16>
    %cst_120 = arith.constant dense<0.000000e+00> : vector<16x128xf32>
    %169 = tpu.matmul %166, %168, %cst_120 {dimension_numbers = #tpu.dot_dimension_numbers<[1], [0], [0], [1], [0, 0, 1, 1], [], []>} : vector<16x128xbf16>, vector<128x128xbf16>, vector<16x128xf32> -> vector<16x128xf32>
    %170 = arith.addf %157, %169 : vector<16x128xf32>
    %c21_i32 = arith.constant 21 : i32
    %171 = arith.addi %c21_i32, %arg1 : i32
    %c0_i32_121 = arith.constant 0 : i32
    %172 = arith.addi %171, %c0_i32_121 : i32
    %c5_i32_122 = arith.constant 5 : i32
    %173 = arith.muli %172, %c5_i32_122 : i32
    %174 = arith.addi %173, %0 : i32
    %c0_i32_123 = arith.constant 0 : i32
    %175 = arith.addi %174, %c0_i32_123 : i32
    %c0_124 = arith.constant 0 : index
    %176 = arith.index_cast %175 : i32 to index
    %c0_125 = arith.constant 0 : index
    %c0_126 = arith.constant 0 : index
    %177 = vector.load %arg3[%c0_124, %176, %c0_125, %c0_126] : memref<1x120x5x128xbf16, #tpu.memory_space<vmem>>, vector<1x4x4x128xbf16>
    %178 = vector.shape_cast %177 : vector<1x4x4x128xbf16> to vector<4x4x128xbf16>
    %179 = vector.shape_cast %178 : vector<4x4x128xbf16> to vector<16x128xbf16>
    %c13 = arith.constant 13 : index
    %c0_127 = arith.constant 0 : index
    %c0_128 = arith.constant 0 : index
    %180 = vector.load %arg4[%c13, %c0_127, %c0_128] : memref<27x128x128xbf16, #tpu.memory_space<vmem>>, vector<1x128x128xbf16>
    %181 = vector.shape_cast %180 : vector<1x128x128xbf16> to vector<128x128xbf16>
    %cst_129 = arith.constant dense<0.000000e+00> : vector<16x128xf32>
    %182 = tpu.matmul %179, %181, %cst_129 {dimension_numbers = #tpu.dot_dimension_numbers<[1], [0], [0], [1], [0, 0, 1, 1], [], []>} : vector<16x128xbf16>, vector<128x128xbf16>, vector<16x128xf32> -> vector<16x128xf32>
    %183 = arith.addf %170, %182 : vector<16x128xf32>
    %c18_i32_130 = arith.constant 18 : i32
    %184 = arith.addi %c18_i32_130, %arg1 : i32
    %c0_i32_131 = arith.constant 0 : i32
    %185 = arith.addi %184, %c0_i32_131 : i32
    %c5_i32_132 = arith.constant 5 : i32
    %186 = arith.muli %185, %c5_i32_132 : i32
    %187 = arith.addi %186, %0 : i32
    %c0_i32_133 = arith.constant 0 : i32
    %188 = arith.addi %187, %c0_i32_133 : i32
    %c0_134 = arith.constant 0 : index
    %189 = arith.index_cast %188 : i32 to index
    %c1_135 = arith.constant 1 : index
    %c0_136 = arith.constant 0 : index
    %190 = vector.load %arg3[%c0_134, %189, %c1_135, %c0_136] : memref<1x120x5x128xbf16, #tpu.memory_space<vmem>>, vector<1x4x4x128xbf16>
    %191 = vector.shape_cast %190 : vector<1x4x4x128xbf16> to vector<4x4x128xbf16>
    %192 = vector.shape_cast %191 : vector<4x4x128xbf16> to vector<16x128xbf16>
    %c14 = arith.constant 14 : index
    %c0_137 = arith.constant 0 : index
    %c0_138 = arith.constant 0 : index
    %193 = vector.load %arg4[%c14, %c0_137, %c0_138] : memref<27x128x128xbf16, #tpu.memory_space<vmem>>, vector<1x128x128xbf16>
    %194 = vector.shape_cast %193 : vector<1x128x128xbf16> to vector<128x128xbf16>
    %cst_139 = arith.constant dense<0.000000e+00> : vector<16x128xf32>
    %195 = tpu.matmul %192, %194, %cst_139 {dimension_numbers = #tpu.dot_dimension_numbers<[1], [0], [0], [1], [0, 0, 1, 1], [], []>} : vector<16x128xbf16>, vector<128x128xbf16>, vector<16x128xf32> -> vector<16x128xf32>
    %196 = arith.addf %183, %195 : vector<16x128xf32>
    %c12_i32_140 = arith.constant 12 : i32
    %197 = arith.addi %c12_i32_140, %arg1 : i32
    %c0_i32_141 = arith.constant 0 : i32
    %198 = arith.addi %197, %c0_i32_141 : i32
    %c5_i32_142 = arith.constant 5 : i32
    %199 = arith.muli %198, %c5_i32_142 : i32
    %200 = arith.addi %199, %0 : i32
    %c1_i32_143 = arith.constant 1 : i32
    %201 = arith.addi %200, %c1_i32_143 : i32
    %c0_144 = arith.constant 0 : index
    %202 = arith.index_cast %201 : i32 to index
    %c0_145 = arith.constant 0 : index
    %c0_146 = arith.constant 0 : index
    %203 = vector.load %arg3[%c0_144, %202, %c0_145, %c0_146] : memref<1x120x5x128xbf16, #tpu.memory_space<vmem>>, vector<1x4x4x128xbf16>
    %204 = vector.shape_cast %203 : vector<1x4x4x128xbf16> to vector<4x4x128xbf16>
    %205 = vector.shape_cast %204 : vector<4x4x128xbf16> to vector<16x128xbf16>
    %c15 = arith.constant 15 : index
    %c0_147 = arith.constant 0 : index
    %c0_148 = arith.constant 0 : index
    %206 = vector.load %arg4[%c15, %c0_147, %c0_148] : memref<27x128x128xbf16, #tpu.memory_space<vmem>>, vector<1x128x128xbf16>
    %207 = vector.shape_cast %206 : vector<1x128x128xbf16> to vector<128x128xbf16>
    %cst_149 = arith.constant dense<0.000000e+00> : vector<16x128xf32>
    %208 = tpu.matmul %205, %207, %cst_149 {dimension_numbers = #tpu.dot_dimension_numbers<[1], [0], [0], [1], [0, 0, 1, 1], [], []>} : vector<16x128xbf16>, vector<128x128xbf16>, vector<16x128xf32> -> vector<16x128xf32>
    %209 = arith.addf %196, %208 : vector<16x128xf32>
    %c15_i32_150 = arith.constant 15 : i32
    %210 = arith.addi %c15_i32_150, %arg1 : i32
    %c0_i32_151 = arith.constant 0 : i32
    %211 = arith.addi %210, %c0_i32_151 : i32
    %c5_i32_152 = arith.constant 5 : i32
    %212 = arith.muli %211, %c5_i32_152 : i32
    %213 = arith.addi %212, %0 : i32
    %c1_i32_153 = arith.constant 1 : i32
    %214 = arith.addi %213, %c1_i32_153 : i32
    %c0_154 = arith.constant 0 : index
    %215 = arith.index_cast %214 : i32 to index
    %c0_155 = arith.constant 0 : index
    %c0_156 = arith.constant 0 : index
    %216 = vector.load %arg3[%c0_154, %215, %c0_155, %c0_156] : memref<1x120x5x128xbf16, #tpu.memory_space<vmem>>, vector<1x4x4x128xbf16>
    %217 = vector.shape_cast %216 : vector<1x4x4x128xbf16> to vector<4x4x128xbf16>
    %218 = vector.shape_cast %217 : vector<4x4x128xbf16> to vector<16x128xbf16>
    %c16 = arith.constant 16 : index
    %c0_157 = arith.constant 0 : index
    %c0_158 = arith.constant 0 : index
    %219 = vector.load %arg4[%c16, %c0_157, %c0_158] : memref<27x128x128xbf16, #tpu.memory_space<vmem>>, vector<1x128x128xbf16>
    %220 = vector.shape_cast %219 : vector<1x128x128xbf16> to vector<128x128xbf16>
    %cst_159 = arith.constant dense<0.000000e+00> : vector<16x128xf32>
    %221 = tpu.matmul %218, %220, %cst_159 {dimension_numbers = #tpu.dot_dimension_numbers<[1], [0], [0], [1], [0, 0, 1, 1], [], []>} : vector<16x128xbf16>, vector<128x128xbf16>, vector<16x128xf32> -> vector<16x128xf32>
    %222 = arith.addf %209, %221 : vector<16x128xf32>
    %c12_i32_160 = arith.constant 12 : i32
    %223 = arith.addi %c12_i32_160, %arg1 : i32
    %c0_i32_161 = arith.constant 0 : i32
    %224 = arith.addi %223, %c0_i32_161 : i32
    %c5_i32_162 = arith.constant 5 : i32
    %225 = arith.muli %224, %c5_i32_162 : i32
    %226 = arith.addi %225, %0 : i32
    %c1_i32_163 = arith.constant 1 : i32
    %227 = arith.addi %226, %c1_i32_163 : i32
    %c0_164 = arith.constant 0 : index
    %228 = arith.index_cast %227 : i32 to index
    %c1_165 = arith.constant 1 : index
    %c0_166 = arith.constant 0 : index
    %229 = vector.load %arg3[%c0_164, %228, %c1_165, %c0_166] : memref<1x120x5x128xbf16, #tpu.memory_space<vmem>>, vector<1x4x4x128xbf16>
    %230 = vector.shape_cast %229 : vector<1x4x4x128xbf16> to vector<4x4x128xbf16>
    %231 = vector.shape_cast %230 : vector<4x4x128xbf16> to vector<16x128xbf16>
    %c17 = arith.constant 17 : index
    %c0_167 = arith.constant 0 : index
    %c0_168 = arith.constant 0 : index
    %232 = vector.load %arg4[%c17, %c0_167, %c0_168] : memref<27x128x128xbf16, #tpu.memory_space<vmem>>, vector<1x128x128xbf16>
    %233 = vector.shape_cast %232 : vector<1x128x128xbf16> to vector<128x128xbf16>
    %cst_169 = arith.constant dense<0.000000e+00> : vector<16x128xf32>
    %234 = tpu.matmul %231, %233, %cst_169 {dimension_numbers = #tpu.dot_dimension_numbers<[1], [0], [0], [1], [0, 0, 1, 1], [], []>} : vector<16x128xbf16>, vector<128x128xbf16>, vector<16x128xf32> -> vector<16x128xf32>
    %235 = arith.addf %222, %234 : vector<16x128xf32>
    %c0_i32_170 = arith.constant 0 : i32
    %236 = arith.addi %c0_i32_170, %arg1 : i32
    %c1_i32_171 = arith.constant 1 : i32
    %237 = arith.addi %236, %c1_i32_171 : i32
    %c5_i32_172 = arith.constant 5 : i32
    %238 = arith.muli %237, %c5_i32_172 : i32
    %239 = arith.addi %238, %0 : i32
    %c0_i32_173 = arith.constant 0 : i32
    %240 = arith.addi %239, %c0_i32_173 : i32
    %c0_174 = arith.constant 0 : index
    %241 = arith.index_cast %240 : i32 to index
    %c0_175 = arith.constant 0 : index
    %c0_176 = arith.constant 0 : index
    %242 = vector.load %arg3[%c0_174, %241, %c0_175, %c0_176] : memref<1x120x5x128xbf16, #tpu.memory_space<vmem>>, vector<1x4x4x128xbf16>
    %243 = vector.shape_cast %242 : vector<1x4x4x128xbf16> to vector<4x4x128xbf16>
    %244 = vector.shape_cast %243 : vector<4x4x128xbf16> to vector<16x128xbf16>
    %c18 = arith.constant 18 : index
    %c0_177 = arith.constant 0 : index
    %c0_178 = arith.constant 0 : index
    %245 = vector.load %arg4[%c18, %c0_177, %c0_178] : memref<27x128x128xbf16, #tpu.memory_space<vmem>>, vector<1x128x128xbf16>
    %246 = vector.shape_cast %245 : vector<1x128x128xbf16> to vector<128x128xbf16>
    %cst_179 = arith.constant dense<0.000000e+00> : vector<16x128xf32>
    %247 = tpu.matmul %244, %246, %cst_179 {dimension_numbers = #tpu.dot_dimension_numbers<[1], [0], [0], [1], [0, 0, 1, 1], [], []>} : vector<16x128xbf16>, vector<128x128xbf16>, vector<16x128xf32> -> vector<16x128xf32>
    %248 = arith.addf %235, %247 : vector<16x128xf32>
    %c3_i32_180 = arith.constant 3 : i32
    %249 = arith.addi %c3_i32_180, %arg1 : i32
    %c1_i32_181 = arith.constant 1 : i32
    %250 = arith.addi %249, %c1_i32_181 : i32
    %c5_i32_182 = arith.constant 5 : i32
    %251 = arith.muli %250, %c5_i32_182 : i32
    %252 = arith.addi %251, %0 : i32
    %c0_i32_183 = arith.constant 0 : i32
    %253 = arith.addi %252, %c0_i32_183 : i32
    %c0_184 = arith.constant 0 : index
    %254 = arith.index_cast %253 : i32 to index
    %c0_185 = arith.constant 0 : index
    %c0_186 = arith.constant 0 : index
    %255 = vector.load %arg3[%c0_184, %254, %c0_185, %c0_186] : memref<1x120x5x128xbf16, #tpu.memory_space<vmem>>, vector<1x4x4x128xbf16>
    %256 = vector.shape_cast %255 : vector<1x4x4x128xbf16> to vector<4x4x128xbf16>
    %257 = vector.shape_cast %256 : vector<4x4x128xbf16> to vector<16x128xbf16>
    %c19 = arith.constant 19 : index
    %c0_187 = arith.constant 0 : index
    %c0_188 = arith.constant 0 : index
    %258 = vector.load %arg4[%c19, %c0_187, %c0_188] : memref<27x128x128xbf16, #tpu.memory_space<vmem>>, vector<1x128x128xbf16>
    %259 = vector.shape_cast %258 : vector<1x128x128xbf16> to vector<128x128xbf16>
    %cst_189 = arith.constant dense<0.000000e+00> : vector<16x128xf32>
    %260 = tpu.matmul %257, %259, %cst_189 {dimension_numbers = #tpu.dot_dimension_numbers<[1], [0], [0], [1], [0, 0, 1, 1], [], []>} : vector<16x128xbf16>, vector<128x128xbf16>, vector<16x128xf32> -> vector<16x128xf32>
    %261 = arith.addf %248, %260 : vector<16x128xf32>
    %c0_i32_190 = arith.constant 0 : i32
    %262 = arith.addi %c0_i32_190, %arg1 : i32
    %c1_i32_191 = arith.constant 1 : i32
    %263 = arith.addi %262, %c1_i32_191 : i32
    %c5_i32_192 = arith.constant 5 : i32
    %264 = arith.muli %263, %c5_i32_192 : i32
    %265 = arith.addi %264, %0 : i32
    %c0_i32_193 = arith.constant 0 : i32
    %266 = arith.addi %265, %c0_i32_193 : i32
    %c0_194 = arith.constant 0 : index
    %267 = arith.index_cast %266 : i32 to index
    %c1_195 = arith.constant 1 : index
    %c0_196 = arith.constant 0 : index
    %268 = vector.load %arg3[%c0_194, %267, %c1_195, %c0_196] : memref<1x120x5x128xbf16, #tpu.memory_space<vmem>>, vector<1x4x4x128xbf16>
    %269 = vector.shape_cast %268 : vector<1x4x4x128xbf16> to vector<4x4x128xbf16>
    %270 = vector.shape_cast %269 : vector<4x4x128xbf16> to vector<16x128xbf16>
    %c20 = arith.constant 20 : index
    %c0_197 = arith.constant 0 : index
    %c0_198 = arith.constant 0 : index
    %271 = vector.load %arg4[%c20, %c0_197, %c0_198] : memref<27x128x128xbf16, #tpu.memory_space<vmem>>, vector<1x128x128xbf16>
    %272 = vector.shape_cast %271 : vector<1x128x128xbf16> to vector<128x128xbf16>
    %cst_199 = arith.constant dense<0.000000e+00> : vector<16x128xf32>
    %273 = tpu.matmul %270, %272, %cst_199 {dimension_numbers = #tpu.dot_dimension_numbers<[1], [0], [0], [1], [0, 0, 1, 1], [], []>} : vector<16x128xbf16>, vector<128x128xbf16>, vector<16x128xf32> -> vector<16x128xf32>
    %274 = arith.addf %261, %273 : vector<16x128xf32>
    %c6_i32_200 = arith.constant 6 : i32
    %275 = arith.addi %c6_i32_200, %arg1 : i32
    %c1_i32_201 = arith.constant 1 : i32
    %276 = arith.addi %275, %c1_i32_201 : i32
    %c5_i32_202 = arith.constant 5 : i32
    %277 = arith.muli %276, %c5_i32_202 : i32
    %278 = arith.addi %277, %0 : i32
    %c0_i32_203 = arith.constant 0 : i32
    %279 = arith.addi %278, %c0_i32_203 : i32
    %c0_204 = arith.constant 0 : index
    %280 = arith.index_cast %279 : i32 to index
    %c0_205 = arith.constant 0 : index
    %c0_206 = arith.constant 0 : index
    %281 = vector.load %arg3[%c0_204, %280, %c0_205, %c0_206] : memref<1x120x5x128xbf16, #tpu.memory_space<vmem>>, vector<1x4x4x128xbf16>
    %282 = vector.shape_cast %281 : vector<1x4x4x128xbf16> to vector<4x4x128xbf16>
    %283 = vector.shape_cast %282 : vector<4x4x128xbf16> to vector<16x128xbf16>
    %c21 = arith.constant 21 : index
    %c0_207 = arith.constant 0 : index
    %c0_208 = arith.constant 0 : index
    %284 = vector.load %arg4[%c21, %c0_207, %c0_208] : memref<27x128x128xbf16, #tpu.memory_space<vmem>>, vector<1x128x128xbf16>
    %285 = vector.shape_cast %284 : vector<1x128x128xbf16> to vector<128x128xbf16>
    %cst_209 = arith.constant dense<0.000000e+00> : vector<16x128xf32>
    %286 = tpu.matmul %283, %285, %cst_209 {dimension_numbers = #tpu.dot_dimension_numbers<[1], [0], [0], [1], [0, 0, 1, 1], [], []>} : vector<16x128xbf16>, vector<128x128xbf16>, vector<16x128xf32> -> vector<16x128xf32>
    %287 = arith.addf %274, %286 : vector<16x128xf32>
    %c9_i32_210 = arith.constant 9 : i32
    %288 = arith.addi %c9_i32_210, %arg1 : i32
    %c1_i32_211 = arith.constant 1 : i32
    %289 = arith.addi %288, %c1_i32_211 : i32
    %c5_i32_212 = arith.constant 5 : i32
    %290 = arith.muli %289, %c5_i32_212 : i32
    %291 = arith.addi %290, %0 : i32
    %c0_i32_213 = arith.constant 0 : i32
    %292 = arith.addi %291, %c0_i32_213 : i32
    %c0_214 = arith.constant 0 : index
    %293 = arith.index_cast %292 : i32 to index
    %c0_215 = arith.constant 0 : index
    %c0_216 = arith.constant 0 : index
    %294 = vector.load %arg3[%c0_214, %293, %c0_215, %c0_216] : memref<1x120x5x128xbf16, #tpu.memory_space<vmem>>, vector<1x4x4x128xbf16>
    %295 = vector.shape_cast %294 : vector<1x4x4x128xbf16> to vector<4x4x128xbf16>
    %296 = vector.shape_cast %295 : vector<4x4x128xbf16> to vector<16x128xbf16>
    %c22 = arith.constant 22 : index
    %c0_217 = arith.constant 0 : index
    %c0_218 = arith.constant 0 : index
    %297 = vector.load %arg4[%c22, %c0_217, %c0_218] : memref<27x128x128xbf16, #tpu.memory_space<vmem>>, vector<1x128x128xbf16>
    %298 = vector.shape_cast %297 : vector<1x128x128xbf16> to vector<128x128xbf16>
    %cst_219 = arith.constant dense<0.000000e+00> : vector<16x128xf32>
    %299 = tpu.matmul %296, %298, %cst_219 {dimension_numbers = #tpu.dot_dimension_numbers<[1], [0], [0], [1], [0, 0, 1, 1], [], []>} : vector<16x128xbf16>, vector<128x128xbf16>, vector<16x128xf32> -> vector<16x128xf32>
    %300 = arith.addf %287, %299 : vector<16x128xf32>
    %c6_i32_220 = arith.constant 6 : i32
    %301 = arith.addi %c6_i32_220, %arg1 : i32
    %c1_i32_221 = arith.constant 1 : i32
    %302 = arith.addi %301, %c1_i32_221 : i32
    %c5_i32_222 = arith.constant 5 : i32
    %303 = arith.muli %302, %c5_i32_222 : i32
    %304 = arith.addi %303, %0 : i32
    %c0_i32_223 = arith.constant 0 : i32
    %305 = arith.addi %304, %c0_i32_223 : i32
    %c0_224 = arith.constant 0 : index
    %306 = arith.index_cast %305 : i32 to index
    %c1_225 = arith.constant 1 : index
    %c0_226 = arith.constant 0 : index
    %307 = vector.load %arg3[%c0_224, %306, %c1_225, %c0_226] : memref<1x120x5x128xbf16, #tpu.memory_space<vmem>>, vector<1x4x4x128xbf16>
    %308 = vector.shape_cast %307 : vector<1x4x4x128xbf16> to vector<4x4x128xbf16>
    %309 = vector.shape_cast %308 : vector<4x4x128xbf16> to vector<16x128xbf16>
    %c23 = arith.constant 23 : index
    %c0_227 = arith.constant 0 : index
    %c0_228 = arith.constant 0 : index
    %310 = vector.load %arg4[%c23, %c0_227, %c0_228] : memref<27x128x128xbf16, #tpu.memory_space<vmem>>, vector<1x128x128xbf16>
    %311 = vector.shape_cast %310 : vector<1x128x128xbf16> to vector<128x128xbf16>
    %cst_229 = arith.constant dense<0.000000e+00> : vector<16x128xf32>
    %312 = tpu.matmul %309, %311, %cst_229 {dimension_numbers = #tpu.dot_dimension_numbers<[1], [0], [0], [1], [0, 0, 1, 1], [], []>} : vector<16x128xbf16>, vector<128x128xbf16>, vector<16x128xf32> -> vector<16x128xf32>
    %313 = arith.addf %300, %312 : vector<16x128xf32>
    %c0_i32_230 = arith.constant 0 : i32
    %314 = arith.addi %c0_i32_230, %arg1 : i32
    %c1_i32_231 = arith.constant 1 : i32
    %315 = arith.addi %314, %c1_i32_231 : i32
    %c5_i32_232 = arith.constant 5 : i32
    %316 = arith.muli %315, %c5_i32_232 : i32
    %317 = arith.addi %316, %0 : i32
    %c1_i32_233 = arith.constant 1 : i32
    %318 = arith.addi %317, %c1_i32_233 : i32
    %c0_234 = arith.constant 0 : index
    %319 = arith.index_cast %318 : i32 to index
    %c0_235 = arith.constant 0 : index
    %c0_236 = arith.constant 0 : index
    %320 = vector.load %arg3[%c0_234, %319, %c0_235, %c0_236] : memref<1x120x5x128xbf16, #tpu.memory_space<vmem>>, vector<1x4x4x128xbf16>
    %321 = vector.shape_cast %320 : vector<1x4x4x128xbf16> to vector<4x4x128xbf16>
    %322 = vector.shape_cast %321 : vector<4x4x128xbf16> to vector<16x128xbf16>
    %c24 = arith.constant 24 : index
    %c0_237 = arith.constant 0 : index
    %c0_238 = arith.constant 0 : index
    %323 = vector.load %arg4[%c24, %c0_237, %c0_238] : memref<27x128x128xbf16, #tpu.memory_space<vmem>>, vector<1x128x128xbf16>
    %324 = vector.shape_cast %323 : vector<1x128x128xbf16> to vector<128x128xbf16>
    %cst_239 = arith.constant dense<0.000000e+00> : vector<16x128xf32>
    %325 = tpu.matmul %322, %324, %cst_239 {dimension_numbers = #tpu.dot_dimension_numbers<[1], [0], [0], [1], [0, 0, 1, 1], [], []>} : vector<16x128xbf16>, vector<128x128xbf16>, vector<16x128xf32> -> vector<16x128xf32>
    %326 = arith.addf %313, %325 : vector<16x128xf32>
    %c3_i32_240 = arith.constant 3 : i32
    %327 = arith.addi %c3_i32_240, %arg1 : i32
    %c1_i32_241 = arith.constant 1 : i32
    %328 = arith.addi %327, %c1_i32_241 : i32
    %c5_i32_242 = arith.constant 5 : i32
    %329 = arith.muli %328, %c5_i32_242 : i32
    %330 = arith.addi %329, %0 : i32
    %c1_i32_243 = arith.constant 1 : i32
    %331 = arith.addi %330, %c1_i32_243 : i32
    %c0_244 = arith.constant 0 : index
    %332 = arith.index_cast %331 : i32 to index
    %c0_245 = arith.constant 0 : index
    %c0_246 = arith.constant 0 : index
    %333 = vector.load %arg3[%c0_244, %332, %c0_245, %c0_246] : memref<1x120x5x128xbf16, #tpu.memory_space<vmem>>, vector<1x4x4x128xbf16>
    %334 = vector.shape_cast %333 : vector<1x4x4x128xbf16> to vector<4x4x128xbf16>
    %335 = vector.shape_cast %334 : vector<4x4x128xbf16> to vector<16x128xbf16>
    %c25 = arith.constant 25 : index
    %c0_247 = arith.constant 0 : index
    %c0_248 = arith.constant 0 : index
    %336 = vector.load %arg4[%c25, %c0_247, %c0_248] : memref<27x128x128xbf16, #tpu.memory_space<vmem>>, vector<1x128x128xbf16>
    %337 = vector.shape_cast %336 : vector<1x128x128xbf16> to vector<128x128xbf16>
    %cst_249 = arith.constant dense<0.000000e+00> : vector<16x128xf32>
    %338 = tpu.matmul %335, %337, %cst_249 {dimension_numbers = #tpu.dot_dimension_numbers<[1], [0], [0], [1], [0, 0, 1, 1], [], []>} : vector<16x128xbf16>, vector<128x128xbf16>, vector<16x128xf32> -> vector<16x128xf32>
    %339 = arith.addf %326, %338 : vector<16x128xf32>
    %c0_i32_250 = arith.constant 0 : i32
    %340 = arith.addi %c0_i32_250, %arg1 : i32
    %c1_i32_251 = arith.constant 1 : i32
    %341 = arith.addi %340, %c1_i32_251 : i32
    %c5_i32_252 = arith.constant 5 : i32
    %342 = arith.muli %341, %c5_i32_252 : i32
    %343 = arith.addi %342, %0 : i32
    %c1_i32_253 = arith.constant 1 : i32
    %344 = arith.addi %343, %c1_i32_253 : i32
    %c0_254 = arith.constant 0 : index
    %345 = arith.index_cast %344 : i32 to index
    %c1_255 = arith.constant 1 : index
    %c0_256 = arith.constant 0 : index
    %346 = vector.load %arg3[%c0_254, %345, %c1_255, %c0_256] : memref<1x120x5x128xbf16, #tpu.memory_space<vmem>>, vector<1x4x4x128xbf16>
    %347 = vector.shape_cast %346 : vector<1x4x4x128xbf16> to vector<4x4x128xbf16>
    %348 = vector.shape_cast %347 : vector<4x4x128xbf16> to vector<16x128xbf16>
    %c26 = arith.constant 26 : index
    %c0_257 = arith.constant 0 : index
    %c0_258 = arith.constant 0 : index
    %349 = vector.load %arg4[%c26, %c0_257, %c0_258] : memref<27x128x128xbf16, #tpu.memory_space<vmem>>, vector<1x128x128xbf16>
    %350 = vector.shape_cast %349 : vector<1x128x128xbf16> to vector<128x128xbf16>
    %cst_259 = arith.constant dense<0.000000e+00> : vector<16x128xf32>
    %351 = tpu.matmul %348, %350, %cst_259 {dimension_numbers = #tpu.dot_dimension_numbers<[1], [0], [0], [1], [0, 0, 1, 1], [], []>} : vector<16x128xbf16>, vector<128x128xbf16>, vector<16x128xf32> -> vector<16x128xf32>
    %352 = arith.addf %339, %351 : vector<16x128xf32>
    %c0_260 = arith.constant 0 : index
    %c0_261 = arith.constant 0 : index
    %353 = vector.load %arg5[%c0_260, %c0_261] : memref<1x128xf32, #tpu.memory_space<vmem>>, vector<1x128xf32>
    %354 = vector.broadcast %353 : vector<1x128xf32> to vector<16x128xf32>
    %355 = arith.mulf %352, %354 : vector<16x128xf32>
    %c0_262 = arith.constant 0 : index
    %c0_263 = arith.constant 0 : index
    %356 = vector.load %arg6[%c0_262, %c0_263] : memref<1x128xf32, #tpu.memory_space<vmem>>, vector<1x128xf32>
    %357 = vector.broadcast %356 : vector<1x128xf32> to vector<16x128xf32>
    %358 = arith.addf %355, %357 : vector<16x128xf32>
    %cst_264 = arith.constant 0.000000e+00 : f32
    %359 = vector.broadcast %cst_264 : f32 to vector<16x128xf32>
    %360 = arith.maximumf %358, %359 : vector<16x128xf32>
    %361 = arith.truncf %360 : vector<16x128xf32> to vector<16x128xbf16>
    %c0_265 = arith.constant 0 : index
    %c0_266 = arith.constant 0 : index
    %c0_267 = arith.constant 0 : index
    %c0_268 = arith.constant 0 : index
    %362 = vector.load %arg7[%c0_265, %c0_266, %c0_267, %c0_268] : memref<1x1x16x128xbf16, #tpu.memory_space<vmem>>, vector<1x1x16x128xbf16>
    %363 = vector.shape_cast %362 : vector<1x1x16x128xbf16> to vector<16x128xbf16>
    %364 = vector.shape_cast %361 : vector<16x128xbf16> to vector<1x1x16x128xbf16>
    tpu.vector_store %arg7[%c0_265, %c0_266, %c0_267, %c0_268], %364 {strides = array<i32>} : memref<1x1x16x128xbf16, #tpu.memory_space<vmem>>, vector<1x1x16x128xbf16>,
    return
  }
  func.func @transform_0(%arg0: i32, %arg1: i32, %arg2: i32) -> (i32, i32, i32, i32) {
    %c0_i32 = arith.constant 0 : i32
    %c0_i32_0 = arith.constant 0 : i32
    %c0_i32_1 = arith.constant 0 : i32
    %c0_i32_2 = arith.constant 0 : i32
    return %arg0, %c0_i32, %c0_i32_0, %c0_i32_1 : i32, i32, i32, i32
  }
  func.func @transform_1(%arg0: i32, %arg1: i32, %arg2: i32) -> (i32, i32, i32) {
    %c0_i32 = arith.constant 0 : i32
    %c0_i32_0 = arith.constant 0 : i32
    %c0_i32_1 = arith.constant 0 : i32
    %c0_i32_2 = arith.constant 0 : i32
    return %c0_i32, %c0_i32_0, %c0_i32_1 : i32, i32, i32
  }
  func.func @transform_2(%arg0: i32, %arg1: i32, %arg2: i32) -> (i32, i32) {
    %c0_i32 = arith.constant 0 : i32
    %c0_i32_0 = arith.constant 0 : i32
    %c0_i32_1 = arith.constant 0 : i32
    return %c0_i32, %c0_i32_0 : i32, i32
  }
  func.func @transform_3(%arg0: i32, %arg1: i32, %arg2: i32) -> (i32, i32) {
    %c0_i32 = arith.constant 0 : i32
    %c0_i32_0 = arith.constant 0 : i32
    %c0_i32_1 = arith.constant 0 : i32
    return %c0_i32, %c0_i32_0 : i32, i32
  }
  func.func @transform_4(%arg0: i32, %arg1: i32, %arg2: i32) -> (i32, i32, i32, i32) {
    %c0_i32 = arith.constant 0 : i32
    %c0_i32_0 = arith.constant 0 : i32
    return %arg0, %arg1, %arg2, %c0_i32 : i32, i32, i32, i32
  }
}

module attributes {stable_mosaic.version = 11 : i64} {
  func.func @_pw_dual_bn_add_relu_kernel(%arg0: i32, %arg1: memref<32x128xbf16, #tpu.memory_space<vmem>>, %arg2: memref<128x128xbf16, #tpu.memory_space<vmem>>, %arg3: memref<1x128xf32, #tpu.memory_space<vmem>>, %arg4: memref<1x128xf32, #tpu.memory_space<vmem>>, %arg5: memref<32x128xbf16, #tpu.memory_space<vmem>>, %arg6: memref<128x128xbf16, #tpu.memory_space<vmem>>, %arg7: memref<1x128xf32, #tpu.memory_space<vmem>>, %arg8: memref<1x128xf32, #tpu.memory_space<vmem>>, %arg9: memref<32x128xbf16, #tpu.memory_space<vmem>>) attributes {dimension_semantics = [#tpu.dimension_semantics<parallel>], iteration_bounds = array<i64: 2>, scalar_prefetch = 0 : i64, scratch_operands = 0 : i64, tpu.core_type = #tpu.core_type<tc>, window_params = [{transform_indices = @transform_0, window_bounds = array<i64: 32, 128>}, {pipeline_mode = #tpu.pipeline_mode<synchronous>, transform_indices = @transform_1, window_bounds = array<i64: 128, 128>}, {pipeline_mode = #tpu.pipeline_mode<synchronous>, transform_indices = @transform_2, window_bounds = array<i64: 1, 128>}, {pipeline_mode = #tpu.pipeline_mode<synchronous>, transform_indices = @transform_3, window_bounds = array<i64: 1, 128>}, {transform_indices = @transform_4, window_bounds = array<i64: 32, 128>}, {pipeline_mode = #tpu.pipeline_mode<synchronous>, transform_indices = @transform_5, window_bounds = array<i64: 128, 128>}, {pipeline_mode = #tpu.pipeline_mode<synchronous>, transform_indices = @transform_6, window_bounds = array<i64: 1, 128>}, {pipeline_mode = #tpu.pipeline_mode<synchronous>, transform_indices = @transform_7, window_bounds = array<i64: 1, 128>}, {transform_indices = @transform_8, window_bounds = array<i64: 32, 128>}]} {
    %c0 = arith.constant 0 : index
    %c0_0 = arith.constant 0 : index
    %0 = vector.load %arg1[%c0, %c0_0] : memref<32x128xbf16, #tpu.memory_space<vmem>>, vector<32x128xbf16>
    %c0_1 = arith.constant 0 : index
    %c0_2 = arith.constant 0 : index
    %1 = vector.load %arg2[%c0_1, %c0_2] : memref<128x128xbf16, #tpu.memory_space<vmem>>, vector<128x128xbf16>
    %cst = arith.constant dense<0.000000e+00> : vector<32x128xf32>
    %2 = tpu.matmul %0, %1, %cst {dimension_numbers = #tpu.dot_dimension_numbers<[1], [0], [0], [1], [0, 0, 1, 1], [], []>} : vector<32x128xbf16>, vector<128x128xbf16>, vector<32x128xf32> -> vector<32x128xf32>
    %c0_3 = arith.constant 0 : index
    %c0_4 = arith.constant 0 : index
    %3 = vector.load %arg3[%c0_3, %c0_4] : memref<1x128xf32, #tpu.memory_space<vmem>>, vector<1x128xf32>
    %4 = vector.broadcast %3 : vector<1x128xf32> to vector<32x128xf32>
    %5 = arith.mulf %2, %4 : vector<32x128xf32>
    %c0_5 = arith.constant 0 : index
    %c0_6 = arith.constant 0 : index
    %6 = vector.load %arg4[%c0_5, %c0_6] : memref<1x128xf32, #tpu.memory_space<vmem>>, vector<1x128xf32>
    %7 = vector.broadcast %6 : vector<1x128xf32> to vector<32x128xf32>
    %8 = arith.addf %5, %7 : vector<32x128xf32>
    %c0_7 = arith.constant 0 : index
    %c0_8 = arith.constant 0 : index
    %9 = vector.load %arg5[%c0_7, %c0_8] : memref<32x128xbf16, #tpu.memory_space<vmem>>, vector<32x128xbf16>
    %c0_9 = arith.constant 0 : index
    %c0_10 = arith.constant 0 : index
    %10 = vector.load %arg6[%c0_9, %c0_10] : memref<128x128xbf16, #tpu.memory_space<vmem>>, vector<128x128xbf16>
    %cst_11 = arith.constant dense<0.000000e+00> : vector<32x128xf32>
    %11 = tpu.matmul %9, %10, %cst_11 {dimension_numbers = #tpu.dot_dimension_numbers<[1], [0], [0], [1], [0, 0, 1, 1], [], []>} : vector<32x128xbf16>, vector<128x128xbf16>, vector<32x128xf32> -> vector<32x128xf32>
    %c0_12 = arith.constant 0 : index
    %c0_13 = arith.constant 0 : index
    %12 = vector.load %arg7[%c0_12, %c0_13] : memref<1x128xf32, #tpu.memory_space<vmem>>, vector<1x128xf32>
    %13 = vector.broadcast %12 : vector<1x128xf32> to vector<32x128xf32>
    %14 = arith.mulf %11, %13 : vector<32x128xf32>
    %c0_14 = arith.constant 0 : index
    %c0_15 = arith.constant 0 : index
    %15 = vector.load %arg8[%c0_14, %c0_15] : memref<1x128xf32, #tpu.memory_space<vmem>>, vector<1x128xf32>
    %16 = vector.broadcast %15 : vector<1x128xf32> to vector<32x128xf32>
    %17 = arith.addf %14, %16 : vector<32x128xf32>
    %18 = arith.addf %8, %17 : vector<32x128xf32>
    %cst_16 = arith.constant 0.000000e+00 : f32
    %19 = vector.broadcast %cst_16 : f32 to vector<32x128xf32>
    %20 = arith.maximumf %18, %19 : vector<32x128xf32>
    %21 = arith.truncf %20 : vector<32x128xf32> to vector<32x128xbf16>
    %c0_17 = arith.constant 0 : index
    %c0_18 = arith.constant 0 : index
    %22 = vector.load %arg9[%c0_17, %c0_18] : memref<32x128xbf16, #tpu.memory_space<vmem>>, vector<32x128xbf16>
    tpu.vector_store %arg9[%c0_17, %c0_18], %21 {strides = array<i32>} : memref<32x128xbf16, #tpu.memory_space<vmem>>, vector<32x128xbf16>,
    return
  }
  func.func @transform_0(%arg0: i32) -> (i32, i32) {
    %c0_i32 = arith.constant 0 : i32
    %c0_i32_0 = arith.constant 0 : i32
    return %arg0, %c0_i32 : i32, i32
  }
  func.func @transform_1(%arg0: i32) -> (i32, i32) {
    %c0_i32 = arith.constant 0 : i32
    %c0_i32_0 = arith.constant 0 : i32
    %c0_i32_1 = arith.constant 0 : i32
    return %c0_i32, %c0_i32_0 : i32, i32
  }
  func.func @transform_2(%arg0: i32) -> (i32, i32) {
    %c0_i32 = arith.constant 0 : i32
    %c0_i32_0 = arith.constant 0 : i32
    %c0_i32_1 = arith.constant 0 : i32
    return %c0_i32, %c0_i32_0 : i32, i32
  }
  func.func @transform_3(%arg0: i32) -> (i32, i32) {
    %c0_i32 = arith.constant 0 : i32
    %c0_i32_0 = arith.constant 0 : i32
    %c0_i32_1 = arith.constant 0 : i32
    return %c0_i32, %c0_i32_0 : i32, i32
  }
  func.func @transform_4(%arg0: i32) -> (i32, i32) {
    %c0_i32 = arith.constant 0 : i32
    %c0_i32_0 = arith.constant 0 : i32
    return %arg0, %c0_i32 : i32, i32
  }
  func.func @transform_5(%arg0: i32) -> (i32, i32) {
    %c0_i32 = arith.constant 0 : i32
    %c0_i32_0 = arith.constant 0 : i32
    %c0_i32_1 = arith.constant 0 : i32
    return %c0_i32, %c0_i32_0 : i32, i32
  }
  func.func @transform_6(%arg0: i32) -> (i32, i32) {
    %c0_i32 = arith.constant 0 : i32
    %c0_i32_0 = arith.constant 0 : i32
    %c0_i32_1 = arith.constant 0 : i32
    return %c0_i32, %c0_i32_0 : i32, i32
  }
  func.func @transform_7(%arg0: i32) -> (i32, i32) {
    %c0_i32 = arith.constant 0 : i32
    %c0_i32_0 = arith.constant 0 : i32
    %c0_i32_1 = arith.constant 0 : i32
    return %c0_i32, %c0_i32_0 : i32, i32
  }
  func.func @transform_8(%arg0: i32) -> (i32, i32) {
    %c0_i32 = arith.constant 0 : i32
    %c0_i32_0 = arith.constant 0 : i32
    return %arg0, %c0_i32 : i32, i32
  }
}

</mosaic_0001>

<bundles_post_ra>
// kernel: bottleneck3d_pallas.3
= control target key start
LH: loop header
LB: loop body
LE: loop exit
PB: predicated region body
PF: predicated region fallthrough
CT: control target
= control target key end

     0   :  { %s1230_s15 = smov 0   ;;  %s1388_s0 = inlined_call_operand.vmem [shape: bf16[512,128], index: 0, kind: input, shape index: {}]   ;;  %s1389_s1 = inlined_call_operand.vmem [shape: bf16[128,128], index: 1, kind: input, shape index: {}]   ;;  %s1390_s2 = inlined_call_operand.vmem [shape: f32[1,128], index: 2, kind: input, shape index: {}]   ;;  %s1391_s3 = inlined_call_operand.vmem [shape: f32[1,128], index: 3, kind: input, shape index: {}]   ;;  %s1392_s4 = inlined_call_operand.vmem [shape: bf16[512,128], index: 4, kind: output, shape index: {}]  }
   0x1 LB: > { %s881_s16 = sadd.s32 4294967295, %s1203_s15   ;;  %p885_p0 = scmp.ge.s32.totalorder %s1203_s15, 1  ;;  %s1203_s15 = sphi %s1230_s15, %s14_s15  }
   0x2   : > { %p163_p1 = scmp.lt.s32.totalorder %s1203_s15, 3 }
   0x4   : > { %p164_p2 = pnand %p885_p0, %p163_p1 }
   0x5   : > { %s886_s19 = sshll.u32 (!%p164_p2), %s881_s16, 5 }
   0x6   : > { %167 = sbr.rel (%p164_p2) target bundleno = 276 (0x114), region = 36  ;;  %p190_p3 = scmp.lt.s32.totalorder (!%p164_p2), %s886_s19, 63 }
   0xb   : > { %v1173_v0 = vld [vmem:[%s1389_s1 + $0x38] sm:$0xff]   ;;  %v1174_v1 = vld [vmem:[%s1389_s1 + $0x30] sm:$0xff]   ;;  %s1394_s19 = smov (!%p190_p3, %s886_s19), 63  ;;  %v1175_v2 = vld [vmem:[%s1389_s1 + $0x28] sm:$0xff]  }
   0xc   : > { %1101 = vmatprep.subr.bf16.mxu0 %v1173_v0  ;;  %1149 = vmatprep.subr.bf16.mxu1 %v1173_v0  ;;  %s887_s24 = sshll.u32 %s1394_s19, 2  ;;  %v1176_v3 = vld [vmem:[%s1389_s1 + $0x20] sm:$0xff]   ;;  %v1177_v6 = vld [vmem:[%s1389_s1 + $0x18] sm:$0xff]   ;;  %v1178_v7 = vld [vmem:[%s1389_s1 + $0x10] sm:$0xff]  }
   0xd   : > { %1102 = vmatpush3.bf16.msra.mxu0 %v1173_v0  ;;  %1157 = vmatpush3.bf16.msra.mxu1 %v1173_v0  ;;  %s1255_s27 = scalar_lea.vmem %s1388_s0, %s887_s24  ;;  %v1179_v8 = vld [vmem:[%s1389_s1 + $0x8] sm:$0xff]   ;;  %v1180_v9 = vld [vmem:[%s1389_s1] sm:$0xff]   ;;  %s1321_s20 = scalar_lea.vmem %s1392_s4, %s887_s24 }
   0xe   : > { %1103 = vmatprep.subr.bf16.mxu0 %v1174_v1  ;;  %1150 = vmatprep.subr.bf16.mxu1 %v1174_v1  ;;  %v1181_v4 = vld [vmem:[%s1255_s27] sm:$0xff]   ;;  %v1183_v10 = vld [vmem:[%s1255_s27 + $0x8] sm:$0xff]   ;;  %v1185_v12 = vld [vmem:[%s1255_s27 + $0x10] sm:$0xff]  }
   0xf   : > { %v1182_v5 = vld [vmem:[%s1255_s27 + $0x40] sm:$0xff]   ;;  %1117 = vmatprep.mubr.bf16.mxu0 %v1181_v4  ;;  %v1184_v11 = vld [vmem:[%s1255_s27 + $0x48] sm:$0xff]   ;;  %v1186_v13 = vld [vmem:[%s1255_s27 + $0x50] sm:$0xff]  }
  0x10   : > { %1133 = vmatprep.mubr.bf16.mxu1 %v1182_v5  ;;  %v1187_v14 = vld [vmem:[%s1255_s27 + $0x18] sm:$0xff]   ;;  %v1189_v16 = vld [vmem:[%s1255_s27 + $0x20] sm:$0xff]   ;;  %v1191_v18 = vld [vmem:[%s1255_s27 + $0x28] sm:$0xff]  }
  0x11   : > { %1104 = vmatpush3.bf16.msra.mxu0 %v1174_v1  ;;  %1158 = vmatpush3.bf16.msra.mxu1 %v1174_v1  ;;  %v1188_v15 = vld [vmem:[%s1255_s27 + $0x58] sm:$0xff]   ;;  %v1190_v17 = vld [vmem:[%s1255_s27 + $0x60] sm:$0xff]   ;;  %v1192_v19 = vld [vmem:[%s1255_s27 + $0x68] sm:$0xff]  }
  0x12   : > { %1105 = vmatprep.subr.bf16.mxu0 %v1175_v2  ;;  %1151 = vmatprep.subr.bf16.mxu1 %v1175_v2  ;;  %v1193_v20 = vld [vmem:[%s1255_s27 + $0x30] sm:$0xff]   ;;  %v1195_v22 = vld [vmem:[%s1255_s27 + $0x38] sm:$0xff]   ;;  %v1291_v24 = vld [vmem:[%s1390_s2] ss:$0 sm:$0xff] }
  0x13   : > { %v1194_v21 = vld [vmem:[%s1255_s27 + $0x70] sm:$0xff]   ;;  %v1196_v23 = vld [vmem:[%s1255_s27 + $0x78] sm:$0xff]   ;;  %v1298_v29 = vld [vmem:[%s1391_s3] ss:$0 sm:$0xff] }
  0x15   : > { %1106 = vmatpush3.bf16.msra.mxu0 %v1175_v2  ;;  %1159 = vmatpush3.bf16.msra.mxu1 %v1175_v2 }
  0x16   : > { %1107 = vmatprep.subr.bf16.mxu0 %v1176_v3  ;;  %1152 = vmatprep.subr.bf16.mxu1 %v1176_v3 }
  0x19   : > { %1108 = vmatpush3.bf16.msra.mxu0 %v1176_v3  ;;  %1160 = vmatpush3.bf16.msra.mxu1 %v1176_v3 }
  0x1a   : > { %1109 = vmatprep.subr.bf16.mxu0 %v1177_v6  ;;  %1153 = vmatprep.subr.bf16.mxu1 %v1177_v6 }
  0x1d   : > { %1110 = vmatpush3.bf16.msra.mxu0 %v1177_v6  ;;  %1161 = vmatpush3.bf16.msra.mxu1 %v1177_v6 }
  0x1e   : > { %1111 = vmatprep.subr.bf16.mxu0 %v1178_v7  ;;  %1154 = vmatprep.subr.bf16.mxu1 %v1178_v7 }
  0x21   : > { %1112 = vmatpush3.bf16.msra.mxu0 %v1178_v7  ;;  %1162 = vmatpush3.bf16.msra.mxu1 %v1178_v7 }
  0x22   : > { %1113 = vmatprep.subr.bf16.mxu0 %v1179_v8  ;;  %1155 = vmatprep.subr.bf16.mxu1 %v1179_v8 }
  0x25   : > { %1114 = vmatpush3.bf16.msra.mxu0 %v1179_v8  ;;  %1163 = vmatpush3.bf16.msra.mxu1 %v1179_v8 }
  0x26   : > { %1115 = vmatprep.subr.bf16.mxu0 %v1180_v9  ;;  %1156 = vmatprep.subr.bf16.mxu1 %v1180_v9 }
  0x29   : > { %1116 = vmatpush3.bf16.msra.mxu0 %v1180_v9  ;;  %1164 = vmatpush3.bf16.msra.mxu1 %v1180_v9 }
  0x2c   : > { %1118 = vmatmul.mubr.bf16.vlgmr.msra.gmra.mxu0 %v1183_v10  ;;  %1134 = vmatmul.mubr.bf16.vlgmr.msra.gmra.mxu1 %v1184_v11 }
  0x2d   : > { %1121 = vmatprep.mubr.bf16.mxu0 %v1185_v12  ;;  %1137 = vmatprep.mubr.bf16.mxu1 %v1186_v13 }
  0x34   : > { %1122 = vmatmul.mubr.bf16.gmra.mxu0 %v1187_v14  ;;  %1138 = vmatmul.mubr.bf16.gmra.mxu1 %v1188_v15 }
  0x35   : > { %1125 = vmatprep.mubr.bf16.mxu0 %v1189_v16  ;;  %1141 = vmatprep.mubr.bf16.mxu1 %v1190_v17 }
  0x3c   : > { %1126 = vmatmul.mubr.bf16.gmra.mxu0 %v1191_v18  ;;  %1142 = vmatmul.mubr.bf16.gmra.mxu1 %v1192_v19 }
  0x3d   : > { %1129 = vmatprep.mubr.bf16.mxu0 %v1193_v20  ;;  %1145 = vmatprep.mubr.bf16.mxu1 %v1194_v21 }
  0x44   : > { %1130 = vmatmul.mubr.bf16.gmra.mxu0 %v1195_v22  ;;  %1146 = vmatmul.mubr.bf16.gmra.mxu1 %v1196_v23 }
  0xec   : > { %v1119_v25 = vpop.f32.mrf.mxu0  ;;  %v1135_v26 = vpop.f32.mrf.mxu1 }
  0xed   : > { %v564_v27 = vmul.f32 %v1119_v25, %v1291_v24  ;;  %v580_v28 = vmul.f32 %v1135_v26, %v1291_v24 }
  0xee   : > { %v428_v30 = vpop.f32.mrf.mxu0  ;;  %v492_v31 = vpop.f32.mrf.mxu1 }
  0xef   : > { %v562_v32 = vmul.f32 %v1291_v24, %v428_v30  ;;  %v578_v33 = vmul.f32 %v1291_v24, %v492_v31  ;;  %v603_v36 = vadd.f32 %v1298_v29, %v564_v27  ;;  %v619_v37 = vadd.f32 %v1298_v29, %v580_v28 }
  0xf0   : > { %v1120_v34 = vpop.f32.mrf.mxu0  ;;  %v1136_v35 = vpop.f32.mrf.mxu1 }
  0xf1   : > { %v565_v38 = vmul.f32 %v1120_v34, %v1291_v24  ;;  %v581_v39 = vmul.f32 %v1136_v35, %v1291_v24  ;;  %v601_v42 = vadd.f32 %v1298_v29, %v562_v32  ;;  %v617_v43 = vadd.f32 %v1298_v29, %v578_v33 }
  0xf2   : > { %v431_v40 = vpop.f32.mrf.mxu0  ;;  %v495_v41 = vpop.f32.mrf.mxu1  ;;  %v635_v50 = vmax.f32 %v603_v36, 0.0  ;;  %v651_v51 = vmax.f32 %v619_v37, 0.0 }
  0xf3   : > { %v563_v44 = vmul.f32 %v1291_v24, %v431_v40  ;;  %v579_v45 = vmul.f32 %v1291_v24, %v495_v41  ;;  %v604_v46 = vadd.f32 %v1298_v29, %v565_v38  ;;  %v620_v47 = vadd.f32 %v1298_v29, %v581_v39 }
  0xf4   : > { %v1123_v48 = vpop.f32.mrf.mxu0  ;;  %v1139_v49 = vpop.f32.mrf.mxu1  ;;  %v633_v60 = vmax.f32 %v601_v42, 0.0  ;;  %v649_v61 = vmax.f32 %v617_v43, 0.0 }
  0xf5   : > { %v602_v52 = vadd.f32 %v1298_v29, %v563_v44  ;;  %v618_v53 = vadd.f32 %v1298_v29, %v579_v45  ;;  %v636_v54 = vmax.f32 %v604_v46, 0.0  ;;  %v652_v55 = vmax.f32 %v620_v47, 0.0 }
  0xf6   : > { %v568_v56 = vmul.f32 %v1123_v48, %v1291_v24  ;;  %v584_v57 = vmul.f32 %v1139_v49, %v1291_v24  ;;  %v444_v58 = vpop.f32.mrf.mxu0  ;;  %v508_v59 = vpop.f32.mrf.mxu1 }
  0xf7   : > { %v634_v62 = vmax.f32 %v602_v52, 0.0  ;;  %v650_v63 = vmax.f32 %v618_v53, 0.0  ;;  %v990_v0 = vpack.c.bf16 %v636_v54, %v635_v50  ;;  %v1030_v1 = vpack.c.bf16 %v652_v55, %v651_v51 }
  0xf8   : > { %v566_v2 = vmul.f32 %v1291_v24, %v444_v58  ;;  %v582_v3 = vmul.f32 %v1291_v24, %v508_v59  ;;  %v1124_v4 = vpop.f32.mrf.mxu0  ;;  %v1140_v5 = vpop.f32.mrf.mxu1  ;;  %v607_v8 = vadd.f32 %v1298_v29, %v568_v56  ;;  %v623_v9 = vadd.f32 %v1298_v29, %v584_v57 }
  0xf9   : > { %v985_v6 = vpack.c.bf16 %v634_v62, %v633_v60  ;;  %v1025_v7 = vpack.c.bf16 %v650_v63, %v649_v61  ;;  %1062 = vst [vmem:[%s1321_s20 + $0x8] sm:$0xff] %v990_v0   ;;  %1070 = vst [vmem:[%s1321_s20 + $0x48] sm:$0xff] %v1030_v1   ;;  %v569_v10 = vmul.f32 %v1124_v4, %v1291_v24 }
  0xfa   : > { %v585_v11 = vmul.f32 %v1140_v5, %v1291_v24  ;;  %v447_v12 = vpop.f32.mrf.mxu0  ;;  %v511_v13 = vpop.f32.mrf.mxu1  ;;  %v605_v14 = vadd.f32 %v1298_v29, %v566_v2  ;;  %v621_v15 = vadd.f32 %v1298_v29, %v582_v3  ;;  %v639_v27 = vmax.f32 %v607_v8, 0.0 }
  0xfb   : > { %986 = vst [vmem:[%s1321_s20] sm:$0xff] %v985_v6   ;;  %1069 = vst [vmem:[%s1321_s20 + $0x40] sm:$0xff] %v1025_v7   ;;  %v567_v16 = vmul.f32 %v1291_v24, %v447_v12  ;;  %v583_v17 = vmul.f32 %v1291_v24, %v511_v13  ;;  %v608_v18 = vadd.f32 %v1298_v29, %v569_v10  ;;  %v655_v28 = vmax.f32 %v623_v9, 0.0 }
  0xfc   : > { %v624_v19 = vadd.f32 %v1298_v29, %v585_v11  ;;  %v1127_v20 = vpop.f32.mrf.mxu0  ;;  %v1143_v21 = vpop.f32.mrf.mxu1  ;;  %v637_v34 = vmax.f32 %v605_v14, 0.0  ;;  %v653_v35 = vmax.f32 %v621_v15, 0.0 }
  0xfd   : > { %v606_v22 = vadd.f32 %v1298_v29, %v567_v16  ;;  %v622_v23 = vadd.f32 %v1298_v29, %v583_v17  ;;  %v572_v25 = vmul.f32 %v1127_v20, %v1291_v24  ;;  %v588_v26 = vmul.f32 %v1143_v21, %v1291_v24 }
  0xfe   : > { %v640_v30 = vmax.f32 %v608_v18, 0.0  ;;  %v656_v31 = vmax.f32 %v624_v19, 0.0  ;;  %v460_v32 = vpop.f32.mrf.mxu0  ;;  %v524_v33 = vpop.f32.mrf.mxu1 }
  0xff   : > { %v638_v36 = vmax.f32 %v606_v22, 0.0  ;;  %v654_v37 = vmax.f32 %v622_v23, 0.0  ;;  %v570_v40 = vmul.f32 %v1291_v24, %v460_v32  ;;  %v586_v41 = vmul.f32 %v1291_v24, %v524_v33 }
 0x100   : > { %v1000_v38 = vpack.c.bf16 %v640_v30, %v639_v27  ;;  %v1040_v39 = vpack.c.bf16 %v656_v31, %v655_v28  ;;  %v1128_v42 = vpop.f32.mrf.mxu0  ;;  %v1144_v43 = vpop.f32.mrf.mxu1  ;;  %v611_v46 = vadd.f32 %v1298_v29, %v572_v25  ;;  %v627_v47 = vadd.f32 %v1298_v29, %v588_v26 }
 0x101   : > { %v995_v44 = vpack.c.bf16 %v638_v36, %v637_v34  ;;  %v1035_v45 = vpack.c.bf16 %v654_v37, %v653_v35  ;;  %v573_v48 = vmul.f32 %v1128_v42, %v1291_v24  ;;  %v589_v49 = vmul.f32 %v1144_v43, %v1291_v24 }
 0x102   : > { %1064 = vst [vmem:[%s1321_s20 + $0x18] sm:$0xff] %v1000_v38   ;;  %1072 = vst [vmem:[%s1321_s20 + $0x58] sm:$0xff] %v1040_v39   ;;  %v463_v50 = vpop.f32.mrf.mxu0  ;;  %v527_v51 = vpop.f32.mrf.mxu1  ;;  %v609_v52 = vadd.f32 %v1298_v29, %v570_v40  ;;  %v625_v53 = vadd.f32 %v1298_v29, %v586_v41  ;;  %v643_v60 = vmax.f32 %v611_v46, 0.0  ;;  %v659_v61 = vmax.f32 %v627_v47, 0.0 }
 0x103   : > { %1063 = vst [vmem:[%s1321_s20 + $0x10] sm:$0xff] %v995_v44   ;;  %1071 = vst [vmem:[%s1321_s20 + $0x50] sm:$0xff] %v1035_v45   ;;  %v571_v54 = vmul.f32 %v1291_v24, %v463_v50  ;;  %v587_v55 = vmul.f32 %v1291_v24, %v527_v51  ;;  %v612_v56 = vadd.f32 %v1298_v29, %v573_v48 }
 0x104   : > { %v628_v57 = vadd.f32 %v1298_v29, %v589_v49  ;;  %v1131_v58 = vpop.f32.mrf.mxu0  ;;  %v1147_v59 = vpop.f32.mrf.mxu1  ;;  %v641_v6 = vmax.f32 %v609_v52, 0.0  ;;  %v657_v7 = vmax.f32 %v625_v53, 0.0 }
 0x105   : > { %v610_v62 = vadd.f32 %v1298_v29, %v571_v54  ;;  %v626_v63 = vadd.f32 %v1298_v29, %v587_v55  ;;  %v644_v0 = vmax.f32 %v612_v56, 0.0  ;;  %v576_v2 = vmul.f32 %v1131_v58, %v1291_v24 }
 0x106   : > { %v660_v1 = vmax.f32 %v628_v57, 0.0  ;;  %v592_v3 = vmul.f32 %v1147_v59, %v1291_v24  ;;  %v476_v4 = vpop.f32.mrf.mxu0  ;;  %v540_v5 = vpop.f32.mrf.mxu1 }
 0x107   : > { %v642_v8 = vmax.f32 %v610_v62, 0.0  ;;  %v658_v9 = vmax.f32 %v626_v63, 0.0  ;;  %v1010_v10 = vpack.c.bf16 %v644_v0, %v643_v60  ;;  %v574_v12 = vmul.f32 %v1291_v24, %v476_v4 }
 0x108   : > { %v1050_v11 = vpack.c.bf16 %v660_v1, %v659_v61  ;;  %v590_v13 = vmul.f32 %v1291_v24, %v540_v5  ;;  %v1132_v14 = vpop.f32.mrf.mxu0  ;;  %v1148_v15 = vpop.f32.mrf.mxu1  ;;  %v615_v18 = vadd.f32 %v1298_v29, %v576_v2  ;;  %v631_v19 = vadd.f32 %v1298_v29, %v592_v3 }
 0x109   : > { %v1005_v16 = vpack.c.bf16 %v642_v8, %v641_v6  ;;  %v1045_v17 = vpack.c.bf16 %v658_v9, %v657_v7  ;;  %1066 = vst [vmem:[%s1321_s20 + $0x28] sm:$0xff] %v1010_v10   ;;  %v577_v20 = vmul.f32 %v1132_v14, %v1291_v24  ;;  %v593_v21 = vmul.f32 %v1148_v15, %v1291_v24 }
 0x10a   : > { %1074 = vst [vmem:[%s1321_s20 + $0x68] sm:$0xff] %v1050_v11   ;;  %v479_v22 = vpop.f32.mrf.mxu0  ;;  %v543_v23 = vpop.f32.mrf.mxu1  ;;  %v613_v25 = vadd.f32 %v1298_v29, %v574_v12  ;;  %v629_v26 = vadd.f32 %v1298_v29, %v590_v13  ;;  %v647_v34 = vmax.f32 %v615_v18, 0.0  ;;  %v663_v35 = vmax.f32 %v631_v19, 0.0 }
 0x10b   : > { %1065 = vst [vmem:[%s1321_s20 + $0x20] sm:$0xff] %v1005_v16   ;;  %1073 = vst [vmem:[%s1321_s20 + $0x60] sm:$0xff] %v1045_v17   ;;  %v575_v27 = vmul.f32 %v1291_v24, %v479_v22  ;;  %v591_v28 = vmul.f32 %v1291_v24, %v543_v23  ;;  %v616_v30 = vadd.f32 %v1298_v29, %v577_v20 }
 0x10c   : > { %v632_v31 = vadd.f32 %v1298_v29, %v593_v21  ;;  %v645_v38 = vmax.f32 %v613_v25, 0.0  ;;  %v661_v39 = vmax.f32 %v629_v26, 0.0 }
 0x10d   : > { %v614_v32 = vadd.f32 %v1298_v29, %v575_v27  ;;  %v630_v33 = vadd.f32 %v1298_v29, %v591_v28  ;;  %v648_v36 = vmax.f32 %v616_v30, 0.0 }
 0x10e   : > { %v664_v37 = vmax.f32 %v632_v31, 0.0 }
 0x10f   : > { %v646_v40 = vmax.f32 %v614_v32, 0.0  ;;  %v662_v24 = vmax.f32 %v630_v33, 0.0  ;;  %v1020_v41 = vpack.c.bf16 %v648_v36, %v647_v34 }
 0x110   : > { %v1060_v42 = vpack.c.bf16 %v664_v37, %v663_v35 }
 0x111   : > { %v1015_v43 = vpack.c.bf16 %v646_v40, %v645_v38  ;;  %v1055_v44 = vpack.c.bf16 %v662_v24, %v661_v39  ;;  %1068 = vst [vmem:[%s1321_s20 + $0x38] sm:$0xff] %v1020_v41  }
 0x112   : > { %1076 = vst [vmem:[%s1321_s20 + $0x78] sm:$0xff] %v1060_v42  }
 0x113   : > { %1067 = vst [vmem:[%s1321_s20 + $0x30] sm:$0xff] %v1015_v43   ;;  %1075 = vst [vmem:[%s1321_s20 + $0x70] sm:$0xff] %v1055_v44  }
 0x114 PF: > { %s14_s15 = sadd.s32 1, %s1203_s15  }
 0x115   : > { %p11_p4 = scmp.ge.s32.totalorder %s14_s15, 4  }
 0x117   :  { %13 = sbr.rel (!%p11_p4) target bundleno = 1 (0x1), region = 66 }

// kernel: bottleneck3d_pallas.5
= control target key start
LH: loop header
LB: loop body
LE: loop exit
PB: predicated region body
PF: predicated region fallthrough
CT: control target
= control target key end

     0   :  { %s927_s27 = smov 0   ;;  %s1012_s0 = inlined_call_operand.vmem [shape: bf16[64,128], index: 0, kind: input, shape index: {}]   ;;  %s1013_s1 = inlined_call_operand.vmem [shape: bf16[128,128], index: 1, kind: input, shape index: {}]   ;;  %s1014_s2 = inlined_call_operand.vmem [shape: f32[1,128], index: 2, kind: input, shape index: {}]   ;;  %s1015_s3 = inlined_call_operand.vmem [shape: f32[1,128], index: 3, kind: input, shape index: {}]   ;;  %s1016_s4 = inlined_call_operand.vmem [shape: bf16[64,128], index: 4, kind: input, shape index: {}]   ;;  %s1017_s5 = inlined_call_operand.vmem [shape: bf16[128,128], index: 5, kind: input, shape index: {}]   ;;  %s1018_s6 = inlined_call_operand.vmem [shape: f32[1,128], index: 6, kind: input, shape index: {}]   ;;  %s1019_s7 = inlined_call_operand.vmem [shape: f32[1,128], index: 7, kind: input, shape index: {}]   ;;  %s1020_s8 = inlined_call_operand.vmem [shape: bf16[64,128], index: 8, kind: output, shape index: {}]  }
   0x1 LB: > { %s730_s28 = sadd.s32 4294967295, %s880_s27   ;;  %p734_p0 = scmp.ge.s32.totalorder %s880_s27, 1  ;;  %s880_s27 = sphi %s927_s27, %s18_s27  }
   0x2   : > { %p274_p1 = scmp.lt.s32.totalorder %s880_s27, 3 }
   0x4   : > { %p275_p2 = pnand %p734_p0, %p274_p1 }
   0x5   : > { %s735_s9 = sshll.u32 (!%p275_p2), %s730_s28, 2 }
   0x6   : > { %278 = sbr.rel (%p275_p2) target bundleno = 255 (0xff), region = 52  ;;  %p314_p3 = scmp.lt.s32.totalorder (!%p275_p2), %s735_s9, 7 }
   0xb   : > { %v854_v0 = vld [vmem:[%s1013_s1 + $0x38] sm:$0xff]   ;;  %v856_v2 = vld [vmem:[%s1013_s1 + $0x30] sm:$0xff]   ;;  %v858_v4 = vld [vmem:[%s1013_s1 + $0x28] sm:$0xff]   ;;  %s1022_s9 = smov (!%p314_p3, %s735_s9), 7 }
   0xc   : > { %v855_v1 = vld [vmem:[%s1017_s5 + $0x38] sm:$0xff]   ;;  %806 = vmatprep.subr.bf16.mxu0 %v854_v0  ;;  %v857_v3 = vld [vmem:[%s1017_s5 + $0x30] sm:$0xff]   ;;  %v859_v5 = vld [vmem:[%s1017_s5 + $0x28] sm:$0xff]   ;;  %s959_s24 = sshll.u32 %s1022_s9, 2 }
   0xd   : > { %826 = vmatprep.subr.bf16.mxu1 %v855_v1  ;;  %807 = vmatpush3.bf16.msra.mxu0 %v854_v0  ;;  %v860_v6 = vld [vmem:[%s1013_s1 + $0x20] sm:$0xff]   ;;  %v862_v8 = vld [vmem:[%s1013_s1 + $0x18] sm:$0xff]   ;;  %s317_s11 = scalar_lea.vmem %s1012_s0, %s959_s24  ;;  %v864_v10 = vld [vmem:[%s1013_s1 + $0x10] sm:$0xff]   ;;  %s323_s15 = scalar_lea.vmem %s1016_s4, %s959_s24 }
   0xe   : > { %827 = vmatpush3.bf16.msra.mxu1 %v855_v1  ;;  %808 = vmatprep.subr.bf16.mxu0 %v856_v2  ;;  %v861_v7 = vld [vmem:[%s1017_s5 + $0x20] sm:$0xff]   ;;  %v863_v9 = vld [vmem:[%s1017_s5 + $0x18] sm:$0xff]   ;;  %v865_v11 = vld [vmem:[%s1017_s5 + $0x10] sm:$0xff]   ;;  %s329_s16 = scalar_lea.vmem %s1020_s8, %s959_s24 }
   0xf   : > { %828 = vmatprep.subr.bf16.mxu1 %v857_v3  ;;  %v870_v12 = vld [vmem:[%s317_s11] sm:$0xff]   ;;  %v866_v14 = vld [vmem:[%s1013_s1 + $0x8] sm:$0xff]  }
  0x10   : > { %v871_v13 = vld [vmem:[%s323_s15] sm:$0xff]   ;;  %822 = vmatprep.mubr.bf16.mxu0 %v870_v12  ;;  %v867_v15 = vld [vmem:[%s1017_s5 + $0x8] sm:$0xff]  }
  0x11   : > { %809 = vmatpush3.bf16.msra.mxu0 %v856_v2  ;;  %842 = vmatprep.mubr.bf16.mxu1 %v871_v13  ;;  %v868_v16 = vld [vmem:[%s1013_s1] sm:$0xff]   ;;  %v872_v18 = vld [vmem:[%s317_s11 + $0x8] sm:$0xff]  }
  0x12   : > { %829 = vmatpush3.bf16.msra.mxu1 %v857_v3  ;;  %810 = vmatprep.subr.bf16.mxu0 %v858_v4  ;;  %v869_v17 = vld [vmem:[%s1017_s5] sm:$0xff]   ;;  %v873_v19 = vld [vmem:[%s323_s15 + $0x8] sm:$0xff]  }
  0x13   : > { %830 = vmatprep.subr.bf16.mxu1 %v859_v5  ;;  %v751_v21 = vld [vmem:[%s1014_s2] ss:$0 sm:$0xff] }
  0x14   : > { %v763_v22 = vld [vmem:[%s1018_s6] ss:$0 sm:$0xff] }
  0x15   : > { %811 = vmatpush3.bf16.msra.mxu0 %v858_v4  ;;  %v752_v29 = vld [vmem:[%s1015_s3] ss:$0 sm:$0xff] }
  0x16   : > { %831 = vmatpush3.bf16.msra.mxu1 %v859_v5  ;;  %812 = vmatprep.subr.bf16.mxu0 %v860_v6  ;;  %v764_v30 = vld [vmem:[%s1019_s7] ss:$0 sm:$0xff] }
  0x17   : > { %832 = vmatprep.subr.bf16.mxu1 %v861_v7 }
  0x19   : > { %813 = vmatpush3.bf16.msra.mxu0 %v860_v6 }
  0x1a   : > { %833 = vmatpush3.bf16.msra.mxu1 %v861_v7  ;;  %814 = vmatprep.subr.bf16.mxu0 %v862_v8 }
  0x1b   : > { %834 = vmatprep.subr.bf16.mxu1 %v863_v9 }
  0x1d   : > { %815 = vmatpush3.bf16.msra.mxu0 %v862_v8 }
  0x1e   : > { %835 = vmatpush3.bf16.msra.mxu1 %v863_v9  ;;  %816 = vmatprep.subr.bf16.mxu0 %v864_v10 }
  0x1f   : > { %836 = vmatprep.subr.bf16.mxu1 %v865_v11 }
  0x21   : > { %817 = vmatpush3.bf16.msra.mxu0 %v864_v10 }
  0x22   : > { %837 = vmatpush3.bf16.msra.mxu1 %v865_v11  ;;  %818 = vmatprep.subr.bf16.mxu0 %v866_v14 }
  0x23   : > { %838 = vmatprep.subr.bf16.mxu1 %v867_v15 }
  0x25   : > { %819 = vmatpush3.bf16.msra.mxu0 %v866_v14 }
  0x26   : > { %839 = vmatpush3.bf16.msra.mxu1 %v867_v15  ;;  %820 = vmatprep.subr.bf16.mxu0 %v868_v16 }
  0x27   : > { %840 = vmatprep.subr.bf16.mxu1 %v869_v17 }
  0x29   : > { %821 = vmatpush3.bf16.msra.mxu0 %v868_v16 }
  0x2a   : > { %841 = vmatpush3.bf16.msra.mxu1 %v869_v17 }
  0x2c   : > { %823 = vmatmul.mubr.bf16.vlgmr.msra.gmra.mxu0 %v872_v18 }
  0x2d   : > { %843 = vmatmul.mubr.bf16.vlgmr.msra.gmra.mxu1 %v873_v19 }
  0xec   : > { %v824_v20 = vpop.f32.mrf.mxu0 }
  0xed   : > { %v844_v23 = vpop.f32.mrf.mxu1  ;;  %v470_v25 = vmul.f32 %v824_v20, %v751_v21 }
  0xee   : > { %v446_v24 = vpop.f32.mrf.mxu0  ;;  %v621_v26 = vmul.f32 %v844_v23, %v763_v22 }
  0xef   : > { %v468_v27 = vmul.f32 %v751_v21, %v446_v24  ;;  %v597_v28 = vpop.f32.mrf.mxu1  ;;  %v481_v39 = vadd.f32 %v752_v29, %v470_v25 }
  0xf0   : > { %v619_v31 = vmul.f32 %v763_v22, %v597_v28  ;;  %v825_v32 = vpop.f32.mrf.mxu0  ;;  %v632_v40 = vadd.f32 %v764_v30, %v621_v26 }
  0xf1   : > { %v471_v33 = vmul.f32 %v825_v32, %v751_v21  ;;  %v845_v34 = vpop.f32.mrf.mxu1  ;;  %v479_v35 = vadd.f32 %v752_v29, %v468_v27 }
  0xf2   : > { %v630_v36 = vadd.f32 %v764_v30, %v619_v31  ;;  %v622_v37 = vmul.f32 %v845_v34, %v763_v22  ;;  %v449_v38 = vpop.f32.mrf.mxu0  ;;  %v636_v50 = vadd.f32 %v632_v40, %v481_v39 }
  0xf3   : > { %v482_v41 = vadd.f32 %v752_v29, %v471_v33  ;;  %v469_v42 = vmul.f32 %v751_v21, %v449_v38  ;;  %v600_v43 = vpop.f32.mrf.mxu1 }
  0xf4   : > { %v633_v44 = vadd.f32 %v764_v30, %v622_v37  ;;  %v620_v45 = vmul.f32 %v763_v22, %v600_v43  ;;  %v634_v47 = vadd.f32 %v630_v36, %v479_v35  ;;  %v640_v55 = vmax.f32 %v636_v50, 0.0 }
  0xf5   : > { %v480_v46 = vadd.f32 %v752_v29, %v469_v42 }
  0xf6   : > { %v637_v48 = vadd.f32 %v633_v44, %v482_v41  ;;  %v631_v49 = vadd.f32 %v764_v30, %v620_v45  ;;  %v638_v53 = vmax.f32 %v634_v47, 0.0 }
  0xf8   : > { %v635_v51 = vadd.f32 %v631_v49, %v480_v46  ;;  %v641_v52 = vmax.f32 %v637_v48, 0.0 }
  0xfa   : > { %v639_v54 = vmax.f32 %v635_v51, 0.0  ;;  %v783_v57 = vpack.c.bf16 %v641_v52, %v640_v55 }
  0xfc   : > { %v778_v56 = vpack.c.bf16 %v639_v54, %v638_v53  ;;  %785 = vst [vmem:[%s329_s16 + $0x8] sm:$0xff] %v783_v57  }
  0xfe   : > { %779 = vst [vmem:[%s329_s16] sm:$0xff] %v778_v56  }
  0xff PF: > { %s18_s27 = sadd.s32 1, %s880_s27  }
 0x100   : > { %p15_p4 = scmp.ge.s32.totalorder %s18_s27, 4  }
 0x102   :  { %17 = sbr.rel (!%p15_p4) target bundleno = 1 (0x1), region = 85 }

// kernel: bottleneck3d_pallas.4
= control target key start
LH: loop header
LB: loop body
LE: loop exit
PB: predicated region body
PF: predicated region fallthrough
CT: control target
= control target key end

     0   :  { %s6961_s15 = smov 0   ;;  %s6963_s16 = smov 0   ;;  %s8203_s0 = inlined_call_operand.vmem [shape: bf16[2,120,5,128], index: 0, kind: input, shape index: {}]   ;;  %s8204_s1 = inlined_call_operand.vmem [shape: bf16[27,128,128], index: 1, kind: input, shape index: {}]   ;;  %s8205_s2 = inlined_call_operand.vmem [shape: f32[1,128], index: 2, kind: input, shape index: {}]   ;;  %s8206_s3 = inlined_call_operand.vmem [shape: f32[1,128], index: 3, kind: input, shape index: {}]   ;;  %s8207_s4 = inlined_call_operand.vmem [shape: bf16[2,2,16,128], index: 4, kind: output, shape index: {}]  }
   0x1   :  { %s6965_s17 = smov 0   ;;  %s6967_s18 = smov 0  }
   0x2   :  { %s6969_s19 = smov 0  }
   0x3 LB: > { %s29_s20 = sadd.s32 1, %s6923_s17  ;;  %s33_s21 = sadd.s32 1, %s6927_s18  ;;  %s6931_s19 = sphi %s6969_s19, %s14_s19   ;;  %s6927_s18 = sphi %s6967_s18, %s8217_s18   ;;  %s6923_s17 = sphi %s6965_s17, %s8216_s17   ;;  %s6919_s16 = sphi %s6963_s16, %s8215_s16   ;;  %s6915_s15 = sphi %s6961_s15, %s8214_s15  }
   0x4   : > { %p31_p0 = scmp.ge.s32.totalorder %s29_s20, 2  ;;  %p4973_p1 = scmp.ge.s32.totalorder %s6931_s19, 1 }
   0x5   : > { %p185_p2 = scmp.lt.s32.totalorder %s6931_s19, 5 }
   0x6   : > { %s8219_s20 = smov (%p31_p0, %s29_s20), 0  ;;  %s8221_s21 = smov (!%p31_p0, %s33_s21), %s6927_s18 }
   0x7   : > { %p186_p3 = pnand %p4973_p1, %p185_p2  ;;  %p35_p4 = scmp.ge.s32.totalorder %s8221_s21, 2 }
   0x8   : > { %p219_p5 = scmp.lt.s32.totalorder (!%p186_p3), %s6919_s16, 1  ;;  %s5770_s13 = smul.u32 (!%p186_p3), 20, %s6915_s15 }
   0x9   : > { %s8223_s21 = smov (%p35_p4, %s8221_s21), 0  ;;  %189 = sbr.rel (%p186_p3) target bundleno = 671 (0x29f), region = 36 }
   0xa   : > { %p227_p6 = scmp.lt.s32.totalorder (!%p186_p3), %s6915_s15, 1 }
   0xe   : > { %v6605_v0 = vld [vmem:[%s8204_s1 + $0x78] sm:$0xff]   ;;  %v6933_v1 = vmov 0.0   ;;  %v6607_v3 = vld [vmem:[%s8204_s1 + $0x70] sm:$0xff]   ;;  %vm6934_vm0 = vmmov 0   ;;  %s8225_s16 = smov (!%p219_p5, %s6919_s16), 1  ;;  %v6609_v5 = vld [vmem:[%s8204_s1 + $0x68] sm:$0xff]   ;;  %v299_v9 = vlaneseq }
   0xf   : > { %6021 = vmatprep.subr.bf16.mxu0 %v6933_v1  ;;  %6041 = vmatprep.subr.bf16.mxu1 %v6933_v1  ;;  %v6606_v2 = vld [vmem:[%s8204_s1 + $0x38] sm:$0xff]   ;;  %v6608_v4 = vld [vmem:[%s8204_s1 + $0x30] sm:$0xff]   ;;  %v6610_v6 = vld [vmem:[%s8204_s1 + $0x28] sm:$0xff]   ;;  %s6561_s8 = smul.u32 480, %s8225_s16  ;;  %v6935_v16 = vmov 1983009808  }
  0x10   : > { %6022 = vmatpush3.bf16.msra.mxu0 %v6605_v0  ;;  %6037 = vmatprep.mubr.msk.bf16.mxu0 %vm6934_vm0, %v6933_v1  ;;  %v6611_v7 = vld [vmem:[%s8204_s1 + $0x60] sm:$0xff]   ;;  %v6613_v10 = vld [vmem:[%s8204_s1 + $0x58] sm:$0xff]   ;;  %v6615_v12 = vld [vmem:[%s8204_s1 + $0x50] sm:$0xff]   ;;  %v300_v14 = vshrl.u32 %v299_v9, 7  ;;  %v297_v17 = vunpack.c.l.s4 %v6935_v16  ;;  %vm552_vm1 = vsmask.f32 1280 }
  0x11   : > { %6042 = vmatpush3.bf16.msra.mxu1 %v6606_v2  ;;  %6023 = vmatprep.subr.bf16.mxu0 %v6933_v1  ;;  %v6612_v8 = vld [vmem:[%s8204_s1 + $0x20] sm:$0xff]   ;;  %s223_s23 = scalar_lea.vmem %s8203_s0, %s6561_s8  ;;  %v6614_v11 = vld [vmem:[%s8204_s1 + $0x18] sm:$0xff]   ;;  %v6616_v13 = vld [vmem:[%s8204_s1 + $0x10] sm:$0xff]   ;;  %vm553_vm2 = vsmask.f32 3336  ;;  %s8227_s15 = smov (!%p227_p6, %s6915_s15), 1 }
  0x12   : > { %6043 = vmatprep.subr.bf16.mxu1 %v6933_v1  ;;  %6057 = vmatprep.mubr.msk.bf16.mxu1 %vm6934_vm0, %v6933_v1  ;;  %s7047_s28 = scalar_lea.vmem %s223_s23, %s5770_s13  ;;  %v6617_v18 = vld [vmem:[%s8204_s1 + $0x48] sm:$0xff]   ;;  %v298_v20 = vunpack.c.0.s8 %v297_v17  ;;  %v6619_v25 = vld [vmem:[%s8204_s1 + $0x40] sm:$0xff]   ;;  %v6625_v29 = vld [vmem:[%s8204_s1 + $0xb8] sm:$0xff]   ;;  %vm555_vm3 = vsmask.f32 5392  ;;  %s4975_s27 = sshll.u32 %s8227_s15, 1 }
  0x13   : > { %v6857_v15 = vld.sshfl [vmem:[%s7047_s28 + $0x3c] sm:$0xf pattern:$0x76325410]  ;;  %v6618_v23 = vld [vmem:[%s8204_s1 + $0x8] sm:$0xff]   ;;  %v6627_v31 = vld [vmem:[%s8204_s1 + $0xb0] sm:$0xff]  }
  0x14   : > { %6024 = vmatpush3.bf16.msra.mxu0 %v6607_v3  ;;  %v6858_v19 = vld.sshfl [vmem:[%s7047_s28 + $0x44] sm:$0xf pattern:$0x76325410]  ;;  %v7069_v24 = vsub.s32 %v298_v20, %v300_v14  ;;  %v6626_v30 = vld [vmem:[%s8204_s1 + $0xf8] sm:$0xff]   ;;  %v6628_v32 = vld [vmem:[%s8204_s1 + $0xf0] sm:$0xff]  }
  0x15   : > { %6044 = vmatpush3.bf16.msra.mxu1 %v6608_v4  ;;  %6025 = vmatprep.subr.bf16.mxu0 %v6933_v1  ;;  %v6859_v21 = vld.sshfl [vmem:[%s7047_s28] sm:$0xf pattern:$0x76325410]  ;;  %v310_v27 = vcombine.low %v6857_v15, %v6858_v19  ;;  %v6629_v33 = vld [vmem:[%s8204_s1 + $0xa8] sm:$0xff]   ;;  %vm7116_vm5 = vmor %vm552_vm1, %vm553_vm2  ;;  %s4976_s29 = sshll.u32 %s8225_s16, 2 }
  0x16   : > { %6045 = vmatprep.subr.bf16.mxu1 %v6933_v1  ;;  %v6860_v22 = vld.sshfl [vmem:[%s7047_s28 + $0x8] sm:$0xf pattern:$0x76325410]  ;;  %v6620_v26 = vld [vmem:[%s8204_s1] sm:$0xff]   ;;  %vm7128_vm6 = vmor %vm7116_vm5, %vm555_vm3  ;;  %s234_s6 = sadd.s32 %s4976_s29, %s4975_s27 }
  0x17   : > { %v421_v28 = vcombine.low %v6859_v21, %v6860_v22  ;;  %v5016_v34 = vld.sshfl [vmem:[%s7047_s28] sm:$0x13 pattern:$0x76325410]  ;;  %v6630_v35 = vld [vmem:[%s8204_s1 + $0xe8] sm:$0xff]   ;;  %v6636_v22 = vld [vmem:[%s8204_s1 + $0xd0] sm:$0xff]  }
  0x18   : > { %6026 = vmatpush3.bf16.msra.mxu0 %v6609_v5  ;;  %v5017_v36 = vld.sshfl [vmem:[%s7047_s28 + $0x4] sm:$0x13 pattern:$0x76325410]  ;;  %v527_v37 = vcombine.high %v5016_v34, %v5016_v34  ;;  %vm557_vm4 = vsmask.f32 7448 }
  0x19   : > { %6046 = vmatpush3.bf16.msra.mxu1 %v6610_v6  ;;  %6027 = vmatprep.subr.bf16.mxu0 %v6933_v1  ;;  %v5018_v38 = vld.sshfl [vmem:[%s7047_s28 + $0x8] sm:$0x13 pattern:$0x76325410]  ;;  %v535_v39 = vcombine.high %v5017_v36, %v5017_v36  ;;  %v6631_v42 = vld [vmem:[%s8204_s1 + $0xa0] sm:$0xff]   ;;  %v560_v44 = vshrl.u32 %v5016_v34, 16  ;;  %vm7142_vm7 = vmor %vm7128_vm6, %vm557_vm4 }
  0x1a   : > { %6047 = vmatprep.subr.bf16.mxu1 %v6933_v1  ;;  %v5019_v40 = vld.sshfl [vmem:[%s7047_s28 + $0xc] sm:$0x13 pattern:$0x76325410]  ;;  %v543_v41 = vcombine.high %v5018_v38, %v5018_v38  ;;  %v563_v45 = vshll.u32 %v5016_v34, 16  ;;  %v569_v47 = vshll.u32 %v527_v37, 16 }
  0x1b   : > { %v551_v43 = vcombine.high %v5019_v40, %v5019_v40  ;;  %v574_v48 = vshrl.u32 %v5017_v36, 16  ;;  %v577_v49 = vshll.u32 %v5017_v36, 16  ;;  %v583_v50 = vshll.u32 %v535_v39, 16  ;;  %v6632_v55 = vld [vmem:[%s8204_s1 + $0xe0] sm:$0xff]   ;;  %v6633_v5 = vld [vmem:[%s8204_s1 + $0x98] sm:$0xff]  }
  0x1c   : > { %6028 = vmatpush3.bf16.msra.mxu0 %v6611_v7  ;;  %v562_v51 = vrot.slane %v560_v44, 6  ;;  %v565_v52 = vrot.slane %v563_v45, 7  ;;  %v588_v53 = vshrl.u32 %v5018_v38, 16  ;;  %v591_v54 = vshll.u32 %v5018_v38, 16  ;;  %v6640_v36 = vld [vmem:[%s8204_s1 + $0xc0] sm:$0xff]   ;;  %v6641_v38 = vld [vmem:[%s8204_s1 + $0x138] sm:$0xff]  }
  0x1d   : > { %6048 = vmatpush3.bf16.msra.mxu1 %v6612_v8  ;;  %6029 = vmatprep.subr.bf16.mxu0 %v6933_v1  ;;  %v571_v56 = vrot.slane %v569_v47, 7  ;;  %v576_v57 = vrot.slane %v574_v48, 6  ;;  %v579_v58 = vrot.slane %v577_v49, 7  ;;  %v597_v63 = vshll.u32 %v543_v41, 16  ;;  %v6645_v41 = vld [vmem:[%s8204_s1 + $0x130] sm:$0xff]  }
  0x1e   : > { %6049 = vmatprep.subr.bf16.mxu1 %v6933_v1  ;;  %v566_v60 = vor.u32 %v565_v52, %v562_v51  ;;  %v590_v61 = vrot.slane %v588_v53, 6  ;;  %v593_v62 = vrot.slane %v591_v54, 7  ;;  %v602_v2 = vshrl.u32 %v5019_v40, 16 }
  0x1f   : > { %v580_v0 = vor.u32 %v579_v58, %v576_v57  ;;  %v605_v3 = vshll.u32 %v5019_v40, 16  ;;  %v611_v4 = vshll.u32 %v551_v43, 16  ;;  %v585_v7 = vrot.slane %v583_v50, 7  ;;  %v6644_v40 = vld [vmem:[%s8204_s1 + $0x178] sm:$0xff]   ;;  %v6647_v57 = vld [vmem:[%s8204_s1 + $0x128] sm:$0xff]  }
  0x20   : > { %6030 = vmatpush3.bf16.msra.mxu0 %v6613_v10  ;;  %v567_v6 = vrot.slane %v566_v60, 2  ;;  %v594_v8 = vor.u32 %v593_v62, %v590_v61  ;;  %v599_v9 = vrot.slane %v597_v63, 7  ;;  %v6634_v10 = vld [vmem:[%s8204_s1 + $0xd8] sm:$0xff]   ;;  %v6648_v61 = vld [vmem:[%s8204_s1 + $0x168] sm:$0xff]  }
  0x21   : > { %6050 = vmatpush3.bf16.msra.mxu1 %v6614_v11  ;;  %6031 = vmatprep.subr.bf16.mxu0 %v6933_v1  ;;  %v607_v14 = vrot.slane %v605_v3, 7  ;;  %v613_v16 = vrot.slane %v611_v4, 7  ;;  %v5106_v43 = vld.sshfl [vmem:[%s7047_s28 + $0x78] sm:$0x13 pattern:$0x76325410] }
  0x22   : > { %6051 = vmatprep.subr.bf16.mxu1 %v6933_v1  ;;  %v595_v15 = vrot.slane %v594_v8, 2  ;;  %v572_v19 = vsel %vm7142_vm7, %v567_v6, %v571_v56  ;;  %v5107_v44 = vld.sshfl [vmem:[%s7047_s28 + $0x7c] sm:$0x13 pattern:$0x76325410]  ;;  %v1060_v45 = vshrl.u32 %v5106_v43, 16  ;;  %v1034_v51 = vcombine.high %v5106_v43, %v5106_v43 }
  0x23   : > { %v1063_v46 = vshll.u32 %v5106_v43, 16  ;;  %v5108_v47 = vld.sshfl [vmem:[%s7047_s28 + $0x80] sm:$0x13 pattern:$0x76325410]  ;;  %v1074_v48 = vshrl.u32 %v5107_v44, 16  ;;  %v1042_v54 = vcombine.high %v5107_v44, %v5107_v44 }
  0x24   : > { %6032 = vmatpush3.bf16.msra.mxu0 %v6615_v12  ;;  %v581_v12 = vrot.slane %v580_v0, 2  ;;  %v7158_v21 = vsel %vm7142_vm7, %v595_v15, %v599_v9  ;;  %v1077_v49 = vshll.u32 %v5107_v44, 16  ;;  %v5109_v50 = vld.sshfl [vmem:[%s7047_s28 + $0x84] sm:$0x13 pattern:$0x76325410]  ;;  %v1050_v58 = vcombine.high %v5108_v47, %v5108_v47 }
  0x25   : > { %6052 = vmatpush3.bf16.msra.mxu1 %v6616_v13  ;;  %6033 = vmatprep.subr.bf16.mxu0 %v6933_v1  ;;  %v604_v13 = vrot.slane %v602_v2, 6  ;;  %v1062_v52 = vrot.slane %v1060_v45, 6  ;;  %v1065_v53 = vrot.slane %v1063_v46, 7  ;;  %v1088_v59 = vshrl.u32 %v5108_v47, 16  ;;  %v6656_v43 = vld [vmem:[%s8204_s1 + $0x148] sm:$0xff]   ;;  %v6657_v44 = vld [vmem:[%s8204_s1 + $0x100] sm:$0xff]  }
  0x26   : > { %6053 = vmatprep.subr.bf16.mxu1 %v6933_v1  ;;  %v7154_v20 = vsel %vm7142_vm7, %v581_v12, %v585_v7  ;;  %v1079_v56 = vrot.slane %v1077_v49, 7  ;;  %v1091_v60 = vshll.u32 %v5108_v47, 16  ;;  %v1058_v62 = vcombine.high %v5109_v50, %v5109_v50  ;;  %v6658_v47 = vld [vmem:[%s8204_s1 + $0x140] sm:$0xff]   ;;  %v6661_v49 = vld [vmem:[%s8204_s1 + $0x1b8] sm:$0xff]  }
  0x27   : > { %v608_v17 = vor.u32 %v607_v14, %v604_v13  ;;  %v1102_v63 = vshrl.u32 %v5109_v50, 16  ;;  %v1066_v0 = vor.u32 %v1065_v53, %v1062_v52  ;;  %v1069_v2 = vshll.u32 %v1034_v51, 16  ;;  %v6662_v51 = vld [vmem:[%s8204_s1 + $0x1f8] sm:$0xff]   ;;  %v6663_v52 = vld [vmem:[%s8204_s1 + $0x1b0] sm:$0xff]   ;;  %v6856_v11 = vld [vmem:[%s8204_s1 + $0x680] sm:$0xff]  }
  0x28   : > { %6034 = vmatpush3.bf16.msra.mxu0 %v6617_v18  ;;  %v6635_v18 = vld [vmem:[%s8204_s1 + $0x90] sm:$0xff]   ;;  %v1090_v3 = vrot.slane %v1088_v59, 6  ;;  %v1093_v4 = vrot.slane %v1091_v60, 7  ;;  %v1083_v7 = vshll.u32 %v1042_v54, 16  ;;  %v1105_v9 = vshll.u32 %v5109_v50, 16  ;;  %v6665_v54 = vld [vmem:[%s8204_s1 + $0x1a8] sm:$0xff]  }
  0x29   : > { %6054 = vmatpush3.bf16.msra.mxu1 %v6618_v23  ;;  %6035 = vmatprep.subr.bf16.mxu0 %v6933_v1  ;;  %v609_v23 = vrot.slane %v608_v17, 2  ;;  %v1104_v8 = vrot.slane %v1102_v63, 6  ;;  %v1097_v13 = vshll.u32 %v1050_v58, 16  ;;  %v1111_v15 = vshll.u32 %v1058_v62, 16  ;;  %v6664_v53 = vld [vmem:[%s8204_s1 + $0x1f0] sm:$0xff]  }
  0x2a   : > { %6055 = vmatprep.subr.bf16.mxu1 %v6933_v1  ;;  %v1094_v12 = vor.u32 %v1093_v4, %v1090_v3  ;;  %v1107_v14 = vrot.slane %v1105_v9, 7  ;;  %v1067_v17 = vrot.slane %v1066_v0, 2  ;;  %v5199_v58 = vld.sshfl [vmem:[%s7047_s28 + $0x10] sm:$0x13 pattern:$0x76325410] }
  0x2b   : > { %v1554_v59 = vcombine.high %v5199_v58, %v5199_v58  ;;  %v1598_v60 = vshrl.u32 %v5199_v58, 16  ;;  %v6670_v3 = vld [vmem:[%s8204_s1 + $0x1d8] sm:$0xff]   ;;  %v6865_v9 = vld.sshfl [vmem:[%s7047_s28 + $0x4] sm:$0xf pattern:$0x76325410] }
  0x2c   : > { %6036 = vmatpush3.bf16.msra.mxu0 %v6619_v25  ;;  %v1628_v25 = vcombine.low %v7154_v20, %v7158_v21 }
  0x2d   : > { %6056 = vmatpush3.bf16.msra.mxu1 %v6620_v26  ;;  %6061 = vmatprep.subr.bf16.mxu0 %v6933_v1  ;;  %v6637_v26 = vld [vmem:[%s8204_s1 + $0x88] sm:$0xff]   ;;  %v1600_v62 = vrot.slane %v1598_v60, 6  ;;  %v1607_v0 = vshll.u32 %v1554_v59, 16 }
  0x2e   : > { %6081 = vmatprep.subr.bf16.mxu1 %v6933_v1 }
  0x2f   : > { %6038 = vmatmul.mubr.bf16.vlgmr.msra.gmra.mxu0 %v310_v27  ;;  %v7172_v27 = vsel %vm7142_vm7, %v609_v23, %v613_v16  ;;  %v6651_v16 = vld [vmem:[%s8204_s1 + $0x118] sm:$0xff]   ;;  %v1085_v23 = vrot.slane %v1083_v7, 7 }
  0x30   : > { %6058 = vmatmul.mubr.bf16.vlgmr.msra.gmra.mxu1 %v421_v28  ;;  %6062 = vmatpush3.bf16.msra.mxu0 %v6625_v29  ;;  %v632_v28 = vcombine.low %v572_v19, %v7154_v20  ;;  %v6861_v29 = vld.sshfl [vmem:[%s7047_s28 + $0x78] sm:$0xf pattern:$0x76325410] }
  0x31   : > { %6082 = vmatpush3.bf16.msra.mxu1 %v6626_v30  ;;  %6063 = vmatprep.subr.bf16.mxu0 %v6933_v1  ;;  %v633_v30 = vcombine.low %v7158_v21, %v7172_v27  ;;  %v6652_v19 = vld [vmem:[%s8204_s1 + $0x158] sm:$0xff]   ;;  %v6675_v21 = vld [vmem:[%s8204_s1 + $0x180] sm:$0xff]  }
  0x32   : > { %6083 = vmatprep.subr.bf16.mxu1 %v6933_v1  ;;  %6077 = vmatprep.mubr.msk.bf16.mxu0 %vm6934_vm0, %v6933_v1 }
  0x33   : > { %6097 = vmatprep.mubr.msk.bf16.mxu1 %vm6934_vm0, %v6933_v1  ;;  %v647_v34 = vrot.slane %v633_v30, %v7069_v24 }
  0x34   : > { %6064 = vmatpush3.bf16.msra.mxu0 %v6627_v31  ;;  %v6862_v31 = vld.sshfl [vmem:[%s7047_s28 + $0x80] sm:$0xf pattern:$0x76325410] }
  0x35   : > { %6084 = vmatpush3.bf16.msra.mxu1 %v6628_v32  ;;  %6065 = vmatprep.subr.bf16.mxu0 %v6933_v1  ;;  %v6638_v32 = vld [vmem:[%s8204_s1 + $0xc8] sm:$0xff]   ;;  %v787_v39 = vcombine.low %v6861_v29, %v6862_v31  ;;  %v1099_v29 = vrot.slane %v1097_v13, 7  ;;  %v1113_v31 = vrot.slane %v1111_v15, 7  ;;  %v7343_v15 = vrot.slane %v1628_v25, %v7069_v24  ;;  %v6676_v25 = vld [vmem:[%s8204_s1 + $0x1c0] sm:$0xff]  }
  0x36   : > { %6085 = vmatprep.subr.bf16.mxu1 %v6933_v1  ;;  %v6866_v13 = vld.sshfl [vmem:[%s7047_s28 + $0xc] sm:$0xf pattern:$0x76325410] }
  0x38   : > { %6066 = vmatpush3.bf16.msra.mxu0 %v6629_v33  ;;  %v640_v33 = vrot.slane %v632_v28, %v7069_v24  ;;  %v1095_v28 = vrot.slane %v1094_v12, 2  ;;  %v6673_v12 = vld [vmem:[%s8204_s1 + $0x188] sm:$0xff]  }
  0x39   : > { %6086 = vmatpush3.bf16.msra.mxu1 %v6630_v35  ;;  %6067 = vmatprep.subr.bf16.mxu0 %v6933_v1  ;;  %v6639_v35 = vld [vmem:[%s8204_s1 + $0x80] sm:$0xff]  }
  0x3a   : > { %6087 = vmatprep.subr.bf16.mxu1 %v6933_v1  ;;  %v648_v37 = vcombine.low %v640_v33, %v647_v34  ;;  %v6654_v34 = vld [vmem:[%s8204_s1 + $0x150] sm:$0xff]  }
  0x3c   : > { %6068 = vmatpush3.bf16.msra.mxu0 %v6631_v42  ;;  %v6646_v42 = vld [vmem:[%s8204_s1 + $0x170] sm:$0xff]  }
  0x3d   : > { %6088 = vmatpush3.bf16.msra.mxu1 %v6632_v55  ;;  %6069 = vmatprep.subr.bf16.mxu0 %v6933_v1  ;;  %v1076_v55 = vrot.slane %v1074_v48, 6 }
  0x3e   : > { %6089 = vmatprep.subr.bf16.mxu1 %v6933_v1 }
  0x3f   : > { %v1080_v6 = vor.u32 %v1079_v56, %v1076_v55  ;;  %v6666_v55 = vld [vmem:[%s8204_s1 + $0x1e8] sm:$0xff]   ;;  %v6667_v56 = vld [vmem:[%s8204_s1 + $0x1a0] sm:$0xff]  }
  0x40   : > { %6070 = vmatpush3.bf16.msra.mxu0 %v6633_v5  ;;  %v6649_v5 = vld [vmem:[%s8204_s1 + $0x120] sm:$0xff]  }
  0x41   : > { %6090 = vmatpush3.bf16.msra.mxu1 %v6634_v10  ;;  %6071 = vmatprep.subr.bf16.mxu0 %v6933_v1  ;;  %v6650_v10 = vld [vmem:[%s8204_s1 + $0x160] sm:$0xff]  }
  0x42   : > { %6091 = vmatprep.subr.bf16.mxu1 %v6933_v1 }
  0x44   : > { %6072 = vmatpush3.bf16.msra.mxu0 %v6635_v18  ;;  %v1071_v18 = vrot.slane %v1069_v2, 7  ;;  %v6669_v2 = vld [vmem:[%s8204_s1 + $0x198] sm:$0xff]  }
  0x45   : > { %6092 = vmatpush3.bf16.msra.mxu1 %v6636_v22  ;;  %6073 = vmatprep.subr.bf16.mxu0 %v6933_v1  ;;  %v1081_v22 = vrot.slane %v1080_v6, 2  ;;  %v6671_v6 = vld [vmem:[%s8204_s1 + $0x190] sm:$0xff]  }
  0x46   : > { %6093 = vmatprep.subr.bf16.mxu1 %v6933_v1  ;;  %v1072_v33 = vsel %vm7142_vm7, %v1067_v17, %v1071_v18  ;;  %v6868_v17 = vld.sshfl [vmem:[%s7047_s28 + $0x48] sm:$0xf pattern:$0x76325410] }
  0x48   : > { %6074 = vmatpush3.bf16.msra.mxu0 %v6637_v26  ;;  %v1108_v26 = vor.u32 %v1107_v14, %v1104_v8  ;;  %v6672_v8 = vld [vmem:[%s8204_s1 + $0x1d0] sm:$0xff]  }
  0x49   : > { %6094 = vmatpush3.bf16.msra.mxu1 %v6638_v32  ;;  %6075 = vmatprep.subr.bf16.mxu0 %v6933_v1  ;;  %v6653_v32 = vld [vmem:[%s8204_s1 + $0x110] sm:$0xff]  }
  0x4a   : > { %6095 = vmatprep.subr.bf16.mxu1 %v6933_v1  ;;  %v1109_v30 = vrot.slane %v1108_v26, 2  ;;  %v6682_v26 = vld [vmem:[%s8204_s1 + $0x278] sm:$0xff]  }
  0x4c   : > { %6076 = vmatpush3.bf16.msra.mxu0 %v6639_v35  ;;  %v1086_v35 = vsel %vm7142_vm7, %v1081_v22, %v1085_v23  ;;  %v6679_v22 = vld [vmem:[%s8204_s1 + $0x238] sm:$0xff]  }
  0x4d   : > { %6096 = vmatpush3.bf16.msra.mxu1 %v6640_v36  ;;  %6101 = vmatprep.subr.bf16.mxu0 %v6933_v1  ;;  %v1100_v36 = vsel %vm7142_vm7, %v1095_v28, %v1099_v29  ;;  %v6683_v28 = vld [vmem:[%s8204_s1 + $0x230] sm:$0xff]  }
  0x4e   : > { %6121 = vmatprep.subr.bf16.mxu1 %v6933_v1  ;;  %v6684_v29 = vld [vmem:[%s8204_s1 + $0x270] sm:$0xff]  }
  0x4f   : > { %6078 = vmatmul.mubr.bf16.vlgmr.msra.gmra.mxu0 %v648_v37  ;;  %v1114_v37 = vsel %vm7142_vm7, %v1109_v30, %v1113_v31  ;;  %v6685_v30 = vld [vmem:[%s8204_s1 + $0x228] sm:$0xff]  }
  0x50   : > { %6102 = vmatpush3.bf16.msra.mxu0 %v6641_v38  ;;  %6098 = vmatmul.mubr.bf16.vlgmr.msra.gmra.mxu1 %v787_v39  ;;  %v6863_v38 = vld.sshfl [vmem:[%s7047_s28 + $0xb4] sm:$0xf pattern:$0x76325410]  ;;  %v6686_v31 = vld [vmem:[%s8204_s1 + $0x268] sm:$0xff]  }
  0x51   : > { %6122 = vmatpush3.bf16.msra.mxu1 %v6644_v40  ;;  %6103 = vmatprep.subr.bf16.mxu0 %v6933_v1  ;;  %v6864_v39 = vld.sshfl [vmem:[%s7047_s28 + $0xbc] sm:$0xf pattern:$0x76325410]  ;;  %v6655_v40 = vld [vmem:[%s8204_s1 + $0x108] sm:$0xff]  }
  0x52   : > { %6123 = vmatprep.subr.bf16.mxu1 %v6933_v1  ;;  %6117 = vmatprep.mubr.msk.bf16.mxu0 %vm6934_vm0, %v6933_v1  ;;  %v926_v48 = vcombine.low %v6863_v38, %v6864_v39 }
  0x53   : > { %6137 = vmatprep.mubr.msk.bf16.mxu1 %vm6934_vm0, %v6933_v1 }
  0x54   : > { %6104 = vmatpush3.bf16.msra.mxu0 %v6645_v41  ;;  %v1132_v41 = vcombine.low %v1072_v33, %v1086_v35  ;;  %v5288_v33 = vld.sshfl [vmem:[%s7047_s28 + $0xf8] sm:$0x13 pattern:$0x76325410]  ;;  %v6688_v35 = vld [vmem:[%s8204_s1 + $0x260] sm:$0xff]  }
  0x55   : > { %6124 = vmatpush3.bf16.msra.mxu1 %v6646_v42  ;;  %6105 = vmatprep.subr.bf16.mxu0 %v6933_v1  ;;  %v1133_v42 = vcombine.low %v1100_v36, %v1114_v37  ;;  %v2084_v38 = vshrl.u32 %v5288_v33, 16  ;;  %v2087_v39 = vshll.u32 %v5288_v33, 16 }
  0x56   : > { %6125 = vmatprep.subr.bf16.mxu1 %v6933_v1  ;;  %v1140_v45 = vrot.slane %v1132_v41, %v7069_v24  ;;  %v6690_v41 = vld [vmem:[%s8204_s1 + $0x258] sm:$0xff]  }
  0x57   : > { %v1147_v46 = vrot.slane %v1133_v42, %v7069_v24 }
  0x58   : > { %6106 = vmatpush3.bf16.msra.mxu0 %v6647_v57  ;;  %v6668_v57 = vld [vmem:[%s8204_s1 + $0x1e0] sm:$0xff]  }
  0x59   : > { %6126 = vmatpush3.bf16.msra.mxu1 %v6648_v61  ;;  %6107 = vmatprep.subr.bf16.mxu0 %v6933_v1  ;;  %v1148_v50 = vcombine.low %v1140_v45, %v1147_v46  ;;  %v1601_v61 = vshll.u32 %v5199_v58, 16  ;;  %v2046_v45 = vcombine.high %v5288_v33, %v5288_v33  ;;  %v2086_v46 = vrot.slane %v2084_v38, 6  ;;  %v6710_v38 = vld [vmem:[%s8204_s1 + $0x2d0] sm:$0xff]  }
  0x5a   : > { %6127 = vmatprep.subr.bf16.mxu1 %v6933_v1 }
  0x5b   : > { %v1603_v63 = vrot.slane %v1601_v61, 7 }
  0x5c   : > { %6108 = vmatpush3.bf16.msra.mxu0 %v6649_v5  ;;  %v1609_v5 = vrot.slane %v1607_v0, 7  ;;  %v5286_v0 = vld.sshfl [vmem:[%s7047_s28 + $0xf0] sm:$0x13 pattern:$0x76325410] }
  0x5d   : > { %6128 = vmatpush3.bf16.msra.mxu1 %v6650_v10  ;;  %6109 = vmatprep.subr.bf16.mxu0 %v6933_v1  ;;  %v1604_v4 = vor.u32 %v1603_v63, %v1600_v62  ;;  %v6695_v62 = vld [vmem:[%s8204_s1 + $0x200] sm:$0xff]  }
  0x5e   : > { %6129 = vmatprep.subr.bf16.mxu1 %v6933_v1  ;;  %v6696_v63 = vld [vmem:[%s8204_s1 + $0x240] sm:$0xff]  }
  0x5f   : > { %v1605_v7 = vrot.slane %v1604_v4, 2  ;;  %v6697_v4 = vld [vmem:[%s8204_s1 + $0x2b8] sm:$0xff]  }
  0x60   : > { %6110 = vmatpush3.bf16.msra.mxu0 %v6651_v16  ;;  %v6867_v16 = vld.sshfl [vmem:[%s7047_s28 + $0x40] sm:$0xf pattern:$0x76325410] }
  0x61   : > { %6130 = vmatpush3.bf16.msra.mxu1 %v6652_v19  ;;  %6111 = vmatprep.subr.bf16.mxu0 %v6933_v1  ;;  %v1610_v10 = vsel %vm7142_vm7, %v1605_v7, %v1609_v5  ;;  %v6674_v19 = vld [vmem:[%s8204_s1 + $0x1c8] sm:$0xff]   ;;  %v1422_v23 = vcombine.low %v6867_v16, %v6868_v17 }
  0x62   : > { %6131 = vmatprep.subr.bf16.mxu1 %v6933_v1  ;;  %v1629_v14 = vcombine.low %v7172_v27, %v1610_v10  ;;  %v1285_v27 = vcombine.low %v6865_v9, %v6866_v13  ;;  %v6701_v9 = vld [vmem:[%s8204_s1 + $0x2b0] sm:$0xff]   ;;  %v2059_v13 = vshll.u32 %v5286_v0, 16  ;;  %v6704_v17 = vld [vmem:[%s8204_s1 + $0x2e8] sm:$0xff]  }
  0x63   : > { %v6702_v10 = vld [vmem:[%s8204_s1 + $0x2f0] sm:$0xff]  }
  0x64   : > { %6112 = vmatpush3.bf16.msra.mxu0 %v6653_v32  ;;  %v7348_v18 = vrot.slane %v1629_v14, %v7069_v24  ;;  %v5287_v32 = vld.sshfl [vmem:[%s7047_s28 + $0xf4] sm:$0x13 pattern:$0x76325410] }
  0x65   : > { %6132 = vmatpush3.bf16.msra.mxu1 %v6654_v34  ;;  %6113 = vmatprep.subr.bf16.mxu0 %v6933_v1  ;;  %v6687_v34 = vld [vmem:[%s8204_s1 + $0x220] sm:$0xff]   ;;  %v2070_v36 = vshrl.u32 %v5287_v32, 16  ;;  %v2073_v37 = vshll.u32 %v5287_v32, 16  ;;  %v2038_v42 = vcombine.high %v5287_v32, %v5287_v32  ;;  %v6708_v32 = vld [vmem:[%s8204_s1 + $0x2d8] sm:$0xff]  }
  0x66   : > { %6133 = vmatprep.subr.bf16.mxu1 %v6933_v1  ;;  %v1644_v20 = vcombine.low %v7343_v15, %v7348_v18  ;;  %v6703_v15 = vld [vmem:[%s8204_s1 + $0x2a8] sm:$0xff]  }
  0x68   : > { %6114 = vmatpush3.bf16.msra.mxu0 %v6655_v40  ;;  %v6689_v40 = vld [vmem:[%s8204_s1 + $0x218] sm:$0xff]  }
  0x69   : > { %6134 = vmatpush3.bf16.msra.mxu1 %v6656_v43  ;;  %6115 = vmatprep.subr.bf16.mxu0 %v6933_v1  ;;  %v2072_v43 = vrot.slane %v2070_v36, 6 }
  0x6a   : > { %6135 = vmatprep.subr.bf16.mxu1 %v6933_v1 }
  0x6c   : > { %6116 = vmatpush3.bf16.msra.mxu0 %v6657_v44  ;;  %v2075_v44 = vrot.slane %v2073_v37, 7  ;;  %v6709_v37 = vld [vmem:[%s8204_s1 + $0x290] sm:$0xff]  }
  0x6d   : > { %6136 = vmatpush3.bf16.msra.mxu1 %v6658_v47  ;;  %6141 = vmatprep.subr.bf16.mxu0 %v6933_v1  ;;  %v2089_v47 = vrot.slane %v2087_v39, 7  ;;  %v6871_v39 = vld.sshfl [vmem:[%s7047_s28 + $0x12c] sm:$0xf pattern:$0x76325410] }
  0x6e   : > { %6161 = vmatprep.subr.bf16.mxu1 %v6933_v1 }
  0x6f   : > { %6118 = vmatmul.mubr.bf16.vlgmr.msra.gmra.mxu0 %v926_v48  ;;  %v6691_v48 = vld [vmem:[%s8204_s1 + $0x210] sm:$0xff]  }
  0x70   : > { %6142 = vmatpush3.bf16.msra.mxu0 %v6661_v49  ;;  %6138 = vmatmul.mubr.bf16.vlgmr.msra.gmra.mxu1 %v1148_v50  ;;  %v6692_v49 = vld [vmem:[%s8204_s1 + $0x250] sm:$0xff]  }
  0x71   : > { %6162 = vmatpush3.bf16.msra.mxu1 %v6662_v51  ;;  %6143 = vmatprep.subr.bf16.mxu0 %v6933_v1  ;;  %v6869_v50 = vld.sshfl [vmem:[%s7047_s28 + $0xf0] sm:$0xf pattern:$0x76325410]  ;;  %v2076_v51 = vor.u32 %v2075_v44, %v2072_v43 }
  0x72   : > { %6163 = vmatprep.subr.bf16.mxu1 %v6933_v1  ;;  %6157 = vmatprep.mubr.msk.bf16.mxu0 %vm6934_vm0, %v6933_v1  ;;  %v6872_v43 = vld.sshfl [vmem:[%s7047_s28 + $0x134] sm:$0xf pattern:$0x76325410] }
  0x73   : > { %6177 = vmatprep.mubr.msk.bf16.mxu1 %vm6934_vm0, %v6933_v1  ;;  %v2077_v58 = vrot.slane %v2076_v51, 2  ;;  %v1922_v51 = vcombine.low %v6871_v39, %v6872_v43 }
  0x74   : > { %6144 = vmatpush3.bf16.msra.mxu0 %v6663_v52  ;;  %v2079_v52 = vshll.u32 %v2038_v42, 16  ;;  %v6711_v42 = vld [vmem:[%s8204_s1 + $0x288] sm:$0xff]  }
  0x75   : > { %6164 = vmatpush3.bf16.msra.mxu1 %v6664_v53  ;;  %6145 = vmatprep.subr.bf16.mxu0 %v6933_v1  ;;  %v6693_v53 = vld [vmem:[%s8204_s1 + $0x208] sm:$0xff]  }
  0x76   : > { %6165 = vmatprep.subr.bf16.mxu1 %v6933_v1  ;;  %v2081_v59 = vrot.slane %v2079_v52, 7  ;;  %v6717_v52 = vld [vmem:[%s8204_s1 + $0x338] sm:$0xff]  }
  0x78   : > { %6146 = vmatpush3.bf16.msra.mxu0 %v6665_v54  ;;  %v2090_v54 = vor.u32 %v2089_v47, %v2086_v46  ;;  %v6712_v46 = vld [vmem:[%s8204_s1 + $0x2c8] sm:$0xff]   ;;  %v6713_v47 = vld [vmem:[%s8204_s1 + $0x280] sm:$0xff]  }
  0x79   : > { %6166 = vmatpush3.bf16.msra.mxu1 %v6666_v55  ;;  %6147 = vmatprep.subr.bf16.mxu0 %v6933_v1  ;;  %v2093_v55 = vshll.u32 %v2046_v45, 16 }
  0x7a   : > { %6167 = vmatprep.subr.bf16.mxu1 %v6933_v1  ;;  %v2091_v60 = vrot.slane %v2090_v54, 2  ;;  %v6718_v54 = vld [vmem:[%s8204_s1 + $0x378] sm:$0xff]  }
  0x7b   : > { %v2095_v61 = vrot.slane %v2093_v55, 7  ;;  %v6719_v55 = vld [vmem:[%s8204_s1 + $0x330] sm:$0xff]  }
  0x7c   : > { %6148 = vmatpush3.bf16.msra.mxu0 %v6667_v56  ;;  %v6870_v56 = vld.sshfl [vmem:[%s7047_s28 + $0xf8] sm:$0xf pattern:$0x76325410] }
  0x7d   : > { %6168 = vmatpush3.bf16.msra.mxu1 %v6668_v57  ;;  %6149 = vmatprep.subr.bf16.mxu0 %v6933_v1  ;;  %v6694_v57 = vld [vmem:[%s8204_s1 + $0x248] sm:$0xff]   ;;  %v1783_v5 = vcombine.low %v6869_v50, %v6870_v56  ;;  %v6714_v50 = vld [vmem:[%s8204_s1 + $0x2c0] sm:$0xff]   ;;  %v6720_v56 = vld [vmem:[%s8204_s1 + $0x370] sm:$0xff]  }
  0x7e   : > { %6169 = vmatprep.subr.bf16.mxu1 %v6933_v1 }
  0x80   : > { %6150 = vmatpush3.bf16.msra.mxu0 %v6669_v2  ;;  %v7440_v2 = vsel %vm7142_vm7, %v2077_v58, %v2081_v59 }
  0x81   : > { %6170 = vmatpush3.bf16.msra.mxu1 %v6670_v3  ;;  %6151 = vmatprep.subr.bf16.mxu0 %v6933_v1  ;;  %v7444_v3 = vsel %vm7142_vm7, %v2091_v60, %v2095_v61  ;;  %v6721_v61 = vld [vmem:[%s8204_s1 + $0x328] sm:$0xff]  }
  0x82   : > { %6171 = vmatprep.subr.bf16.mxu1 %v6933_v1  ;;  %v3124_v7 = vcombine.low %v7440_v2, %v7444_v3 }
  0x84   : > { %6152 = vmatpush3.bf16.msra.mxu0 %v6671_v6  ;;  %v5289_v6 = vld.sshfl [vmem:[%s7047_s28 + $0xfc] sm:$0x13 pattern:$0x76325410] }
  0x85   : > { %6172 = vmatpush3.bf16.msra.mxu1 %v6672_v8  ;;  %6153 = vmatprep.subr.bf16.mxu0 %v6933_v1  ;;  %v6700_v8 = vld [vmem:[%s8204_s1 + $0x2f8] sm:$0xff]   ;;  %v2098_v14 = vshrl.u32 %v5289_v6, 16  ;;  %v2101_v16 = vshll.u32 %v5289_v6, 16 }
  0x86   : > { %6173 = vmatprep.subr.bf16.mxu1 %v6933_v1 }
  0x88   : > { %6154 = vmatpush3.bf16.msra.mxu0 %v6673_v12  ;;  %v2056_v12 = vshrl.u32 %v5286_v0, 16 }
  0x89   : > { %6174 = vmatpush3.bf16.msra.mxu1 %v6674_v19  ;;  %6155 = vmatprep.subr.bf16.mxu0 %v6933_v1  ;;  %v2061_v19 = vrot.slane %v2059_v13, 7  ;;  %v6725_v13 = vld [vmem:[%s8204_s1 + $0x318] sm:$0xff]  }
  0x8a   : > { %6175 = vmatprep.subr.bf16.mxu1 %v6933_v1  ;;  %v2058_v18 = vrot.slane %v2056_v12, 6 }
  0x8c   : > { %6156 = vmatpush3.bf16.msra.mxu0 %v6675_v21  ;;  %v2054_v21 = vcombine.high %v5289_v6, %v5289_v6 }
  0x8d   : > { %6176 = vmatpush3.bf16.msra.mxu1 %v6676_v25  ;;  %6181 = vmatprep.subr.bf16.mxu0 %v6933_v1  ;;  %v2100_v25 = vrot.slane %v2098_v14, 6 }
  0x8e   : > { %6201 = vmatprep.subr.bf16.mxu1 %v6933_v1 }
  0x8f   : > { %6158 = vmatmul.mubr.bf16.vlgmr.msra.gmra.mxu0 %v1285_v27  ;;  %v2103_v27 = vrot.slane %v2101_v16, 7  ;;  %v7580_v16 = vrot.slane %v3124_v7, %v7069_v24 }
  0x90   : > { %6182 = vmatpush3.bf16.msra.mxu0 %v6679_v22  ;;  %6178 = vmatmul.mubr.bf16.vlgmr.msra.gmra.mxu1 %v1422_v23  ;;  %v6705_v22 = vld [vmem:[%s8204_s1 + $0x2a0] sm:$0xff]  }
  0x91   : > { %6202 = vmatpush3.bf16.msra.mxu1 %v6682_v26  ;;  %6183 = vmatprep.subr.bf16.mxu0 %v6933_v1  ;;  %v6706_v23 = vld [vmem:[%s8204_s1 + $0x2e0] sm:$0xff]   ;;  %v2062_v26 = vor.u32 %v2061_v19, %v2058_v18  ;;  %v6873_v18 = vld.sshfl [vmem:[%s7047_s28 + $0x168] sm:$0xf pattern:$0x76325410] }
  0x92   : > { %6203 = vmatprep.subr.bf16.mxu1 %v6933_v1  ;;  %6197 = vmatprep.mubr.msk.bf16.mxu0 %vm6934_vm0, %v6933_v1  ;;  %v6729_v19 = vld [vmem:[%s8204_s1 + $0x308] sm:$0xff]  }
  0x93   : > { %6217 = vmatprep.mubr.msk.bf16.mxu1 %vm6934_vm0, %v6933_v1  ;;  %v2063_v33 = vrot.slane %v2062_v26, 2  ;;  %v6732_v26 = vld [vmem:[%s8204_s1 + $0x340] sm:$0xff]  }
  0x94   : > { %6184 = vmatpush3.bf16.msra.mxu0 %v6683_v28 }
  0x95   : > { %6204 = vmatpush3.bf16.msra.mxu1 %v6684_v29  ;;  %6185 = vmatprep.subr.bf16.mxu0 %v6933_v1  ;;  %v2104_v29 = vor.u32 %v2103_v27, %v2100_v25  ;;  %v6876_v25 = vld.sshfl [vmem:[%s7047_s28 + $0x1ac] sm:$0xf pattern:$0x76325410] }
  0x96   : > { %6205 = vmatprep.subr.bf16.mxu1 %v6933_v1  ;;  %v6730_v27 = vld [vmem:[%s8204_s1 + $0x348] sm:$0xff]  }
  0x98   : > { %6186 = vmatpush3.bf16.msra.mxu0 %v6685_v30  ;;  %v2107_v30 = vshll.u32 %v2054_v21, 16  ;;  %v6875_v21 = vld.sshfl [vmem:[%s7047_s28 + $0x1a4] sm:$0xf pattern:$0x76325410] }
  0x99   : > { %6206 = vmatpush3.bf16.msra.mxu1 %v6686_v31  ;;  %6187 = vmatprep.subr.bf16.mxu0 %v6933_v1  ;;  %v6707_v31 = vld [vmem:[%s8204_s1 + $0x298] sm:$0xff]  }
  0x9a   : > { %6207 = vmatprep.subr.bf16.mxu1 %v6933_v1  ;;  %v2109_v36 = vrot.slane %v2107_v30, 7 }
  0x9c   : > { %6188 = vmatpush3.bf16.msra.mxu0 %v6687_v34 }
  0x9d   : > { %6208 = vmatpush3.bf16.msra.mxu1 %v6688_v35  ;;  %6189 = vmatprep.subr.bf16.mxu0 %v6933_v1  ;;  %v2105_v35 = vrot.slane %v2104_v29, 2  ;;  %v7625_v29 = vld.sshfl [vmem:[%s7047_s28 + $0x170] sm:$0x13 pattern:$0x76325410] }
  0x9e   : > { %6209 = vmatprep.subr.bf16.mxu1 %v6933_v1  ;;  %v2587_v43 = vshll.u32 %v7625_v29, 16 }
  0xa0   : > { %6190 = vmatpush3.bf16.msra.mxu0 %v6689_v40 }
  0xa1   : > { %6210 = vmatpush3.bf16.msra.mxu1 %v6690_v41  ;;  %6191 = vmatprep.subr.bf16.mxu0 %v6933_v1  ;;  %v7508_v41 = vsel %vm7142_vm7, %v2105_v35, %v2109_v36 }
  0xa2   : > { %6211 = vmatprep.subr.bf16.mxu1 %v6933_v1  ;;  %v2129_v45 = vcombine.low %v7444_v3, %v7508_v41  ;;  %v6728_v3 = vld [vmem:[%s8204_s1 + $0x350] sm:$0xff]  }
  0xa4   : > { %6192 = vmatpush3.bf16.msra.mxu0 %v6691_v48 }
  0xa5   : > { %6212 = vmatpush3.bf16.msra.mxu1 %v6692_v49  ;;  %6193 = vmatprep.subr.bf16.mxu0 %v6933_v1  ;;  %v2143_v49 = vrot.slane %v2129_v45, %v7069_v24 }
  0xa6   : > { %6213 = vmatprep.subr.bf16.mxu1 %v6933_v1 }
  0xa8   : > { %6194 = vmatpush3.bf16.msra.mxu0 %v6693_v53 }
  0xa9   : > { %6214 = vmatpush3.bf16.msra.mxu1 %v6694_v57  ;;  %6195 = vmatprep.subr.bf16.mxu0 %v6933_v1  ;;  %v5469_v57 = vld.sshfl [vmem:[%s7047_s28 + $0x100] sm:$0x13 pattern:$0x76325410] }
  0xaa   : > { %6215 = vmatprep.subr.bf16.mxu1 %v6933_v1  ;;  %v3050_v58 = vcombine.high %v5469_v57, %v5469_v57  ;;  %v3094_v59 = vshrl.u32 %v5469_v57, 16  ;;  %v3097_v60 = vshll.u32 %v5469_v57, 16 }
  0xac   : > { %6196 = vmatpush3.bf16.msra.mxu0 %v6695_v62  ;;  %v6722_v62 = vld [vmem:[%s8204_s1 + $0x368] sm:$0xff]  }
  0xad   : > { %6216 = vmatpush3.bf16.msra.mxu1 %v6696_v63  ;;  %6221 = vmatprep.subr.bf16.mxu0 %v6933_v1  ;;  %v3096_v63 = vrot.slane %v3094_v59, 6  ;;  %v2589_v59 = vrot.slane %v2587_v43, 7 }
  0xae   : > { %6241 = vmatprep.subr.bf16.mxu1 %v6933_v1 }
  0xaf   : > { %6198 = vmatmul.mubr.bf16.vlgmr.msra.gmra.mxu0 %v1644_v20  ;;  %v2030_v20 = vcombine.high %v5286_v0, %v5286_v0  ;;  %v3099_v0 = vrot.slane %v3097_v60, 7 }
  0xb0   : > { %6222 = vmatpush3.bf16.msra.mxu0 %v6697_v4  ;;  %6218 = vmatmul.mubr.bf16.vlgmr.msra.gmra.mxu1 %v1783_v5  ;;  %v3103_v4 = vshll.u32 %v3050_v58, 16 }
  0xb1   : > { %6242 = vmatpush3.bf16.msra.mxu1 %v6700_v8  ;;  %6223 = vmatprep.subr.bf16.mxu0 %v6933_v1  ;;  %v2065_v28 = vshll.u32 %v2030_v20, 16  ;;  %v3100_v5 = vor.u32 %v3099_v0, %v3096_v63  ;;  %v6723_v8 = vld [vmem:[%s8204_s1 + $0x320] sm:$0xff]   ;;  %v6874_v20 = vld.sshfl [vmem:[%s7047_s28 + $0x170] sm:$0xf pattern:$0x76325410] }
  0xb2   : > { %6243 = vmatprep.subr.bf16.mxu1 %v6933_v1  ;;  %6237 = vmatprep.mubr.msk.bf16.mxu0 %vm6934_vm0, %v6933_v1  ;;  %v3105_v6 = vrot.slane %v3103_v4, 7  ;;  %v2283_v30 = vcombine.low %v6873_v18, %v6874_v20  ;;  %v6745_v20 = vld [vmem:[%s8204_s1 + $0x398] sm:$0xff]  }
  0xb3   : > { %6257 = vmatprep.mubr.msk.bf16.mxu1 %vm6934_vm0, %v6933_v1  ;;  %v2067_v34 = vrot.slane %v2065_v28, 7  ;;  %v5377_v28 = vld.sshfl [vmem:[%s7047_s28 + $0x16c] sm:$0x13 pattern:$0x76325410] }
  0xb4   : > { %6224 = vmatpush3.bf16.msra.mxu0 %v6701_v9  ;;  %v6724_v9 = vld [vmem:[%s8204_s1 + $0x360] sm:$0xff]   ;;  %v2573_v39 = vshll.u32 %v5377_v28, 16  ;;  %v2538_v57 = vcombine.high %v5377_v28, %v5377_v28 }
  0xb5   : > { %6244 = vmatpush3.bf16.msra.mxu1 %v6702_v10  ;;  %6225 = vmatprep.subr.bf16.mxu0 %v6933_v1  ;;  %v2068_v40 = vsel %vm7142_vm7, %v2063_v33, %v2067_v34  ;;  %v3101_v10 = vrot.slane %v3100_v5, 2  ;;  %v2422_v33 = vcombine.low %v6875_v21, %v6876_v25  ;;  %v6738_v34 = vld [vmem:[%s8204_s1 + $0x3f8] sm:$0xff]  }
  0xb6   : > { %6245 = vmatprep.subr.bf16.mxu1 %v6933_v1  ;;  %v2128_v44 = vcombine.low %v2068_v40, %v7440_v2  ;;  %v6727_v2 = vld [vmem:[%s8204_s1 + $0x310] sm:$0xff]  }
  0xb7   : > { %v3106_v12 = vsel %vm7142_vm7, %v3101_v10, %v3105_v6  ;;  %v6742_v6 = vld [vmem:[%s8204_s1 + $0x3e8] sm:$0xff]  }
  0xb8   : > { %6226 = vmatpush3.bf16.msra.mxu0 %v6703_v15  ;;  %v2136_v48 = vrot.slane %v2128_v44, %v7069_v24  ;;  %v3125_v14 = vcombine.low %v7508_v41, %v3106_v12  ;;  %v6726_v15 = vld [vmem:[%s8204_s1 + $0x358] sm:$0xff]   ;;  %v6740_v41 = vld [vmem:[%s8204_s1 + $0x3f0] sm:$0xff]  }
  0xb9   : > { %6246 = vmatpush3.bf16.msra.mxu1 %v6704_v17  ;;  %6227 = vmatprep.subr.bf16.mxu0 %v6933_v1 }
  0xba   : > { %6247 = vmatprep.subr.bf16.mxu1 %v6933_v1  ;;  %v2144_v53 = vcombine.low %v2136_v48, %v2143_v49  ;;  %v7588_v17 = vrot.slane %v3125_v14, %v7069_v24  ;;  %v6743_v14 = vld [vmem:[%s8204_s1 + $0x3a0] sm:$0xff]  }
  0xbc   : > { %6228 = vmatpush3.bf16.msra.mxu0 %v6705_v22  ;;  %v3140_v7 = vcombine.low %v7580_v16, %v7588_v17  ;;  %v6731_v22 = vld [vmem:[%s8204_s1 + $0x300] sm:$0xff]  }
  0xbd   : > { %6248 = vmatpush3.bf16.msra.mxu1 %v6706_v23  ;;  %6229 = vmatprep.subr.bf16.mxu0 %v6933_v1  ;;  %v7616_v23 = vld.sshfl [vmem:[%s7047_s28 + $0x168] sm:$0x13 pattern:$0x76325410] }
  0xbe   : > { %6249 = vmatprep.subr.bf16.mxu1 %v6933_v1  ;;  %v2556_v35 = vshrl.u32 %v7616_v23, 16  ;;  %v2559_v36 = vshll.u32 %v7616_v23, 16 }
  0xc0   : > { %6230 = vmatpush3.bf16.msra.mxu0 %v6707_v31  ;;  %v6735_v31 = vld [vmem:[%s8204_s1 + $0x3b8] sm:$0xff]   ;;  %v2558_v49 = vrot.slane %v2556_v35, 6 }
  0xc1   : > { %6250 = vmatpush3.bf16.msra.mxu1 %v6708_v32  ;;  %6231 = vmatprep.subr.bf16.mxu0 %v6933_v1  ;;  %v5379_v32 = vld.sshfl [vmem:[%s7047_s28 + $0x174] sm:$0x13 pattern:$0x76325410] }
  0xc2   : > { %6251 = vmatprep.subr.bf16.mxu1 %v6933_v1  ;;  %v2598_v45 = vshrl.u32 %v5379_v32, 16 }
  0xc4   : > { %6232 = vmatpush3.bf16.msra.mxu0 %v6709_v37  ;;  %v6739_v37 = vld [vmem:[%s8204_s1 + $0x3b0] sm:$0xff]   ;;  %v2600_v63 = vrot.slane %v2598_v45, 6  ;;  %v6751_v45 = vld [vmem:[%s8204_s1 + $0x380] sm:$0xff]  }
  0xc5   : > { %6252 = vmatpush3.bf16.msra.mxu1 %v6710_v38  ;;  %6233 = vmatprep.subr.bf16.mxu0 %v6933_v1  ;;  %v2570_v38 = vshrl.u32 %v5377_v28, 16 }
  0xc6   : > { %6253 = vmatprep.subr.bf16.mxu1 %v6933_v1 }
  0xc8   : > { %6234 = vmatpush3.bf16.msra.mxu0 %v6711_v42  ;;  %v2584_v42 = vshrl.u32 %v7625_v29, 16 }
  0xc9   : > { %6254 = vmatpush3.bf16.msra.mxu1 %v6712_v46  ;;  %6235 = vmatprep.subr.bf16.mxu0 %v6933_v1  ;;  %v2601_v46 = vshll.u32 %v5379_v32, 16 }
  0xca   : > { %6255 = vmatprep.subr.bf16.mxu1 %v6933_v1  ;;  %v2586_v58 = vrot.slane %v2584_v42, 6  ;;  %v6878_v42 = vld.sshfl [vmem:[%s7047_s28 + $0xfc] sm:$0xf pattern:$0x76325410] }
  0xcb   : > { %v2603_v0 = vrot.slane %v2601_v46, 7  ;;  %v6752_v46 = vld [vmem:[%s8204_s1 + $0x3c0] sm:$0xff]  }
  0xcc   : > { %6236 = vmatpush3.bf16.msra.mxu0 %v6713_v47 }
  0xcd   : > { %6256 = vmatpush3.bf16.msra.mxu1 %v6714_v50  ;;  %6261 = vmatprep.subr.bf16.mxu0 %v6933_v1  ;;  %v2561_v50 = vrot.slane %v2559_v36, 7  ;;  %v6748_v36 = vld [vmem:[%s8204_s1 + $0x3d0] sm:$0xff]  }
  0xce   : > { %6281 = vmatprep.subr.bf16.mxu1 %v6933_v1 }
  0xcf   : > { %6238 = vmatmul.mubr.bf16.vlgmr.msra.gmra.mxu0 %v1922_v51 }
  0xd0   : > { %6262 = vmatpush3.bf16.msra.mxu0 %v6717_v52  ;;  %6258 = vmatmul.mubr.bf16.vlgmr.msra.gmra.mxu1 %v2144_v53  ;;  %v6741_v52 = vld [vmem:[%s8204_s1 + $0x3a8] sm:$0xff]   ;;  %v2572_v53 = vrot.slane %v2570_v38, 6  ;;  %v6877_v38 = vld.sshfl [vmem:[%s7047_s28 + $0xf4] sm:$0xf pattern:$0x76325410] }
  0xd1   : > { %6282 = vmatpush3.bf16.msra.mxu1 %v6718_v54  ;;  %6263 = vmatprep.subr.bf16.mxu0 %v6933_v1  ;;  %v2575_v54 = vrot.slane %v2573_v39, 7  ;;  %v6750_v39 = vld [vmem:[%s8204_s1 + $0x3c8] sm:$0xff]  }
  0xd2   : > { %6283 = vmatprep.subr.bf16.mxu1 %v6933_v1  ;;  %6277 = vmatprep.mubr.msk.bf16.mxu0 %vm6934_vm0, %v6933_v1 }
  0xd3   : > { %6297 = vmatprep.mubr.msk.bf16.mxu1 %vm6934_vm0, %v6933_v1  ;;  %v2576_v12 = vor.u32 %v2575_v54, %v2572_v53 }
  0xd4   : > { %6264 = vmatpush3.bf16.msra.mxu0 %v6719_v55 }
  0xd5   : > { %6284 = vmatpush3.bf16.msra.mxu1 %v6720_v56  ;;  %6265 = vmatprep.subr.bf16.mxu0 %v6933_v1  ;;  %v2530_v56 = vcombine.high %v7616_v23, %v7616_v23 }
  0xd6   : > { %6285 = vmatprep.subr.bf16.mxu1 %v6933_v1 }
  0xd7   : > { %v2565_v10 = vshll.u32 %v2530_v56, 16 }
  0xd8   : > { %6266 = vmatpush3.bf16.msra.mxu0 %v6721_v61  ;;  %v2546_v61 = vcombine.high %v7625_v29, %v7625_v29 }
  0xd9   : > { %6286 = vmatpush3.bf16.msra.mxu1 %v6722_v62  ;;  %6267 = vmatprep.subr.bf16.mxu0 %v6933_v1  ;;  %v2554_v62 = vcombine.high %v5379_v32, %v5379_v32  ;;  %v2567_v25 = vrot.slane %v2565_v10, 7  ;;  %v6764_v10 = vld [vmem:[%s8204_s1 + $0x458] sm:$0xff]  }
  0xda   : > { %6287 = vmatprep.subr.bf16.mxu1 %v6933_v1 }
  0xdb   : > { %v2607_v18 = vshll.u32 %v2554_v62, 16  ;;  %v6759_v62 = vld [vmem:[%s8204_s1 + $0x428] sm:$0xff]  }
  0xdc   : > { %6268 = vmatpush3.bf16.msra.mxu0 %v6723_v8 }
  0xdd   : > { %6288 = vmatpush3.bf16.msra.mxu1 %v6724_v9  ;;  %6269 = vmatprep.subr.bf16.mxu0 %v6933_v1  ;;  %v2562_v9 = vor.u32 %v2561_v50, %v2558_v49  ;;  %v2609_v29 = vrot.slane %v2607_v18, 7  ;;  %v6753_v49 = vld [vmem:[%s8204_s1 + $0x438] sm:$0xff]   ;;  %v2781_v50 = vcombine.low %v6877_v38, %v6878_v42  ;;  %v6769_v18 = vld [vmem:[%s8204_s1 + $0x400] sm:$0xff]   ;;  %v6784_v42 = vld [vmem:[%s8204_s1 + $0x4d0] sm:$0xff]  }
  0xde   : > { %6289 = vmatprep.subr.bf16.mxu1 %v6933_v1  ;;  %v6780_v38 = vld [vmem:[%s8204_s1 + $0x4e0] sm:$0xff]  }
  0xdf   : > { %v2563_v21 = vrot.slane %v2562_v9, 2  ;;  %v6763_v9 = vld [vmem:[%s8204_s1 + $0x418] sm:$0xff]  }
  0xe0   : > { %6270 = vmatpush3.bf16.msra.mxu0 %v6725_v13  ;;  %v2579_v13 = vshll.u32 %v2538_v57, 16  ;;  %v6758_v57 = vld [vmem:[%s8204_s1 + $0x470] sm:$0xff]  }
  0xe1   : > { %6290 = vmatpush3.bf16.msra.mxu1 %v6726_v15  ;;  %6271 = vmatprep.subr.bf16.mxu0 %v6933_v1  ;;  %v2590_v15 = vor.u32 %v2589_v59, %v2586_v58  ;;  %v2568_v32 = vsel %vm7142_vm7, %v2563_v21, %v2567_v25  ;;  %v6773_v21 = vld [vmem:[%s8204_s1 + $0x4b8] sm:$0xff]  }
  0xe2   : > { %6291 = vmatprep.subr.bf16.mxu1 %v6933_v1  ;;  %v6774_v25 = vld [vmem:[%s8204_s1 + $0x4f8] sm:$0xff]  }
  0xe3   : > { %v2591_v23 = vrot.slane %v2590_v15, 2  ;;  %v6880_v15 = vld.sshfl [vmem:[%s7047_s28 + $0x138] sm:$0xf pattern:$0x76325410] }
  0xe4   : > { %6272 = vmatpush3.bf16.msra.mxu0 %v6727_v2  ;;  %v2593_v2 = vshll.u32 %v2546_v61, 16 }
  0xe5   : > { %6292 = vmatpush3.bf16.msra.mxu1 %v6728_v3  ;;  %6273 = vmatprep.subr.bf16.mxu0 %v6933_v1  ;;  %v2604_v3 = vor.u32 %v2603_v0, %v2600_v63  ;;  %v6760_v0 = vld [vmem:[%s8204_s1 + $0x468] sm:$0xff]  }
  0xe6   : > { %6293 = vmatprep.subr.bf16.mxu1 %v6933_v1 }
  0xe7   : > { %v2605_v28 = vrot.slane %v2604_v3, 2  ;;  %v6768_v3 = vld [vmem:[%s8204_s1 + $0x448] sm:$0xff]  }
  0xe8   : > { %6274 = vmatpush3.bf16.msra.mxu0 %v6729_v19  ;;  %v6744_v19 = vld [vmem:[%s8204_s1 + $0x3e0] sm:$0xff]  }
  0xe9   : > { %6294 = vmatpush3.bf16.msra.mxu1 %v6730_v27  ;;  %6275 = vmatprep.subr.bf16.mxu0 %v6933_v1  ;;  %v2577_v27 = vrot.slane %v2576_v12, 2  ;;  %v2610_v35 = vsel %vm7142_vm7, %v2605_v28, %v2609_v29  ;;  %v6765_v12 = vld [vmem:[%s8204_s1 + $0x410] sm:$0xff]  }
  0xea   : > { %6295 = vmatprep.subr.bf16.mxu1 %v6933_v1  ;;  %v6776_v29 = vld [vmem:[%s8204_s1 + $0x4f0] sm:$0xff]  }
  0xec   : > { %6276 = vmatpush3.bf16.msra.mxu0 %v6731_v22  ;;  %v2581_v22 = vrot.slane %v2579_v13, 7  ;;  %v6766_v13 = vld [vmem:[%s8204_s1 + $0x450] sm:$0xff]  }
  0xed   : > { %6296 = vmatpush3.bf16.msra.mxu1 %v6732_v26  ;;  %6301 = vmatprep.subr.bf16.mxu0 %v6933_v1  ;;  %v2595_v26 = vrot.slane %v2593_v2, 7  ;;  %v6767_v2 = vld [vmem:[%s8204_s1 + $0x408] sm:$0xff]  }
  0xee   : > { %6321 = vmatprep.subr.bf16.mxu1 %v6933_v1 }
  0xef   : > { %v394_v40 = vpop.f32.mrf.mxu0  ;;  %6278 = vmatmul.mubr.bf16.vlgmr.msra.gmra.mxu0 %v2283_v30  ;;  %v6746_v30 = vld [vmem:[%s8204_s1 + $0x3d8] sm:$0xff]  }
  0xf0   : > { %v505_v44 = vpop.f32.mrf.mxu1  ;;  %6302 = vmatpush3.bf16.msra.mxu0 %v6735_v31  ;;  %6298 = vmatmul.mubr.bf16.vlgmr.msra.gmra.mxu1 %v2422_v33  ;;  %v6747_v31 = vld [vmem:[%s8204_s1 + $0x390] sm:$0xff]   ;;  %v2582_v33 = vsel %vm7142_vm7, %v2577_v27, %v2581_v22 }
  0xf1   : > { %v7646_v47 = vadd.f32 %v505_v44, %v394_v40  ;;  %v6039_v48 = vpop.f32.mrf.mxu0  ;;  %6322 = vmatpush3.bf16.msra.mxu1 %v6738_v34  ;;  %6303 = vmatprep.subr.bf16.mxu0 %v6933_v1  ;;  %v2596_v34 = vsel %vm7142_vm7, %v2591_v23, %v2595_v26  ;;  %v2628_v40 = vcombine.low %v2568_v32, %v2582_v33  ;;  %v6775_v26 = vld [vmem:[%s8204_s1 + $0x4b0] sm:$0xff]   ;;  %v6777_v32 = vld [vmem:[%s8204_s1 + $0x4a8] sm:$0xff]  }
  0xf2   : > { %v6059_v51 = vpop.f32.mrf.mxu1  ;;  %6323 = vmatprep.subr.bf16.mxu1 %v6933_v1  ;;  %6317 = vmatprep.mubr.msk.bf16.mxu0 %vm6934_vm0, %v6933_v1 }
  0xf3   : > { %v397_v55 = vpop.f32.mrf.mxu0  ;;  %6337 = vmatprep.mubr.msk.bf16.mxu1 %vm6934_vm0, %v6933_v1  ;;  %v2636_v43 = vrot.slane %v2628_v40, %v7069_v24  ;;  %v6756_v51 = vld [vmem:[%s8204_s1 + $0x478] sm:$0xff]  }
  0xf4   : > { %v508_v60 = vpop.f32.mrf.mxu1  ;;  %6304 = vmatpush3.bf16.msra.mxu0 %v6739_v37  ;;  %v6749_v37 = vld [vmem:[%s8204_s1 + $0x388] sm:$0xff]   ;;  %v6782_v40 = vld [vmem:[%s8204_s1 + $0x4d8] sm:$0xff]  }
  0xf5   : > { %v7661_v4 = vadd.f32 %v508_v60, %v397_v55  ;;  %v6040_v5 = vpop.f32.mrf.mxu0  ;;  %6324 = vmatpush3.bf16.msra.mxu1 %v6740_v41  ;;  %6305 = vmatprep.subr.bf16.mxu0 %v6933_v1  ;;  %v2629_v41 = vcombine.low %v2596_v34, %v2610_v35  ;;  %v6757_v55 = vld [vmem:[%s8204_s1 + $0x430] sm:$0xff]   ;;  %v6778_v34 = vld [vmem:[%s8204_s1 + $0x4e8] sm:$0xff]  }
  0xf6   : > { %6325 = vmatprep.subr.bf16.mxu1 %v6933_v1  ;;  %v6060_v8 = vpop.f32.mrf.mxu1 }
  0xf7   : > { %v2643_v44 = vrot.slane %v2629_v41, %v7069_v24  ;;  %v6762_v8 = vld [vmem:[%s8204_s1 + $0x460] sm:$0xff]   ;;  %v6783_v41 = vld [vmem:[%s8204_s1 + $0x490] sm:$0xff]  }
  0xf8   : > { %6306 = vmatpush3.bf16.msra.mxu0 %v6741_v52 }
  0xf9   : > { %6326 = vmatpush3.bf16.msra.mxu1 %v6742_v6  ;;  %6307 = vmatprep.subr.bf16.mxu0 %v6933_v1  ;;  %v2644_v48 = vcombine.low %v2636_v43, %v2643_v44  ;;  %v6881_v43 = vld.sshfl [vmem:[%s7047_s28 + $0x14] sm:$0xf pattern:$0x76325410] }
  0xfa   : > { %6327 = vmatprep.subr.bf16.mxu1 %v6933_v1  ;;  %v6882_v44 = vld.sshfl [vmem:[%s7047_s28 + $0x1c] sm:$0xf pattern:$0x76325410] }
  0xfc   : > { %6308 = vmatpush3.bf16.msra.mxu0 %v6743_v14  ;;  %v6879_v14 = vld.sshfl [vmem:[%s7047_s28 + $0x130] sm:$0xf pattern:$0x76325410] }
  0xfd   : > { %6328 = vmatpush3.bf16.msra.mxu1 %v6744_v19  ;;  %6309 = vmatprep.subr.bf16.mxu0 %v6933_v1  ;;  %v6770_v19 = vld [vmem:[%s8204_s1 + $0x440] sm:$0xff]  }
  0xfe   : > { %6329 = vmatprep.subr.bf16.mxu1 %v6933_v1 }
 0x100   : > { %6310 = vmatpush3.bf16.msra.mxu0 %v6745_v20  ;;  %v2918_v20 = vcombine.low %v6879_v14, %v6880_v15 }
 0x101   : > { %6330 = vmatpush3.bf16.msra.mxu1 %v6746_v30  ;;  %6311 = vmatprep.subr.bf16.mxu0 %v6933_v1 }
 0x102   : > { %6331 = vmatprep.subr.bf16.mxu1 %v6933_v1 }
 0x104   : > { %6312 = vmatpush3.bf16.msra.mxu0 %v6747_v31 }
 0x105   : > { %6332 = vmatpush3.bf16.msra.mxu1 %v6748_v36  ;;  %6313 = vmatprep.subr.bf16.mxu0 %v6933_v1 }
 0x106   : > { %6333 = vmatprep.subr.bf16.mxu1 %v6933_v1 }
 0x108   : > { %6314 = vmatpush3.bf16.msra.mxu0 %v6749_v37  ;;  %v6779_v37 = vld [vmem:[%s8204_s1 + $0x4a0] sm:$0xff]  }
 0x109   : > { %6334 = vmatpush3.bf16.msra.mxu1 %v6750_v39  ;;  %6315 = vmatprep.subr.bf16.mxu0 %v6933_v1  ;;  %v6781_v39 = vld [vmem:[%s8204_s1 + $0x498] sm:$0xff]  }
 0x10a   : > { %6335 = vmatprep.subr.bf16.mxu1 %v6933_v1 }
 0x10c   : > { %6316 = vmatpush3.bf16.msra.mxu0 %v6751_v45  ;;  %v6785_v45 = vld [vmem:[%s8204_s1 + $0x488] sm:$0xff]  }
 0x10d   : > { %6336 = vmatpush3.bf16.msra.mxu1 %v6752_v46  ;;  %6341 = vmatprep.subr.bf16.mxu0 %v6933_v1  ;;  %v6883_v46 = vld.sshfl [vmem:[%s7047_s28 + $0x50] sm:$0xf pattern:$0x76325410] }
 0x10e   : > { %6361 = vmatprep.subr.bf16.mxu1 %v6933_v1 }
 0x10f   : > { %v732_v52 = vpop.f32.mrf.mxu0  ;;  %6318 = vmatmul.mubr.bf16.vlgmr.msra.gmra.mxu0 %v2644_v48  ;;  %v6884_v48 = vld.sshfl [vmem:[%s7047_s28 + $0x58] sm:$0xf pattern:$0x76325410] }
 0x110   : > { %v739_v53 = vadd.f32 %v732_v52, %v7646_v47  ;;  %6342 = vmatpush3.bf16.msra.mxu0 %v6753_v49  ;;  %v871_v54 = vpop.f32.mrf.mxu1  ;;  %6338 = vmatmul.mubr.bf16.vlgmr.msra.gmra.mxu1 %v2781_v50  ;;  %v6786_v49 = vld [vmem:[%s8204_s1 + $0x4c8] sm:$0xff]   ;;  %v6787_v50 = vld [vmem:[%s8204_s1 + $0x480] sm:$0xff]   ;;  %v5556_v52 = vld.sshfl [vmem:[%s7047_s28 + $0x14] sm:$0x13 pattern:$0x76325410] }
 0x111   : > { %v6079_v56 = vpop.f32.mrf.mxu0  ;;  %6362 = vmatpush3.bf16.msra.mxu1 %v6756_v51  ;;  %6343 = vmatprep.subr.bf16.mxu0 %v6933_v1  ;;  %v6788_v51 = vld [vmem:[%s8204_s1 + $0x4c0] sm:$0xff]   ;;  %v3526_v14 = vcombine.high %v5556_v52, %v5556_v52 }
 0x112   : > { %v878_v58 = vadd.f32 %v871_v54, %v739_v53  ;;  %v6099_v59 = vpop.f32.mrf.mxu1  ;;  %6363 = vmatprep.subr.bf16.mxu1 %v6933_v1  ;;  %6357 = vmatprep.mubr.msk.bf16.mxu0 %vm6934_vm0, %v6933_v1  ;;  %v3279_v53 = vcombine.low %v6881_v43, %v6882_v44  ;;  %v5557_v54 = vld.sshfl [vmem:[%s7047_s28 + $0x18] sm:$0x13 pattern:$0x76325410]  ;;  %v3418_v56 = vcombine.low %v6883_v46, %v6884_v48  ;;  %v6800_v43 = vld [vmem:[%s8204_s1 + $0x560] sm:$0xff]  }
 0x113   : > { %v735_v47 = vpop.f32.mrf.mxu0  ;;  %6377 = vmatprep.mubr.msk.bf16.mxu1 %vm6934_vm0, %v6933_v1  ;;  %v5559_v59 = vld.sshfl [vmem:[%s7047_s28 + $0x20] sm:$0x13 pattern:$0x76325410]  ;;  %v3534_v15 = vcombine.high %v5557_v54, %v5557_v54 }
 0x114   : > { %v740_v60 = vadd.f32 %v735_v47, %v7661_v4  ;;  %6344 = vmatpush3.bf16.msra.mxu0 %v6757_v55  ;;  %v874_v61 = vpop.f32.mrf.mxu1  ;;  %v6761_v4 = vld [vmem:[%s8204_s1 + $0x420] sm:$0xff]   ;;  %v6791_v55 = vld [vmem:[%s8204_s1 + $0x538] sm:$0xff]   ;;  %v3552_v47 = vshrl.u32 %v5556_v52, 16 }
 0x115   : > { %v6080_v63 = vpop.f32.mrf.mxu0  ;;  %6364 = vmatpush3.bf16.msra.mxu1 %v6758_v57  ;;  %6345 = vmatprep.subr.bf16.mxu0 %v6933_v1  ;;  %v5558_v57 = vld.sshfl [vmem:[%s7047_s28 + $0x1c] sm:$0x13 pattern:$0x76325410] }
 0x116   : > { %v879_v5 = vadd.f32 %v874_v61, %v740_v60  ;;  %6365 = vmatprep.subr.bf16.mxu1 %v6933_v1  ;;  %v6100_v6 = vpop.f32.mrf.mxu1  ;;  %v3555_v60 = vshll.u32 %v5556_v52, 16  ;;  %v3569_v63 = vshll.u32 %v5557_v54, 16 }
 0x118   : > { %6346 = vmatpush3.bf16.msra.mxu0 %v6759_v62  ;;  %v3566_v62 = vshrl.u32 %v5557_v54, 16  ;;  %v6802_v54 = vld [vmem:[%s8204_s1 + $0x558] sm:$0xff]  }
 0x119   : > { %6366 = vmatpush3.bf16.msra.mxu1 %v6760_v0  ;;  %6347 = vmatprep.subr.bf16.mxu0 %v6933_v1  ;;  %v3580_v0 = vshrl.u32 %v5558_v57, 16 }
 0x11a   : > { %6367 = vmatprep.subr.bf16.mxu1 %v6933_v1 }
 0x11c   : > { %6348 = vmatpush3.bf16.msra.mxu0 %v6761_v4  ;;  %v6795_v4 = vld [vmem:[%s8204_s1 + $0x530] sm:$0xff]  }
 0x11d   : > { %6368 = vmatpush3.bf16.msra.mxu1 %v6762_v8  ;;  %6349 = vmatprep.subr.bf16.mxu0 %v6933_v1  ;;  %v3583_v8 = vshll.u32 %v5558_v57, 16 }
 0x11e   : > { %6369 = vmatprep.subr.bf16.mxu1 %v6933_v1 }
 0x120   : > { %6350 = vmatpush3.bf16.msra.mxu0 %v6763_v9  ;;  %v3594_v9 = vshrl.u32 %v5559_v59, 16 }
 0x121   : > { %6370 = vmatpush3.bf16.msra.mxu1 %v6764_v10  ;;  %6351 = vmatprep.subr.bf16.mxu0 %v6933_v1  ;;  %v3597_v10 = vshll.u32 %v5559_v59, 16 }
 0x122   : > { %6371 = vmatprep.subr.bf16.mxu1 %v6933_v1 }
 0x124   : > { %6352 = vmatpush3.bf16.msra.mxu0 %v6765_v12 }
 0x125   : > { %6372 = vmatpush3.bf16.msra.mxu1 %v6766_v13  ;;  %6353 = vmatprep.subr.bf16.mxu0 %v6933_v1  ;;  %v6796_v13 = vld [vmem:[%s8204_s1 + $0x570] sm:$0xff]  }
 0x126   : > { %6373 = vmatprep.subr.bf16.mxu1 %v6933_v1 }
 0x128   : > { %6354 = vmatpush3.bf16.msra.mxu0 %v6767_v2 }
 0x129   : > { %6374 = vmatpush3.bf16.msra.mxu1 %v6768_v3  ;;  %6355 = vmatprep.subr.bf16.mxu0 %v6933_v1 }
 0x12a   : > { %6375 = vmatprep.subr.bf16.mxu1 %v6933_v1 }
 0x12c   : > { %6356 = vmatpush3.bf16.msra.mxu0 %v6769_v18  ;;  %v3542_v18 = vcombine.high %v5558_v57, %v5558_v57 }
 0x12d   : > { %6376 = vmatpush3.bf16.msra.mxu1 %v6770_v19  ;;  %6381 = vmatprep.subr.bf16.mxu0 %v6933_v1  ;;  %v3554_v19 = vrot.slane %v3552_v47, 6  ;;  %v6804_v47 = vld [vmem:[%s8204_s1 + $0x550] sm:$0xff]  }
 0x12e   : > { %6401 = vmatprep.subr.bf16.mxu1 %v6933_v1 }
 0x12f   : > { %v1010_v27 = vpop.f32.mrf.mxu0  ;;  %6358 = vmatmul.mubr.bf16.vlgmr.msra.gmra.mxu0 %v2918_v20  ;;  %v3557_v20 = vrot.slane %v3555_v60, 7 }
 0x130   : > { %v1017_v22 = vadd.f32 %v1010_v27, %v878_v58  ;;  %6382 = vmatpush3.bf16.msra.mxu0 %v6773_v21  ;;  %v1232_v23 = vpop.f32.mrf.mxu1  ;;  %6378 = vmatmul.mubr.bf16.vlgmr.msra.gmra.mxu1 %v3140_v7  ;;  %v6794_v58 = vld [vmem:[%s8204_s1 + $0x578] sm:$0xff]   ;;  %v3568_v27 = vrot.slane %v3566_v62, 6  ;;  %v6805_v62 = vld [vmem:[%s8204_s1 + $0x508] sm:$0xff]  }
 0x131   : > { %v6119_v28 = vpop.f32.mrf.mxu0  ;;  %6402 = vmatpush3.bf16.msra.mxu1 %v6774_v25  ;;  %6383 = vmatprep.subr.bf16.mxu0 %v6933_v1  ;;  %v3550_v25 = vcombine.high %v5559_v59, %v5559_v59 }
 0x132   : > { %v7810_v30 = vadd.f32 %v1232_v23, %v1017_v22  ;;  %v6139_v31 = vpop.f32.mrf.mxu1  ;;  %6403 = vmatprep.subr.bf16.mxu1 %v6933_v1  ;;  %6397 = vmatprep.mubr.msk.bf16.mxu0 %vm6934_vm0, %v6933_v1  ;;  %v3571_v22 = vrot.slane %v3569_v63, 7  ;;  %v3582_v23 = vrot.slane %v3580_v0, 6  ;;  %v6885_v63 = vld.sshfl [vmem:[%s7047_s28 + $0x8c] sm:$0xf pattern:$0x76325410] }
 0x133   : > { %v1013_v16 = vpop.f32.mrf.mxu0  ;;  %6417 = vmatprep.mubr.msk.bf16.mxu1 %vm6934_vm0, %v6933_v1  ;;  %v3596_v31 = vrot.slane %v3594_v9, 6  ;;  %v6886_v0 = vld.sshfl [vmem:[%s7047_s28 + $0x94] sm:$0xf pattern:$0x76325410]  ;;  %v6808_v9 = vld [vmem:[%s8204_s1 + $0x540] sm:$0xff]  }
 0x134   : > { %v1018_v17 = vadd.f32 %v1013_v16, %v879_v5  ;;  %6384 = vmatpush3.bf16.msra.mxu0 %v6775_v26  ;;  %v1235_v7 = vpop.f32.mrf.mxu1  ;;  %v3599_v16 = vrot.slane %v3597_v10, 7 }
 0x135   : > { %v6120_v33 = vpop.f32.mrf.mxu0  ;;  %6404 = vmatpush3.bf16.msra.mxu1 %v6776_v29  ;;  %6385 = vmatprep.subr.bf16.mxu0 %v6933_v1  ;;  %v6797_v29 = vld [vmem:[%s8204_s1 + $0x528] sm:$0xff]  }
 0x136   : > { %v7824_v35 = vadd.f32 %v1235_v7, %v1018_v17  ;;  %6405 = vmatprep.subr.bf16.mxu1 %v6933_v1  ;;  %v6140_v36 = vpop.f32.mrf.mxu1  ;;  %v6798_v7 = vld [vmem:[%s8204_s1 + $0x568] sm:$0xff]  }
 0x137   : > { %v3572_v36 = vor.u32 %v3571_v22, %v3568_v27  ;;  %v6813_v22 = vld [vmem:[%s8204_s1 + $0x5b0] sm:$0xff]  }
 0x138   : > { %6386 = vmatpush3.bf16.msra.mxu0 %v6777_v32 }
 0x139   : > { %6406 = vmatpush3.bf16.msra.mxu1 %v6778_v34  ;;  %6387 = vmatprep.subr.bf16.mxu0 %v6933_v1  ;;  %v3558_v34 = vor.u32 %v3557_v20, %v3554_v19  ;;  %v3573_v46 = vrot.slane %v3572_v36, 2  ;;  %v5649_v19 = vld.sshfl [vmem:[%s7047_s28 + $0x98] sm:$0x13 pattern:$0x76325410] }
 0x13a   : > { %6407 = vmatprep.subr.bf16.mxu1 %v6933_v1 }
 0x13b   : > { %v3559_v44 = vrot.slane %v3558_v34, 2 }
 0x13c   : > { %6388 = vmatpush3.bf16.msra.mxu0 %v6779_v37  ;;  %v3575_v37 = vshll.u32 %v3534_v15, 16  ;;  %v5647_v15 = vld.sshfl [vmem:[%s7047_s28 + $0x90] sm:$0x13 pattern:$0x76325410] }
 0x13d   : > { %6408 = vmatpush3.bf16.msra.mxu1 %v6780_v38  ;;  %6389 = vmatprep.subr.bf16.mxu0 %v6933_v1  ;;  %v6799_v38 = vld [vmem:[%s8204_s1 + $0x520] sm:$0xff]   ;;  %v4034_v36 = vcombine.high %v5647_v15, %v5647_v15 }
 0x13e   : > { %6409 = vmatprep.subr.bf16.mxu1 %v6933_v1  ;;  %v3577_v48 = vrot.slane %v3575_v37, 7 }
 0x140   : > { %6390 = vmatpush3.bf16.msra.mxu0 %v6781_v39  ;;  %v7932_v57 = vsel %vm7142_vm7, %v3573_v46, %v3577_v48  ;;  %v6816_v48 = vld [vmem:[%s8204_s1 + $0x5e8] sm:$0xff]  }
 0x141   : > { %6410 = vmatpush3.bf16.msra.mxu1 %v6782_v40  ;;  %6391 = vmatprep.subr.bf16.mxu0 %v6933_v1  ;;  %v3589_v40 = vshll.u32 %v3542_v18, 16  ;;  %v5648_v18 = vld.sshfl [vmem:[%s7047_s28 + $0x94] sm:$0x13 pattern:$0x76325410] }
 0x142   : > { %6411 = vmatprep.subr.bf16.mxu1 %v6933_v1  ;;  %v4042_v37 = vcombine.high %v5648_v18, %v5648_v18 }
 0x144   : > { %6392 = vmatpush3.bf16.msra.mxu0 %v6783_v41  ;;  %v3600_v41 = vor.u32 %v3599_v16, %v3596_v31  ;;  %v4080_v31 = vshrl.u32 %v5648_v18, 16  ;;  %v4094_v16 = vshrl.u32 %v5649_v19, 16 }
 0x145   : > { %6412 = vmatpush3.bf16.msra.mxu1 %v6784_v42  ;;  %6393 = vmatprep.subr.bf16.mxu0 %v6933_v1  ;;  %v3603_v42 = vshll.u32 %v3550_v25, 16 }
 0x146   : > { %6413 = vmatprep.subr.bf16.mxu1 %v6933_v1  ;;  %v3601_v52 = vrot.slane %v3600_v41, 2 }
 0x148   : > { %6394 = vmatpush3.bf16.msra.mxu0 %v6785_v45 }
 0x149   : > { %6414 = vmatpush3.bf16.msra.mxu1 %v6786_v49  ;;  %6395 = vmatprep.subr.bf16.mxu0 %v6933_v1  ;;  %v6801_v49 = vld [vmem:[%s8204_s1 + $0x518] sm:$0xff]  }
 0x14a   : > { %6415 = vmatprep.subr.bf16.mxu1 %v6933_v1 }
 0x14c   : > { %6396 = vmatpush3.bf16.msra.mxu0 %v6787_v50 }
 0x14d   : > { %6416 = vmatpush3.bf16.msra.mxu1 %v6788_v51  ;;  %6421 = vmatprep.subr.bf16.mxu0 %v6933_v1  ;;  %v3591_v51 = vrot.slane %v3589_v40, 7 }
 0x14e   : > { %6441 = vmatprep.subr.bf16.mxu1 %v6933_v1 }
 0x14f   : > { %v1369_v61 = vpop.f32.mrf.mxu0  ;;  %6398 = vmatmul.mubr.bf16.vlgmr.msra.gmra.mxu0 %v3279_v53  ;;  %v3605_v53 = vrot.slane %v3603_v42, 7  ;;  %v6815_v42 = vld [vmem:[%s8204_s1 + $0x5a8] sm:$0xff]  }
 0x150   : > { %v1376_v5 = vadd.f32 %v1369_v61, %v7810_v30  ;;  %6422 = vmatpush3.bf16.msra.mxu0 %v6791_v55  ;;  %v1506_v6 = vpop.f32.mrf.mxu1  ;;  %6418 = vmatmul.mubr.bf16.vlgmr.msra.gmra.mxu1 %v3418_v56  ;;  %v3585_v30 = vrot.slane %v3583_v8, 7  ;;  %v6803_v55 = vld [vmem:[%s8204_s1 + $0x510] sm:$0xff]   ;;  %v6807_v8 = vld [vmem:[%s8204_s1 + $0x500] sm:$0xff]  }
 0x151   : > { %v6159_v12 = vpop.f32.mrf.mxu0  ;;  %6442 = vmatpush3.bf16.msra.mxu1 %v6794_v58  ;;  %6423 = vmatprep.subr.bf16.mxu0 %v6933_v1  ;;  %v7940_v59 = vsel %vm7142_vm7, %v3601_v52, %v3605_v53 }
 0x152   : > { %v7891_v2 = vadd.f32 %v1506_v6, %v1376_v5  ;;  %v6179_v3 = vpop.f32.mrf.mxu1  ;;  %6443 = vmatprep.subr.bf16.mxu1 %v6933_v1  ;;  %6437 = vmatprep.mubr.msk.bf16.mxu0 %vm6934_vm0, %v6933_v1  ;;  %v3586_v39 = vor.u32 %v3585_v30, %v3582_v23  ;;  %v6806_v5 = vld [vmem:[%s8204_s1 + $0x548] sm:$0xff]   ;;  %v6814_v30 = vld [vmem:[%s8204_s1 + $0x5f0] sm:$0xff]  }
 0x153   : > { %v1372_v21 = vpop.f32.mrf.mxu0  ;;  %6457 = vmatprep.mubr.msk.bf16.mxu1 %vm6934_vm0, %v6933_v1  ;;  %v5646_v12 = vld.sshfl [vmem:[%s7047_s28 + $0x8c] sm:$0x13 pattern:$0x76325410]  ;;  %v6812_v3 = vld [vmem:[%s8204_s1 + $0x5f8] sm:$0xff]  }
 0x154   : > { %v1377_v26 = vadd.f32 %v1372_v21, %v7824_v35  ;;  %6424 = vmatpush3.bf16.msra.mxu0 %v6795_v4  ;;  %v1509_v28 = vpop.f32.mrf.mxu1  ;;  %v3561_v35 = vshll.u32 %v3526_v14, 16  ;;  %v3587_v50 = vrot.slane %v3586_v39, 2  ;;  %v3779_v14 = vcombine.low %v6885_v63, %v6886_v0 }
 0x155   : > { %v6160_v17 = vpop.f32.mrf.mxu0  ;;  %6444 = vmatpush3.bf16.msra.mxu1 %v6796_v13  ;;  %6425 = vmatprep.subr.bf16.mxu0 %v6933_v1  ;;  %v6809_v13 = vld [vmem:[%s8204_s1 + $0x5b8] sm:$0xff]   ;;  %v4052_v21 = vshrl.u32 %v5646_v12, 16  ;;  %v4055_v23 = vshll.u32 %v5646_v12, 16  ;;  %v4026_v34 = vcombine.high %v5646_v12, %v5646_v12 }
 0x156   : > { %v7906_v32 = vadd.f32 %v1509_v28, %v1377_v26  ;;  %6445 = vmatprep.subr.bf16.mxu1 %v6933_v1  ;;  %v6180_v33 = vpop.f32.mrf.mxu1  ;;  %v3563_v45 = vrot.slane %v3561_v35, 7  ;;  %v7936_v58 = vsel %vm7142_vm7, %v3587_v50, %v3591_v51  ;;  %v4066_v26 = vshrl.u32 %v5647_v15, 16  ;;  %v6820_v12 = vld [vmem:[%s8204_s1 + $0x5d8] sm:$0xff]  }
 0x157   : > { %v3625_v61 = vcombine.low %v7936_v58, %v7940_v59  ;;  %v4069_v28 = vshll.u32 %v5647_v15, 16  ;;  %v4097_v17 = vshll.u32 %v5649_v19, 16  ;;  %v4054_v39 = vrot.slane %v4052_v21, 6 }
 0x158   : > { %6426 = vmatpush3.bf16.msra.mxu0 %v6797_v29  ;;  %v3564_v56 = vsel %vm7142_vm7, %v3559_v44, %v3563_v45  ;;  %v4068_v44 = vrot.slane %v4066_v26, 6  ;;  %v6823_v26 = vld [vmem:[%s8204_s1 + $0x588] sm:$0xff]  }
 0x159   : > { %6446 = vmatpush3.bf16.msra.mxu1 %v6798_v7  ;;  %6427 = vmatprep.subr.bf16.mxu0 %v6933_v1  ;;  %v3624_v60 = vcombine.low %v3564_v56, %v7932_v57  ;;  %v3639_v4 = vrot.slane %v3625_v61, %v7069_v24  ;;  %v4071_v45 = vrot.slane %v4069_v28, 7  ;;  %v4099_v51 = vrot.slane %v4097_v17, 7  ;;  %v6818_v61 = vld [vmem:[%s8204_s1 + $0x5e0] sm:$0xff]  }
 0x15a   : > { %6447 = vmatprep.subr.bf16.mxu1 %v6933_v1  ;;  %v4061_v56 = vshll.u32 %v4026_v34, 16  ;;  %v6826_v17 = vld [vmem:[%s8204_s1 + $0x5c0] sm:$0xff]   ;;  %v6829_v34 = vld [vmem:[%s8204_s1 + $0x638] sm:$0xff]  }
 0x15b   : > { %v3632_v6 = vrot.slane %v3624_v60, %v7069_v24  ;;  %v4089_v60 = vshll.u32 %v4042_v37, 16 }
 0x15c   : > { %6428 = vmatpush3.bf16.msra.mxu0 %v6799_v38  ;;  %v4050_v38 = vcombine.high %v5649_v19, %v5649_v19 }
 0x15d   : > { %6448 = vmatpush3.bf16.msra.mxu1 %v6800_v43  ;;  %6429 = vmatprep.subr.bf16.mxu0 %v6933_v1  ;;  %v3640_v10 = vcombine.low %v3632_v6, %v3639_v4  ;;  %v4057_v43 = vrot.slane %v4055_v23, 7  ;;  %v6819_v6 = vld [vmem:[%s8204_s1 + $0x598] sm:$0xff]   ;;  %v6888_v23 = vld.sshfl [vmem:[%s7047_s28 + $0xd0] sm:$0xf pattern:$0x76325410] }
 0x15e   : > { %6449 = vmatprep.subr.bf16.mxu1 %v6933_v1 }
 0x160   : > { %6430 = vmatpush3.bf16.msra.mxu0 %v6801_v49  ;;  %v4082_v49 = vrot.slane %v4080_v31, 6  ;;  %v6825_v31 = vld [vmem:[%s8204_s1 + $0x580] sm:$0xff]  }
 0x161   : > { %6450 = vmatpush3.bf16.msra.mxu1 %v6802_v54  ;;  %6431 = vmatprep.subr.bf16.mxu0 %v6933_v1  ;;  %v6817_v54 = vld [vmem:[%s8204_s1 + $0x5a0] sm:$0xff]  }
 0x162   : > { %6451 = vmatprep.subr.bf16.mxu1 %v6933_v1 }
 0x164   : > { %6432 = vmatpush3.bf16.msra.mxu0 %v6803_v55  ;;  %v4058_v55 = vor.u32 %v4057_v43, %v4054_v39 }
 0x165   : > { %6452 = vmatpush3.bf16.msra.mxu1 %v6804_v47  ;;  %6433 = vmatprep.subr.bf16.mxu0 %v6933_v1  ;;  %v4075_v47 = vshll.u32 %v4034_v36, 16  ;;  %v6830_v36 = vld [vmem:[%s8204_s1 + $0x678] sm:$0xff]  }
 0x166   : > { %6453 = vmatprep.subr.bf16.mxu1 %v6933_v1  ;;  %v4059_v4 = vrot.slane %v4058_v55, 2  ;;  %v6838_v55 = vld [vmem:[%s8204_s1 + $0x658] sm:$0xff]  }
 0x168   : > { %6434 = vmatpush3.bf16.msra.mxu0 %v6805_v62  ;;  %v4072_v62 = vor.u32 %v4071_v45, %v4068_v44 }
 0x169   : > { %6454 = vmatpush3.bf16.msra.mxu1 %v6806_v5  ;;  %6435 = vmatprep.subr.bf16.mxu0 %v6933_v1  ;;  %v4103_v5 = vshll.u32 %v4050_v38, 16 }
 0x16a   : > { %6455 = vmatprep.subr.bf16.mxu1 %v6933_v1 }
 0x16c   : > { %6436 = vmatpush3.bf16.msra.mxu0 %v6807_v8  ;;  %v4063_v8 = vrot.slane %v4061_v56, 7  ;;  %v6839_v56 = vld [vmem:[%s8204_s1 + $0x610] sm:$0xff]  }
 0x16d   : > { %6456 = vmatpush3.bf16.msra.mxu1 %v6808_v9  ;;  %6461 = vmatprep.subr.bf16.mxu0 %v6933_v1  ;;  %v4077_v9 = vrot.slane %v4075_v47, 7  ;;  %v6840_v47 = vld [vmem:[%s8204_s1 + $0x650] sm:$0xff]  }
 0x16e   : > { %6481 = vmatprep.subr.bf16.mxu1 %v6933_v1  ;;  %v4064_v19 = vsel %vm7142_vm7, %v4059_v4, %v4063_v8  ;;  %v6844_v4 = vld [vmem:[%s8204_s1 + $0x640] sm:$0xff]  }
 0x16f   : > { %v1728_v20 = vpop.f32.mrf.mxu0  ;;  %6438 = vmatmul.mubr.bf16.vlgmr.msra.gmra.mxu0 %v3640_v10  ;;  %v4091_v10 = vrot.slane %v4089_v60, 7  ;;  %v6889_v60 = vld.sshfl [vmem:[%s7047_s28 + $0x18] sm:$0xf pattern:$0x76325410] }
 0x170   : > { %v1735_v25 = vadd.f32 %v1728_v20, %v7891_v2  ;;  %6462 = vmatpush3.bf16.msra.mxu0 %v6809_v13  ;;  %v1867_v27 = vpop.f32.mrf.mxu1  ;;  %6458 = vmatmul.mubr.bf16.vlgmr.msra.gmra.mxu1 %v3779_v14  ;;  %v4083_v2 = vshll.u32 %v5648_v18, 16  ;;  %v4073_v13 = vrot.slane %v4072_v62, 2  ;;  %v6821_v18 = vld [vmem:[%s8204_s1 + $0x590] sm:$0xff]   ;;  %v6841_v62 = vld [vmem:[%s8204_s1 + $0x608] sm:$0xff]  }
 0x171   : > { %v6199_v29 = vpop.f32.mrf.mxu0  ;;  %6482 = vmatpush3.bf16.msra.mxu1 %v6812_v3  ;;  %6463 = vmatprep.subr.bf16.mxu0 %v6933_v1  ;;  %v4105_v3 = vrot.slane %v4103_v5, 7  ;;  %v6822_v20 = vld [vmem:[%s8204_s1 + $0x5d0] sm:$0xff]   ;;  %v6842_v5 = vld [vmem:[%s8204_s1 + $0x648] sm:$0xff]  }
 0x172   : > { %v7990_v7 = vadd.f32 %v1867_v27, %v1735_v25  ;;  %v6219_v33 = vpop.f32.mrf.mxu1  ;;  %6483 = vmatprep.subr.bf16.mxu1 %v6933_v1  ;;  %6477 = vmatprep.mubr.msk.bf16.mxu0 %vm6934_vm0, %v6933_v1  ;;  %v4085_v50 = vrot.slane %v4083_v2, 7  ;;  %v4078_v21 = vsel %vm7142_vm7, %v4073_v13, %v4077_v9  ;;  %v6847_v9 = vld [vmem:[%s8204_s1 + $0x6b8] sm:$0xff]  }
 0x173   : > { %v1731_v35 = vpop.f32.mrf.mxu0  ;;  %6497 = vmatprep.mubr.msk.bf16.mxu1 %vm6934_vm0, %v6933_v1  ;;  %v4124_v28 = vcombine.low %v4064_v19, %v4078_v21 }
 0x174   : > { %v1736_v40 = vadd.f32 %v1731_v35, %v7906_v32  ;;  %6464 = vmatpush3.bf16.msra.mxu0 %v6813_v22  ;;  %v1870_v41 = vpop.f32.mrf.mxu1  ;;  %v4096_v32 = vrot.slane %v4094_v16, 6  ;;  %v4086_v63 = vor.u32 %v4085_v50, %v4082_v49  ;;  %v6887_v22 = vld.sshfl [vmem:[%s7047_s28 + $0xc8] sm:$0xf pattern:$0x76325410] }
 0x175   : > { %v6200_v46 = vpop.f32.mrf.mxu0  ;;  %6484 = vmatpush3.bf16.msra.mxu1 %v6814_v30  ;;  %6465 = vmatprep.subr.bf16.mxu0 %v6933_v1  ;;  %v6824_v30 = vld [vmem:[%s8204_s1 + $0x5c8] sm:$0xff]   ;;  %v4132_v2 = vrot.slane %v4124_v28, %v7069_v24  ;;  %v3918_v33 = vcombine.low %v6887_v22, %v6888_v23 }
 0x176   : > { %v8005_v52 = vadd.f32 %v1870_v41, %v1736_v40  ;;  %6485 = vmatprep.subr.bf16.mxu1 %v6933_v1  ;;  %v6220_v53 = vpop.f32.mrf.mxu1  ;;  %v4100_v0 = vor.u32 %v4099_v51, %v4096_v32  ;;  %v4087_v14 = vrot.slane %v4086_v63, 2  ;;  %v6831_v40 = vld [vmem:[%s8204_s1 + $0x630] sm:$0xff]   ;;  %v6834_v50 = vld [vmem:[%s8204_s1 + $0x668] sm:$0xff]  }
 0x177   : > { %v6836_v53 = vld [vmem:[%s8204_s1 + $0x660] sm:$0xff]   ;;  %v6891_v63 = vld.sshfl [vmem:[%s7047_s28 + $0x54] sm:$0xf pattern:$0x76325410] }
 0x178   : > { %6466 = vmatpush3.bf16.msra.mxu0 %v6815_v42  ;;  %v4101_v15 = vrot.slane %v4100_v0, 2  ;;  %v4092_v25 = vsel %vm7142_vm7, %v4087_v14, %v4091_v10  ;;  %v6832_v42 = vld [vmem:[%s8204_s1 + $0x670] sm:$0xff]   ;;  %v6892_v0 = vld.sshfl [vmem:[%s7047_s28 + $0x5c] sm:$0xf pattern:$0x76325410] }
 0x179   : > { %6486 = vmatpush3.bf16.msra.mxu1 %v6816_v48  ;;  %6467 = vmatprep.subr.bf16.mxu0 %v6933_v1  ;;  %v6833_v48 = vld [vmem:[%s8204_s1 + $0x628] sm:$0xff]   ;;  %v4414_v10 = vcombine.low %v6891_v63, %v6892_v0 }
 0x17a   : > { %6487 = vmatprep.subr.bf16.mxu1 %v6933_v1  ;;  %v4106_v27 = vsel %vm7142_vm7, %v4101_v15, %v4105_v3  ;;  %v6850_v3 = vld [vmem:[%s8204_s1 + $0x6b0] sm:$0xff]  }
 0x17b   : > { %v4125_v29 = vcombine.low %v4092_v25, %v4106_v27 }
 0x17c   : > { %6468 = vmatpush3.bf16.msra.mxu0 %v6817_v54  ;;  %v6837_v54 = vld [vmem:[%s8204_s1 + $0x618] sm:$0xff]  }
 0x17d   : > { %6488 = vmatpush3.bf16.msra.mxu1 %v6818_v61  ;;  %6469 = vmatprep.subr.bf16.mxu0 %v6933_v1  ;;  %v4139_v16 = vrot.slane %v4125_v29, %v7069_v24  ;;  %v6890_v61 = vld.sshfl [vmem:[%s7047_s28 + $0x20] sm:$0xf pattern:$0x76325410] }
 0x17e   : > { %6489 = vmatprep.subr.bf16.mxu1 %v6933_v1  ;;  %v4277_v8 = vcombine.low %v6889_v60, %v6890_v61 }
 0x17f   : > { %v4140_v35 = vcombine.low %v4132_v2, %v4139_v16 }
 0x180   : > { %6470 = vmatpush3.bf16.msra.mxu0 %v6819_v6  ;;  %v6843_v6 = vld [vmem:[%s8204_s1 + $0x600] sm:$0xff]  }
 0x181   : > { %6490 = vmatpush3.bf16.msra.mxu1 %v6820_v12  ;;  %6471 = vmatprep.subr.bf16.mxu0 %v6933_v1  ;;  %v5739_v12 = vld.sshfl [vmem:[%s7047_s28 + $0x24] sm:$0x13 pattern:$0x76325410]  ;;  %s4977_s28 = sshll.u32 %s234_s6, 2 }
 0x182   : > { %6491 = vmatprep.subr.bf16.mxu1 %v6933_v1  ;;  %v4593_v19 = vshll.u32 %v5739_v12, 16  ;;  %v4546_v28 = vcombine.high %v5739_v12, %v5739_v12  ;;  %s236_s9 = scalar_lea.vmem %s8207_s4, %s4977_s28 }
 0x184   : > { %6472 = vmatpush3.bf16.msra.mxu0 %v6821_v18  ;;  %v4590_v18 = vshrl.u32 %v5739_v12, 16 }
 0x185   : > { %6492 = vmatpush3.bf16.msra.mxu1 %v6822_v20  ;;  %6473 = vmatprep.subr.bf16.mxu0 %v6933_v1 }
 0x186   : > { %6493 = vmatprep.subr.bf16.mxu1 %v6933_v1  ;;  %v4592_v29 = vrot.slane %v4590_v18, 6 }
 0x188   : > { %6474 = vmatpush3.bf16.msra.mxu0 %v6823_v26  ;;  %v6851_v26 = vld [vmem:[%s8204_s1 + $0x6a8] sm:$0xff]  }
 0x189   : > { %6494 = vmatpush3.bf16.msra.mxu1 %v6824_v30  ;;  %6475 = vmatprep.subr.bf16.mxu0 %v6933_v1  ;;  %v4595_v30 = vrot.slane %v4593_v19, 7 }
 0x18a   : > { %6495 = vmatprep.subr.bf16.mxu1 %v6933_v1 }
 0x18c   : > { %6476 = vmatpush3.bf16.msra.mxu0 %v6825_v31 }
 0x18d   : > { %6496 = vmatpush3.bf16.msra.mxu1 %v6826_v17  ;;  %6501 = vmatprep.subr.bf16.mxu0 %v6933_v1  ;;  %v6852_v17 = vld [vmem:[%s8204_s1 + $0x6a0] sm:$0xff]  }
 0x18e   : > { %6521 = vmatprep.subr.bf16.mxu1 %v6933_v1 }
 0x18f   : > { %v2006_v37 = vpop.f32.mrf.mxu0  ;;  %6478 = vmatmul.mubr.bf16.vlgmr.msra.gmra.mxu0 %v3918_v33  ;;  %v4596_v33 = vor.u32 %v4595_v30, %v4592_v29 }
 0x190   : > { %v2013_v38 = vadd.f32 %v2006_v37, %v7990_v7  ;;  %6502 = vmatpush3.bf16.msra.mxu0 %v6829_v34  ;;  %v2228_v39 = vpop.f32.mrf.mxu1  ;;  %6498 = vmatmul.mubr.bf16.vlgmr.msra.gmra.mxu1 %v4140_v35  ;;  %v4599_v34 = vshll.u32 %v4546_v28, 16  ;;  %v6853_v35 = vld [vmem:[%s8204_s1 + $0x698] sm:$0xff]  }
 0x191   : > { %v6239_v41 = vpop.f32.mrf.mxu0  ;;  %6522 = vmatpush3.bf16.msra.mxu1 %v6830_v36  ;;  %6503 = vmatprep.subr.bf16.mxu0 %v6933_v1  ;;  %v4597_v36 = vrot.slane %v4596_v33, 2 }
 0x192   : > { %v2235_v43 = vadd.f32 %v2228_v39, %v2013_v38  ;;  %v6259_v44 = vpop.f32.mrf.mxu1  ;;  %6523 = vmatprep.subr.bf16.mxu1 %v6933_v1  ;;  %6517 = vmatprep.mubr.msk.bf16.mxu0 %vm6934_vm0, %v6933_v1  ;;  %v4601_v37 = vrot.slane %v4599_v34, 7  ;;  %v6854_v38 = vld [vmem:[%s8204_s1 + $0x690] sm:$0xff]  }
 0x193   : > { %v2009_v7 = vpop.f32.mrf.mxu0  ;;  %6537 = vmatprep.mubr.msk.bf16.mxu1 %vm6934_vm0, %v6933_v1 }
 0x194   : > { %v2014_v45 = vadd.f32 %v2009_v7, %v8005_v52  ;;  %6504 = vmatpush3.bf16.msra.mxu0 %v6831_v40  ;;  %v2231_v46 = vpop.f32.mrf.mxu1  ;;  %v6835_v52 = vld [vmem:[%s8204_s1 + $0x620] sm:$0xff]   ;;  %v4602_v39 = vsel %vm7142_vm7, %v4597_v36, %v4601_v37  ;;  %v4620_v40 = vcombine.low %v7932_v57, %v7936_v58 }
 0x195   : > { %v6240_v49 = vpop.f32.mrf.mxu0  ;;  %6524 = vmatpush3.bf16.msra.mxu1 %v6832_v42  ;;  %6505 = vmatprep.subr.bf16.mxu0 %v6933_v1  ;;  %v4621_v41 = vcombine.low %v7940_v59, %v4602_v39  ;;  %v6855_v42 = vld [vmem:[%s8204_s1 + $0x688] sm:$0xff]  }
 0x196   : > { %v2236_v32 = vadd.f32 %v2231_v46, %v2014_v45  ;;  %6525 = vmatprep.subr.bf16.mxu1 %v6933_v1  ;;  %v6260_v51 = vpop.f32.mrf.mxu1 }
 0x197   : > { %v4635_v44 = vrot.slane %v4621_v41, %v7069_v24 }
 0x198   : > { %6506 = vmatpush3.bf16.msra.mxu0 %v6833_v48 }
 0x199   : > { %6526 = vmatpush3.bf16.msra.mxu1 %v6834_v50  ;;  %6507 = vmatprep.subr.bf16.mxu0 %v6933_v1 }
 0x19a   : > { %6527 = vmatprep.subr.bf16.mxu1 %v6933_v1 }
 0x19c   : > { %6508 = vmatpush3.bf16.msra.mxu0 %v6835_v52 }
 0x19d   : > { %6528 = vmatpush3.bf16.msra.mxu1 %v6836_v53  ;;  %6509 = vmatprep.subr.bf16.mxu0 %v6933_v1 }
 0x19e   : > { %6529 = vmatprep.subr.bf16.mxu1 %v6933_v1 }
 0x1a0   : > { %6510 = vmatpush3.bf16.msra.mxu0 %v6837_v54 }
 0x1a1   : > { %6530 = vmatpush3.bf16.msra.mxu1 %v6838_v55  ;;  %6511 = vmatprep.subr.bf16.mxu0 %v6933_v1 }
 0x1a2   : > { %6531 = vmatprep.subr.bf16.mxu1 %v6933_v1 }
 0x1a4   : > { %6512 = vmatpush3.bf16.msra.mxu0 %v6839_v56 }
 0x1a5   : > { %6532 = vmatpush3.bf16.msra.mxu1 %v6840_v47  ;;  %6513 = vmatprep.subr.bf16.mxu0 %v6933_v1 }
 0x1a6   : > { %6533 = vmatprep.subr.bf16.mxu1 %v6933_v1 }
 0x1a8   : > { %6514 = vmatpush3.bf16.msra.mxu0 %v6841_v62 }
 0x1a9   : > { %6534 = vmatpush3.bf16.msra.mxu1 %v6842_v5  ;;  %6515 = vmatprep.subr.bf16.mxu0 %v6933_v1 }
 0x1aa   : > { %6535 = vmatprep.subr.bf16.mxu1 %v6933_v1 }
 0x1ac   : > { %6516 = vmatpush3.bf16.msra.mxu0 %v6843_v6 }
 0x1ad   : > { %6536 = vmatpush3.bf16.msra.mxu1 %v6844_v4  ;;  %6541 = vmatprep.subr.bf16.mxu0 %v6933_v1 }
 0x1af   : > { %v2367_v13 = vpop.f32.mrf.mxu0  ;;  %6518 = vmatmul.mubr.bf16.vlgmr.msra.gmra.mxu0 %v4277_v8 }
 0x1b0   : > { %v2374_v14 = vadd.f32 %v2367_v13, %v2235_v43  ;;  %6542 = vmatpush3.bf16.msra.mxu0 %v6847_v9  ;;  %v2506_v15 = vpop.f32.mrf.mxu1  ;;  %6538 = vmatmul.mubr.bf16.vlgmr.msra.gmra.mxu1 %v4414_v10  ;;  %v4628_v43 = vrot.slane %v4620_v40, %v7069_v24 }
 0x1b1   : > { %v6279_v20 = vpop.f32.mrf.mxu0  ;;  %6543 = vmatprep.subr.bf16.mxu0 %v6933_v1  ;;  %6557 = vmatprep.mubr.msk.bf16.mxu0 %vm6934_vm0, %v6933_v1 }
 0x1b2   : > { %v2513_v21 = vadd.f32 %v2506_v15, %v2374_v14  ;;  %v6299_v25 = vpop.f32.mrf.mxu1  ;;  %v4636_v57 = vcombine.low %v4628_v43, %v4635_v44 }
 0x1b3   : > { %v2370_v27 = vpop.f32.mrf.mxu0 }
 0x1b4   : > { %v2375_v22 = vadd.f32 %v2370_v27, %v2236_v32  ;;  %6544 = vmatpush3.bf16.msra.mxu0 %v6850_v3  ;;  %v2509_v23 = vpop.f32.mrf.mxu1 }
 0x1b5   : > { %v6280_v31 = vpop.f32.mrf.mxu0  ;;  %6545 = vmatprep.subr.bf16.mxu0 %v6933_v1 }
 0x1b6   : > { %v2514_v2 = vadd.f32 %v2509_v23, %v2375_v22  ;;  %v6300_v16 = vpop.f32.mrf.mxu1 }
 0x1b8   : > { %6546 = vmatpush3.bf16.msra.mxu0 %v6851_v26 }
 0x1b9   : > { %6547 = vmatprep.subr.bf16.mxu0 %v6933_v1 }
 0x1bc   : > { %6548 = vmatpush3.bf16.msra.mxu0 %v6852_v17 }
 0x1bd   : > { %6549 = vmatprep.subr.bf16.mxu0 %v6933_v1 }
 0x1c0   : > { %6550 = vmatpush3.bf16.msra.mxu0 %v6853_v35 }
 0x1c1   : > { %6551 = vmatprep.subr.bf16.mxu0 %v6933_v1 }
 0x1c4   : > { %6552 = vmatpush3.bf16.msra.mxu0 %v6854_v38 }
 0x1c5   : > { %6553 = vmatprep.subr.bf16.mxu0 %v6933_v1 }
 0x1c8   : > { %6554 = vmatpush3.bf16.msra.mxu0 %v6855_v42 }
 0x1c9   : > { %6555 = vmatprep.subr.bf16.mxu0 %v6933_v1 }
 0x1cc   : > { %6556 = vmatpush3.bf16.msra.mxu0 %v6856_v11 }
 0x1cf   : > { %v2728_v58 = vpop.f32.mrf.mxu0  ;;  %6558 = vmatmul.mubr.bf16.vlgmr.msra.gmra.mxu0 %v4636_v57 }
 0x1d0   : > { %v2735_v59 = vadd.f32 %v2728_v58, %v2513_v21  ;;  %v2865_v7 = vpop.f32.mrf.mxu1 }
 0x1d1   : > { %v6319_v45 = vpop.f32.mrf.mxu0 }
 0x1d2   : > { %v2872_v46 = vadd.f32 %v2865_v7, %v2735_v59  ;;  %v6339_v48 = vpop.f32.mrf.mxu1 }
 0x1d3   : > { %v2731_v49 = vpop.f32.mrf.mxu0 }
 0x1d4   : > { %v2736_v50 = vadd.f32 %v2731_v49, %v2514_v2  ;;  %v2868_v32 = vpop.f32.mrf.mxu1 }
 0x1d5   : > { %v6320_v24 = vpop.f32.mrf.mxu0 }
 0x1d6   : > { %v2873_v51 = vadd.f32 %v2868_v32, %v2736_v50  ;;  %v6340_v52 = vpop.f32.mrf.mxu1  ;;  %v5764_v32 = vld [vmem:[%s8205_s2] ss:$0 sm:$0xff] }
 0x1ef   : > { %v3002_v53 = vpop.f32.mrf.mxu0 }
 0x1f0   : > { %v3009_v54 = vadd.f32 %v3002_v53, %v2872_v46  ;;  %v3224_v55 = vpop.f32.mrf.mxu1 }
 0x1f1   : > { %v6359_v56 = vpop.f32.mrf.mxu0 }
 0x1f2   : > { %v3231_v1 = vadd.f32 %v3224_v55, %v3009_v54  ;;  %v6379_v47 = vpop.f32.mrf.mxu1  ;;  %v5765_v54 = vld [vmem:[%s8206_s3] ss:$0 sm:$0xff] }
 0x1f3   : > { %v3005_v60 = vpop.f32.mrf.mxu0 }
 0x1f4   : > { %v3010_v61 = vadd.f32 %v3005_v60, %v2873_v51  ;;  %v3227_v62 = vpop.f32.mrf.mxu1 }
 0x1f5   : > { %v6360_v63 = vpop.f32.mrf.mxu0 }
 0x1f6   : > { %v3232_v0 = vadd.f32 %v3227_v62, %v3010_v61  ;;  %v6380_v5 = vpop.f32.mrf.mxu1 }
 0x20f   : > { %v3363_v6 = vpop.f32.mrf.mxu0 }
 0x210   : > { %v3370_v4 = vadd.f32 %v3363_v6, %v3231_v1  ;;  %v3502_v8 = vpop.f32.mrf.mxu1 }
 0x211   : > { %v6399_v9 = vpop.f32.mrf.mxu0 }
 0x212   : > { %v3509_v10 = vadd.f32 %v3502_v8, %v3370_v4  ;;  %v6419_v12 = vpop.f32.mrf.mxu1 }
 0x213   : > { %v3366_v13 = vpop.f32.mrf.mxu0 }
 0x214   : > { %v3371_v14 = vadd.f32 %v3366_v13, %v3232_v0  ;;  %v3505_v15 = vpop.f32.mrf.mxu1 }
 0x215   : > { %v6400_v3 = vpop.f32.mrf.mxu0 }
 0x216   : > { %v3510_v18 = vadd.f32 %v3505_v15, %v3371_v14  ;;  %v6420_v19 = vpop.f32.mrf.mxu1 }
 0x22f   : > { %v3724_v20 = vpop.f32.mrf.mxu0 }
 0x230   : > { %v3731_v21 = vadd.f32 %v3724_v20, %v3509_v10  ;;  %v3863_v25 = vpop.f32.mrf.mxu1 }
 0x231   : > { %v6439_v27 = vpop.f32.mrf.mxu0 }
 0x232   : > { %v3870_v22 = vadd.f32 %v3863_v25, %v3731_v21  ;;  %v6459_v23 = vpop.f32.mrf.mxu1 }
 0x233   : > { %v3727_v26 = vpop.f32.mrf.mxu0 }
 0x234   : > { %v3732_v28 = vadd.f32 %v3727_v26, %v3510_v18  ;;  %v3866_v29 = vpop.f32.mrf.mxu1 }
 0x235   : > { %v6440_v30 = vpop.f32.mrf.mxu0 }
 0x236   : > { %v3871_v31 = vadd.f32 %v3866_v29, %v3732_v28  ;;  %v6460_v2 = vpop.f32.mrf.mxu1 }
 0x24f   : > { %v4002_v16 = vpop.f32.mrf.mxu0 }
 0x250   : > { %v4224_v17 = vpop.f32.mrf.mxu1  ;;  %v4009_v58 = vadd.f32 %v4002_v16, %v3870_v22 }
 0x251   : > { %v6479_v33 = vpop.f32.mrf.mxu0 }
 0x252   : > { %v6499_v34 = vpop.f32.mrf.mxu1  ;;  %v4231_v59 = vadd.f32 %v4224_v17, %v4009_v58 }
 0x253   : > { %v4005_v35 = vpop.f32.mrf.mxu0 }
 0x254   : > { %v4227_v36 = vpop.f32.mrf.mxu1  ;;  %v4010_v7 = vadd.f32 %v4005_v35, %v3871_v31 }
 0x255   : > { %v6480_v37 = vpop.f32.mrf.mxu0 }
 0x256   : > { %v6500_v38 = vpop.f32.mrf.mxu1  ;;  %v4232_v46 = vadd.f32 %v4227_v36, %v4010_v7 }
 0x26f   : > { %v4361_v39 = vpop.f32.mrf.mxu0 }
 0x270   : > { %v4498_v40 = vpop.f32.mrf.mxu1  ;;  %v4368_v45 = vadd.f32 %v4361_v39, %v4231_v59 }
 0x271   : > { %v6519_v41 = vpop.f32.mrf.mxu0 }
 0x272   : > { %v6539_v42 = vpop.f32.mrf.mxu1  ;;  %v4505_v48 = vadd.f32 %v4498_v40, %v4368_v45 }
 0x273   : > { %v4364_v43 = vpop.f32.mrf.mxu0 }
 0x274   : > { %v4501_v44 = vpop.f32.mrf.mxu1  ;;  %v4369_v49 = vadd.f32 %v4364_v43, %v4232_v46 }
 0x275   : > { %v6520_v11 = vpop.f32.mrf.mxu0 }
 0x276   : > { %v6540_v57 = vpop.f32.mrf.mxu1  ;;  %v4506_v52 = vadd.f32 %v4501_v44, %v4369_v49 }
 0x28f   : > { %v4720_v50 = vpop.f32.mrf.mxu0 }
 0x290   : > { %v4727_v24 = vadd.f32 %v4720_v50, %v4505_v48 }
 0x291   : > { %v6559_v51 = vpop.f32.mrf.mxu0 }
 0x292   : > { %v4736_v53 = vmul.f32 %v5764_v32, %v4727_v24 }
 0x293   : > { %v4723_v55 = vpop.f32.mrf.mxu0 }
 0x294   : > { %v4728_v56 = vadd.f32 %v4723_v55, %v4506_v52  ;;  %v4745_v47 = vadd.f32 %v5765_v54, %v4736_v53 }
 0x295   : > { %v6560_v1 = vpop.f32.mrf.mxu0 }
 0x296   : > { %v4737_v60 = vmul.f32 %v5764_v32, %v4728_v56  ;;  %v4747_v62 = vmax.f32 %v4745_v47, 0.0 }
 0x298   : > { %v4746_v61 = vadd.f32 %v5765_v54, %v4737_v60 }
 0x29a   : > { %v4748_v63 = vmax.f32 %v4746_v61, 0.0 }
 0x29c   : > { %v5776_v0 = vpack.c.bf16 %v4748_v63, %v4747_v62 }
 0x29e   : > { %5777 = vst [vmem:[%s236_s9] sm:$0xff] %v5776_v0  }
 0x29f PF: > { %s14_s19 = sadd.s32 1, %s6931_s19   ;;  %s8214_s15 = smov %s6923_s17 }
 0x2a0   : > { %p11_p7 = scmp.ge.s32.totalorder %s14_s19, 6   ;;  %s8215_s16 = smov %s6927_s18 }
 0x2a1   : > { %s8216_s17 = smov %s8219_s20  ;;  %s8217_s18 = smov %s8223_s21 }
 0x2a2   :  { %13 = sbr.rel (!%p11_p7) target bundleno = 3 (0x3), region = 110 }

</bundles_post_ra>
